<compile_context>
chip_gen: v7x
topology: tpu7x:2x2x1
jax: 0.10.0
libtpu: 0.0.40
codegen_flags: <defaults>
</compile_context>

<pallas_src>
import jax
import jax.numpy as jnp
from jax import lax
from jax.experimental import pallas as pl
from jax.experimental.pallas import tpu as pltpu


# Phase/tap -> 3x3 kernel-row collapse matrix (nearest-2x upsample folded into the conv).
_PHASE_M = jnp.array(
    [[[1.0, 0.0, 0.0], [0.0, 1.0, 1.0]],   # even output row/col: taps {k0}, {k1+k2}
     [[1.0, 1.0, 0.0], [0.0, 0.0, 1.0]]],  # odd  output row/col: taps {k0+k1}, {k2}
    dtype=jnp.float32)                      # shape (phase, tap, k)


def _collapse_weights(w_pair_oihw):
    """(S, Cout, Cin, 3, 3) OIHW pair -> (S, 4, 4*Cin, Cout) polyphase 2x2 weights.

    Phase index = rp*2 + rq; K index = (a*2 + b)*Cin + cin  (matches in-kernel tap concat).
    """
    s, cout, cin = w_pair_oihw.shape[0], w_pair_oihw.shape[1], w_pair_oihw.shape[2]
    w = jnp.transpose(w_pair_oihw, (0, 3, 4, 2, 1)).astype(jnp.float32)  # (S, kh, kw, Cin, Cout)
    weff = jnp.einsum('pak,qbl,sklio->spqabio', _PHASE_M, _PHASE_M, w)   # (S,2,2,2,2,Cin,Cout)
    return weff.reshape(s, 4, 4 * cin, cout)


def _pick_tile_h(H, W, cin, cout, itemsize):
    """Largest divisor of H whose per-step output tile + matmul intermediates fit a small budget."""
    budget = 4 << 20  # keep per-step working set a few MiB (v7x-friendly with double-buffering)
    best = 1
    for t in range(1, H + 1):
        if H % t:
            continue
        out_tile = t * 2 * W * 2 * cout * itemsize
        interm = t * W * (4 * cin * itemsize + 16 * cout)   # taps + f32 dot results/slab
        if out_tile + interm <= budget:
            best = t
    return best


def _upsample_conv_kernel(xp_ref, w_ref, b_ref, o_ref):
    """Fused nearest-2x upsample + 3x3 conv (pad=1), polyphase, row-tiled.

    xp_ref: (H+2, W+2, Cin)   zero-padded full-res input slab (resident across row tiles)
    w_ref : (4, 4*Cin, Cout)  collapsed polyphase weights; phase = rp*2+rq, K = (a, b, cin)
    b_ref : (1, 2*Cout)       bias duplicated for the two column parities
    o_ref : (T, 2, W, 2*Cout) o[i, rp, j, rq*Cout+c] = y_nhwc[2*(r*T+i)+rp, 2*j+rq, c]
    """
    T, _, W, two_cout = o_ref.shape
    k4 = w_ref.shape[1]                                  # 4 * Cin
    base = pl.program_id(2) * T                          # first original-res row of this tile
    bias = b_ref[...]                                    # (1, 2*Cout), read once per step

    for rp in range(2):                                  # static unroll: 4 MXU dots per step
        halves = []
        for rq in range(2):
            # Concatenate the 2x2 taps along the channel (lane) axis -> K = 4*Cin.
            taps = jnp.concatenate(
                [xp_ref[pl.ds(base + rp + a, T), pl.ds(rq + b, W), :]
                 for a in range(2) for b in range(2)],
                axis=-1)                                 # (T, W, 4*Cin)
            acc = jnp.dot(taps.reshape(T * W, k4), w_ref[2 * rp + rq],
                          preferred_element_type=jnp.float32)   # (T*W, Cout)
            halves.append(acc)
        # Column parities packed on the lane axis -> free reshape to (2W, Cout) later.
        slab = jnp.concatenate(halves, axis=-1) + bias   # (T*W, 2*Cout) f32
        o_ref[:, rp, :, :] = slab.reshape(T, W, two_cout).astype(o_ref.dtype)


@jax.jit
def _upsample2x_conv3x3_pair(hidden, cond, w_pair, b_pair):
    """nearest-2x upsample + Conv2d(k=3, pad=1) on both NCHW streams with one pallas_call."""
    x = jnp.stack([hidden, cond])                        # (S=2, N, Cin, H, W)
    S, N, Cin, H, W = x.shape
    Cout = w_pair.shape[1]
    cdt = x.dtype                                        # compute dtype follows input dtype
    isz = x.dtype.itemsize

    # Input glue: channels to the lane dim + zero pad (XLA fuses transpose+pad into one copy).
    xt = jnp.transpose(x, (0, 1, 3, 4, 2))               # (S, N, H, W, Cin)
    xp = jnp.pad(xt, ((0, 0), (0, 0), (1, 1), (1, 1), (0, 0)))

    weff = _collapse_weights(w_pair).astype(cdt)         # (S, 4, 4*Cin, Cout)
    b2 = jnp.concatenate([b_pair, b_pair], axis=-1).astype(jnp.float32).reshape(S, 1, 2 * Cout)

    T = _pick_tile_h(H, W, Cin, Cout, isz)
    n_row_tiles = H // T

    # VMEM accounting (double-buffered blocks + intermediates), explicit limit for v7x.
    in_slab = (H + 2) * (W + 2) * Cin * isz * 2
    w_slab = 4 * 4 * Cin * Cout * isz * 2
    out_tile = T * 2 * W * 2 * Cout * isz * 2
    interm = T * W * (4 * Cin * isz + 16 * Cout)
    vmem_limit = int(min(100 << 20,
                         max(32 << 20, in_slab + w_slab + out_tile + interm + (4 << 20))))
    # TODO(synk): for extreme shapes where the full-res input slab itself exceeds VMEM,
    # an additional width/Cout grid axis would be needed; not required for typical shapes.

    out = pl.pallas_call(
        _upsample_conv_kernel,
        out_shape=jax.ShapeDtypeStruct((S, N, H, 2, W, 2 * Cout), cdt),
        grid_spec=pltpu.PrefetchScalarGridSpec(
            num_scalar_prefetch=0,
            grid=(S, N, n_row_tiles),
            in_specs=[
                # Full padded slab per (stream, batch); resident across the row-tile axis.
                pl.BlockSpec((None, None, H + 2, W + 2, Cin), lambda s, n, r: (s, n, 0, 0, 0)),
                pl.BlockSpec((None, 4, 4 * Cin, Cout), lambda s, n, r: (s, 0, 0, 0)),
                pl.BlockSpec((None, 1, 2 * Cout), lambda s, n, r: (s, 0, 0)),
            ],
            out_specs=pl.BlockSpec((None, None, T, 2, W, 2 * Cout),
                                   lambda s, n, r: (s, n, r, 0, 0, 0)),
        ),
        compiler_params=pltpu.CompilerParams(
            dimension_semantics=("parallel", "parallel", "parallel"),
            vmem_limit_bytes=vmem_limit),
    )(xp, weff, b2)

    # Free reshape: (H,2)->2H row interleave and (W, 2*Cout)->(2W, Cout) column interleave.
    out = out.reshape(S, N, 2 * H, 2 * W, Cout)
    out = jnp.transpose(out, (0, 1, 4, 2, 3))            # NHWC -> NCHW (single copy pass)
    return out[0], out[1]


class Upsample2D:
    """JAX/Pallas port of the PyTorch Upsample2D (nearest 2x + Conditioner 3x3 convs)."""

    def __init__(self, channels, use_conv=False, out_channels=None, name='conv', *, key):
        self.channels = channels
        self.out_channels = out_channels or channels
        self.use_conv = use_conv
        self.name = name
        # Deterministic parameter init (Conv2d-style uniform bounds), not a checkpoint load.
        k1, k2, k3, k4 = jax.random.split(key, 4)
        fan_in = channels * 3 * 3
        bound = 1.0 / (fan_in ** 0.5)
        w_shape = (self.out_channels, channels, 3, 3)   # OIHW, like torch.nn.Conv2d
        self.spatial_w = jax.random.uniform(k1, w_shape, jnp.float32, -bound, bound)
        self.spatial_b = jax.random.uniform(k2, (self.out_channels,), jnp.float32, -bound, bound)
        self.cond_w = jax.random.uniform(k3, w_shape, jnp.float32, -bound, bound)
        self.cond_b = jax.random.uniform(k4, (self.out_channels,), jnp.float32, -bound, bound)

    def __call__(self, hidden_states, conditioning_hidden_states, output_size=None):
        assert hidden_states.shape[1] == self.channels
        # NOTE: the PyTorch bf16->f32->bf16 round-trip around nearest interpolation is a
        # numerics no-op; the conv here runs in the input dtype with f32 accumulation.
        # TODO(synk): arbitrary `output_size` nearest resize not implemented; only the
        # default scale_factor=2.0 path is supported.
        assert output_size is None, "only the scale_factor=2.0 path is implemented"
        # TODO(synk): the fused two-stream kernel assumes both streams share a shape
        # (true for this module's usage).
        assert hidden_states.shape == conditioning_hidden_states.shape
        w_pair = jnp.stack([self.spatial_w, self.cond_w])
        b_pair = jnp.stack([self.spatial_b, self.cond_b])
        return _upsample2x_conv3x3_pair(hidden_states, conditioning_hidden_states,
                                        w_pair, b_pair)


def _ref_forward(x_nchw, w_oihw, bias):
    """Pure-JAX reference: nearest 2x upsample + conv3x3(pad=1), NCHW."""
    u = jnp.repeat(jnp.repeat(x_nchw.astype(jnp.float32), 2, axis=2), 2, axis=3)
    y = lax.conv_general_dilated(
        u, w_oihw.astype(jnp.float32), window_strides=(1, 1),
        padding=((1, 1), (1, 1)), dimension_numbers=('NCHW', 'OIHW', 'NCHW'))
    return y + bias.astype(jnp.float32).reshape(1, -1, 1, 1)


if __name__ == "__main__":
    key = jax.random.PRNGKey(0)
    kmod, kh, kc = jax.random.split(key, 3)
    B, C, H, W = 2, 4, 16, 16

    hidden = jax.random.normal(kh, (B, C, H, W), jnp.float32)
    cond = jax.random.normal(kc, (B, C, H, W), jnp.float32)

    mod = Upsample2D(channels=C, use_conv=False, out_channels=C, key=kmod)
    h_out, c_out = mod(hidden, cond)
    h_out = jax.block_until_ready(h_out)
    c_out = jax.block_until_ready(c_out)

    assert h_out.shape == (B, C, 2 * H, 2 * W), h_out.shape
    assert c_out.shape == (B, C, 2 * H, 2 * W), c_out.shape

    h_ref = _ref_forward(hidden, mod.spatial_w, mod.spatial_b)
    c_ref = _ref_forward(cond, mod.cond_w, mod.cond_b)
    assert jnp.allclose(h_out, h_ref, atol=2e-3, rtol=2e-3), \
        float(jnp.max(jnp.abs(h_out - h_ref)))
    assert jnp.allclose(c_out, c_ref, atol=2e-3, rtol=2e-3), \
        float(jnp.max(jnp.abs(c_out - c_ref)))

    print("KERNEL_OK")
</pallas_src>

<mosaic_0001>
module attributes {stable_mosaic.version = 11 : i64} {
  func.func @_upsample_conv_kernel(%arg0: i32, %arg1: i32, %arg2: i32, %arg3: memref<1x1x18x18x4xf32, #tpu.memory_space<vmem>>, %arg4: memref<1x4x16x4xf32, #tpu.memory_space<vmem>>, %arg5: memref<1x1x8xf32, #tpu.memory_space<vmem>>, %arg6: memref<1x1x16x2x16x8xf32, #tpu.memory_space<vmem>>) attributes {dimension_semantics = [#tpu.dimension_semantics<parallel>, #tpu.dimension_semantics<parallel>, #tpu.dimension_semantics<parallel>], iteration_bounds = array<i64: 2, 2, 1>, scalar_prefetch = 0 : i64, scratch_operands = 0 : i64, tpu.core_type = #tpu.core_type<tc>, window_params = [{transform_indices = @transform_0, window_bounds = array<i64: 1, 1, 18, 18, 4>}, {transform_indices = @transform_1, window_bounds = array<i64: 1, 4, 16, 4>}, {transform_indices = @transform_2, window_bounds = array<i64: 1, 1, 8>}, {transform_indices = @transform_3, window_bounds = array<i64: 1, 1, 16, 2, 16, 8>}]} {
    %c16_i32 = arith.constant 16 : i32
    %0 = arith.muli %arg2, %c16_i32 : i32
    %c0 = arith.constant 0 : index
    %c0_0 = arith.constant 0 : index
    %c0_1 = arith.constant 0 : index
    %1 = vector.load %arg5[%c0, %c0_0, %c0_1] : memref<1x1x8xf32, #tpu.memory_space<vmem>>, vector<1x1x8xf32>
    %2 = vector.shape_cast %1 : vector<1x1x8xf32> to vector<1x8xf32>
    %c0_i32 = arith.constant 0 : i32
    %3 = arith.addi %0, %c0_i32 : i32
    %c0_i32_2 = arith.constant 0 : i32
    %4 = arith.addi %3, %c0_i32_2 : i32
    %c0_3 = arith.constant 0 : index
    %c0_4 = arith.constant 0 : index
    %5 = arith.index_cast %4 : i32 to index
    %c0_5 = arith.constant 0 : index
    %c0_6 = arith.constant 0 : index
    %6 = vector.load %arg3[%c0_3, %c0_4, %5, %c0_5, %c0_6] : memref<1x1x18x18x4xf32, #tpu.memory_space<vmem>>, vector<1x1x16x16x4xf32>
    %7 = vector.shape_cast %6 : vector<1x1x16x16x4xf32> to vector<16x16x4xf32>
    %c0_i32_7 = arith.constant 0 : i32
    %8 = arith.addi %0, %c0_i32_7 : i32
    %c0_i32_8 = arith.constant 0 : i32
    %9 = arith.addi %8, %c0_i32_8 : i32
    %c0_9 = arith.constant 0 : index
    %c0_10 = arith.constant 0 : index
    %10 = arith.index_cast %9 : i32 to index
    %c1 = arith.constant 1 : index
    %c0_11 = arith.constant 0 : index
    %11 = vector.load %arg3[%c0_9, %c0_10, %10, %c1, %c0_11] : memref<1x1x18x18x4xf32, #tpu.memory_space<vmem>>, vector<1x1x16x16x4xf32>
    %12 = vector.shape_cast %11 : vector<1x1x16x16x4xf32> to vector<16x16x4xf32>
    %c0_i32_12 = arith.constant 0 : i32
    %13 = arith.addi %0, %c0_i32_12 : i32
    %c1_i32 = arith.constant 1 : i32
    %14 = arith.addi %13, %c1_i32 : i32
    %c0_13 = arith.constant 0 : index
    %c0_14 = arith.constant 0 : index
    %15 = arith.index_cast %14 : i32 to index
    %c0_15 = arith.constant 0 : index
    %c0_16 = arith.constant 0 : index
    %16 = vector.load %arg3[%c0_13, %c0_14, %15, %c0_15, %c0_16] : memref<1x1x18x18x4xf32, #tpu.memory_space<vmem>>, vector<1x1x16x16x4xf32>
    %17 = vector.shape_cast %16 : vector<1x1x16x16x4xf32> to vector<16x16x4xf32>
    %c0_i32_17 = arith.constant 0 : i32
    %18 = arith.addi %0, %c0_i32_17 : i32
    %c1_i32_18 = arith.constant 1 : i32
    %19 = arith.addi %18, %c1_i32_18 : i32
    %c0_19 = arith.constant 0 : index
    %c0_20 = arith.constant 0 : index
    %20 = arith.index_cast %19 : i32 to index
    %c1_21 = arith.constant 1 : index
    %c0_22 = arith.constant 0 : index
    %21 = vector.load %arg3[%c0_19, %c0_20, %20, %c1_21, %c0_22] : memref<1x1x18x18x4xf32, #tpu.memory_space<vmem>>, vector<1x1x16x16x4xf32>
    %22 = vector.shape_cast %21 : vector<1x1x16x16x4xf32> to vector<16x16x4xf32>
    %23 = tpu.concatenate %7, %12, %17, %22 in 2 : vector<16x16x4xf32>, vector<16x16x4xf32>, vector<16x16x4xf32>, vector<16x16x4xf32> -> vector<16x16x16xf32>
    %24 = vector.shape_cast %23 : vector<16x16x16xf32> to vector<256x16xf32>
    %c0_23 = arith.constant 0 : index
    %c0_24 = arith.constant 0 : index
    %c0_25 = arith.constant 0 : index
    %c0_26 = arith.constant 0 : index
    %25 = vector.load %arg4[%c0_23, %c0_24, %c0_25, %c0_26] : memref<1x4x16x4xf32, #tpu.memory_space<vmem>>, vector<1x1x16x4xf32>
    %26 = vector.shape_cast %25 : vector<1x1x16x4xf32> to vector<16x4xf32>
    %cst = arith.constant dense<0.000000e+00> : vector<256x4xf32>
    %27 = tpu.matmul %24, %26, %cst {dimension_numbers = #tpu.dot_dimension_numbers<[1], [0], [0], [1], [0, 0, 1, 1], [], []>} : vector<256x16xf32>, vector<16x4xf32>, vector<256x4xf32> -> vector<256x4xf32>
    %c0_i32_27 = arith.constant 0 : i32
    %28 = arith.addi %0, %c0_i32_27 : i32
    %c0_i32_28 = arith.constant 0 : i32
    %29 = arith.addi %28, %c0_i32_28 : i32
    %c0_29 = arith.constant 0 : index
    %c0_30 = arith.constant 0 : index
    %30 = arith.index_cast %29 : i32 to index
    %c1_31 = arith.constant 1 : index
    %c0_32 = arith.constant 0 : index
    %31 = vector.load %arg3[%c0_29, %c0_30, %30, %c1_31, %c0_32] : memref<1x1x18x18x4xf32, #tpu.memory_space<vmem>>, vector<1x1x16x16x4xf32>
    %32 = vector.shape_cast %31 : vector<1x1x16x16x4xf32> to vector<16x16x4xf32>
    %c0_i32_33 = arith.constant 0 : i32
    %33 = arith.addi %0, %c0_i32_33 : i32
    %c0_i32_34 = arith.constant 0 : i32
    %34 = arith.addi %33, %c0_i32_34 : i32
    %c0_35 = arith.constant 0 : index
    %c0_36 = arith.constant 0 : index
    %35 = arith.index_cast %34 : i32 to index
    %c2 = arith.constant 2 : index
    %c0_37 = arith.constant 0 : index
    %36 = vector.load %arg3[%c0_35, %c0_36, %35, %c2, %c0_37] : memref<1x1x18x18x4xf32, #tpu.memory_space<vmem>>, vector<1x1x16x16x4xf32>
    %37 = vector.shape_cast %36 : vector<1x1x16x16x4xf32> to vector<16x16x4xf32>
    %c0_i32_38 = arith.constant 0 : i32
    %38 = arith.addi %0, %c0_i32_38 : i32
    %c1_i32_39 = arith.constant 1 : i32
    %39 = arith.addi %38, %c1_i32_39 : i32
    %c0_40 = arith.constant 0 : index
    %c0_41 = arith.constant 0 : index
    %40 = arith.index_cast %39 : i32 to index
    %c1_42 = arith.constant 1 : index
    %c0_43 = arith.constant 0 : index
    %41 = vector.load %arg3[%c0_40, %c0_41, %40, %c1_42, %c0_43] : memref<1x1x18x18x4xf32, #tpu.memory_space<vmem>>, vector<1x1x16x16x4xf32>
    %42 = vector.shape_cast %41 : vector<1x1x16x16x4xf32> to vector<16x16x4xf32>
    %c0_i32_44 = arith.constant 0 : i32
    %43 = arith.addi %0, %c0_i32_44 : i32
    %c1_i32_45 = arith.constant 1 : i32
    %44 = arith.addi %43, %c1_i32_45 : i32
    %c0_46 = arith.constant 0 : index
    %c0_47 = arith.constant 0 : index
    %45 = arith.index_cast %44 : i32 to index
    %c2_48 = arith.constant 2 : index
    %c0_49 = arith.constant 0 : index
    %46 = vector.load %arg3[%c0_46, %c0_47, %45, %c2_48, %c0_49] : memref<1x1x18x18x4xf32, #tpu.memory_space<vmem>>, vector<1x1x16x16x4xf32>
    %47 = vector.shape_cast %46 : vector<1x1x16x16x4xf32> to vector<16x16x4xf32>
    %48 = tpu.concatenate %32, %37, %42, %47 in 2 : vector<16x16x4xf32>, vector<16x16x4xf32>, vector<16x16x4xf32>, vector<16x16x4xf32> -> vector<16x16x16xf32>
    %49 = vector.shape_cast %48 : vector<16x16x16xf32> to vector<256x16xf32>
    %c0_50 = arith.constant 0 : index
    %c1_51 = arith.constant 1 : index
    %c0_52 = arith.constant 0 : index
    %c0_53 = arith.constant 0 : index
    %50 = vector.load %arg4[%c0_50, %c1_51, %c0_52, %c0_53] : memref<1x4x16x4xf32, #tpu.memory_space<vmem>>, vector<1x1x16x4xf32>
    %51 = vector.shape_cast %50 : vector<1x1x16x4xf32> to vector<16x4xf32>
    %cst_54 = arith.constant dense<0.000000e+00> : vector<256x4xf32>
    %52 = tpu.matmul %49, %51, %cst_54 {dimension_numbers = #tpu.dot_dimension_numbers<[1], [0], [0], [1], [0, 0, 1, 1], [], []>} : vector<256x16xf32>, vector<16x4xf32>, vector<256x4xf32> -> vector<256x4xf32>
    %53 = tpu.concatenate %27, %52 in 1 : vector<256x4xf32>, vector<256x4xf32> -> vector<256x8xf32>
    %54 = vector.broadcast %2 : vector<1x8xf32> to vector<256x8xf32>
    %55 = arith.addf %53, %54 : vector<256x8xf32>
    %56 = vector.shape_cast %55 : vector<256x8xf32> to vector<16x16x8xf32>
    %c0_55 = arith.constant 0 : index
    %c0_56 = arith.constant 0 : index
    %c0_57 = arith.constant 0 : index
    %c0_58 = arith.constant 0 : index
    %c0_59 = arith.constant 0 : index
    %c0_60 = arith.constant 0 : index
    %57 = vector.load %arg6[%c0_55, %c0_56, %c0_57, %c0_58, %c0_59, %c0_60] : memref<1x1x16x2x16x8xf32, #tpu.memory_space<vmem>>, vector<1x1x16x1x16x8xf32>
    %58 = vector.shape_cast %57 : vector<1x1x16x1x16x8xf32> to vector<16x16x8xf32>
    %59 = vector.shape_cast %56 : vector<16x16x8xf32> to vector<1x1x16x1x16x8xf32>
    tpu.vector_store %arg6[%c0_55, %c0_56, %c0_57, %c0_58, %c0_59, %c0_60], %59 {strides = array<i32>} : memref<1x1x16x2x16x8xf32, #tpu.memory_space<vmem>>, vector<1x1x16x1x16x8xf32>,
    %c1_i32_61 = arith.constant 1 : i32
    %60 = arith.addi %0, %c1_i32_61 : i32
    %c0_i32_62 = arith.constant 0 : i32
    %61 = arith.addi %60, %c0_i32_62 : i32
    %c0_63 = arith.constant 0 : index
    %c0_64 = arith.constant 0 : index
    %62 = arith.index_cast %61 : i32 to index
    %c0_65 = arith.constant 0 : index
    %c0_66 = arith.constant 0 : index
    %63 = vector.load %arg3[%c0_63, %c0_64, %62, %c0_65, %c0_66] : memref<1x1x18x18x4xf32, #tpu.memory_space<vmem>>, vector<1x1x16x16x4xf32>
    %64 = vector.shape_cast %63 : vector<1x1x16x16x4xf32> to vector<16x16x4xf32>
    %c1_i32_67 = arith.constant 1 : i32
    %65 = arith.addi %0, %c1_i32_67 : i32
    %c0_i32_68 = arith.constant 0 : i32
    %66 = arith.addi %65, %c0_i32_68 : i32
    %c0_69 = arith.constant 0 : index
    %c0_70 = arith.constant 0 : index
    %67 = arith.index_cast %66 : i32 to index
    %c1_71 = arith.constant 1 : index
    %c0_72 = arith.constant 0 : index
    %68 = vector.load %arg3[%c0_69, %c0_70, %67, %c1_71, %c0_72] : memref<1x1x18x18x4xf32, #tpu.memory_space<vmem>>, vector<1x1x16x16x4xf32>
    %69 = vector.shape_cast %68 : vector<1x1x16x16x4xf32> to vector<16x16x4xf32>
    %c1_i32_73 = arith.constant 1 : i32
    %70 = arith.addi %0, %c1_i32_73 : i32
    %c1_i32_74 = arith.constant 1 : i32
    %71 = arith.addi %70, %c1_i32_74 : i32
    %c0_75 = arith.constant 0 : index
    %c0_76 = arith.constant 0 : index
    %72 = arith.index_cast %71 : i32 to index
    %c0_77 = arith.constant 0 : index
    %c0_78 = arith.constant 0 : index
    %73 = vector.load %arg3[%c0_75, %c0_76, %72, %c0_77, %c0_78] : memref<1x1x18x18x4xf32, #tpu.memory_space<vmem>>, vector<1x1x16x16x4xf32>
    %74 = vector.shape_cast %73 : vector<1x1x16x16x4xf32> to vector<16x16x4xf32>
    %c1_i32_79 = arith.constant 1 : i32
    %75 = arith.addi %0, %c1_i32_79 : i32
    %c1_i32_80 = arith.constant 1 : i32
    %76 = arith.addi %75, %c1_i32_80 : i32
    %c0_81 = arith.constant 0 : index
    %c0_82 = arith.constant 0 : index
    %77 = arith.index_cast %76 : i32 to index
    %c1_83 = arith.constant 1 : index
    %c0_84 = arith.constant 0 : index
    %78 = vector.load %arg3[%c0_81, %c0_82, %77, %c1_83, %c0_84] : memref<1x1x18x18x4xf32, #tpu.memory_space<vmem>>, vector<1x1x16x16x4xf32>
    %79 = vector.shape_cast %78 : vector<1x1x16x16x4xf32> to vector<16x16x4xf32>
    %80 = tpu.concatenate %64, %69, %74, %79 in 2 : vector<16x16x4xf32>, vector<16x16x4xf32>, vector<16x16x4xf32>, vector<16x16x4xf32> -> vector<16x16x16xf32>
    %81 = vector.shape_cast %80 : vector<16x16x16xf32> to vector<256x16xf32>
    %c0_85 = arith.constant 0 : index
    %c2_86 = arith.constant 2 : index
    %c0_87 = arith.constant 0 : index
    %c0_88 = arith.constant 0 : index
    %82 = vector.load %arg4[%c0_85, %c2_86, %c0_87, %c0_88] : memref<1x4x16x4xf32, #tpu.memory_space<vmem>>, vector<1x1x16x4xf32>
    %83 = vector.shape_cast %82 : vector<1x1x16x4xf32> to vector<16x4xf32>
    %cst_89 = arith.constant dense<0.000000e+00> : vector<256x4xf32>
    %84 = tpu.matmul %81, %83, %cst_89 {dimension_numbers = #tpu.dot_dimension_numbers<[1], [0], [0], [1], [0, 0, 1, 1], [], []>} : vector<256x16xf32>, vector<16x4xf32>, vector<256x4xf32> -> vector<256x4xf32>
    %c1_i32_90 = arith.constant 1 : i32
    %85 = arith.addi %0, %c1_i32_90 : i32
    %c0_i32_91 = arith.constant 0 : i32
    %86 = arith.addi %85, %c0_i32_91 : i32
    %c0_92 = arith.constant 0 : index
    %c0_93 = arith.constant 0 : index
    %87 = arith.index_cast %86 : i32 to index
    %c1_94 = arith.constant 1 : index
    %c0_95 = arith.constant 0 : index
    %88 = vector.load %arg3[%c0_92, %c0_93, %87, %c1_94, %c0_95] : memref<1x1x18x18x4xf32, #tpu.memory_space<vmem>>, vector<1x1x16x16x4xf32>
    %89 = vector.shape_cast %88 : vector<1x1x16x16x4xf32> to vector<16x16x4xf32>
    %c1_i32_96 = arith.constant 1 : i32
    %90 = arith.addi %0, %c1_i32_96 : i32
    %c0_i32_97 = arith.constant 0 : i32
    %91 = arith.addi %90, %c0_i32_97 : i32
    %c0_98 = arith.constant 0 : index
    %c0_99 = arith.constant 0 : index
    %92 = arith.index_cast %91 : i32 to index
    %c2_100 = arith.constant 2 : index
    %c0_101 = arith.constant 0 : index
    %93 = vector.load %arg3[%c0_98, %c0_99, %92, %c2_100, %c0_101] : memref<1x1x18x18x4xf32, #tpu.memory_space<vmem>>, vector<1x1x16x16x4xf32>
    %94 = vector.shape_cast %93 : vector<1x1x16x16x4xf32> to vector<16x16x4xf32>
    %c1_i32_102 = arith.constant 1 : i32
    %95 = arith.addi %0, %c1_i32_102 : i32
    %c1_i32_103 = arith.constant 1 : i32
    %96 = arith.addi %95, %c1_i32_103 : i32
    %c0_104 = arith.constant 0 : index
    %c0_105 = arith.constant 0 : index
    %97 = arith.index_cast %96 : i32 to index
    %c1_106 = arith.constant 1 : index
    %c0_107 = arith.constant 0 : index
    %98 = vector.load %arg3[%c0_104, %c0_105, %97, %c1_106, %c0_107] : memref<1x1x18x18x4xf32, #tpu.memory_space<vmem>>, vector<1x1x16x16x4xf32>
    %99 = vector.shape_cast %98 : vector<1x1x16x16x4xf32> to vector<16x16x4xf32>
    %c1_i32_108 = arith.constant 1 : i32
    %100 = arith.addi %0, %c1_i32_108 : i32
    %c1_i32_109 = arith.constant 1 : i32
    %101 = arith.addi %100, %c1_i32_109 : i32
    %c0_110 = arith.constant 0 : index
    %c0_111 = arith.constant 0 : index
    %102 = arith.index_cast %101 : i32 to index
    %c2_112 = arith.constant 2 : index
    %c0_113 = arith.constant 0 : index
    %103 = vector.load %arg3[%c0_110, %c0_111, %102, %c2_112, %c0_113] : memref<1x1x18x18x4xf32, #tpu.memory_space<vmem>>, vector<1x1x16x16x4xf32>
    %104 = vector.shape_cast %103 : vector<1x1x16x16x4xf32> to vector<16x16x4xf32>
    %105 = tpu.concatenate %89, %94, %99, %104 in 2 : vector<16x16x4xf32>, vector<16x16x4xf32>, vector<16x16x4xf32>, vector<16x16x4xf32> -> vector<16x16x16xf32>
    %106 = vector.shape_cast %105 : vector<16x16x16xf32> to vector<256x16xf32>
    %c0_114 = arith.constant 0 : index
    %c3 = arith.constant 3 : index
    %c0_115 = arith.constant 0 : index
    %c0_116 = arith.constant 0 : index
    %107 = vector.load %arg4[%c0_114, %c3, %c0_115, %c0_116] : memref<1x4x16x4xf32, #tpu.memory_space<vmem>>, vector<1x1x16x4xf32>
    %108 = vector.shape_cast %107 : vector<1x1x16x4xf32> to vector<16x4xf32>
    %cst_117 = arith.constant dense<0.000000e+00> : vector<256x4xf32>
    %109 = tpu.matmul %106, %108, %cst_117 {dimension_numbers = #tpu.dot_dimension_numbers<[1], [0], [0], [1], [0, 0, 1, 1], [], []>} : vector<256x16xf32>, vector<16x4xf32>, vector<256x4xf32> -> vector<256x4xf32>
    %110 = tpu.concatenate %84, %109 in 1 : vector<256x4xf32>, vector<256x4xf32> -> vector<256x8xf32>
    %111 = vector.broadcast %2 : vector<1x8xf32> to vector<256x8xf32>
    %112 = arith.addf %110, %111 : vector<256x8xf32>
    %113 = vector.shape_cast %112 : vector<256x8xf32> to vector<16x16x8xf32>
    %c0_118 = arith.constant 0 : index
    %c0_119 = arith.constant 0 : index
    %c0_120 = arith.constant 0 : index
    %c1_121 = arith.constant 1 : index
    %c0_122 = arith.constant 0 : index
    %c0_123 = arith.constant 0 : index
    %114 = vector.load %arg6[%c0_118, %c0_119, %c0_120, %c1_121, %c0_122, %c0_123] : memref<1x1x16x2x16x8xf32, #tpu.memory_space<vmem>>, vector<1x1x16x1x16x8xf32>
    %115 = vector.shape_cast %114 : vector<1x1x16x1x16x8xf32> to vector<16x16x8xf32>
    %116 = vector.shape_cast %113 : vector<16x16x8xf32> to vector<1x1x16x1x16x8xf32>
    tpu.vector_store %arg6[%c0_118, %c0_119, %c0_120, %c1_121, %c0_122, %c0_123], %116 {strides = array<i32>} : memref<1x1x16x2x16x8xf32, #tpu.memory_space<vmem>>, vector<1x1x16x1x16x8xf32>,
    return
  }
  func.func @transform_0(%arg0: i32, %arg1: i32, %arg2: i32) -> (i32, i32, i32, i32, i32) {
    %c0_i32 = arith.constant 0 : i32
    %c0_i32_0 = arith.constant 0 : i32
    %c0_i32_1 = arith.constant 0 : i32
    %c0_i32_2 = arith.constant 0 : i32
    return %arg0, %arg1, %c0_i32, %c0_i32_0, %c0_i32_1 : i32, i32, i32, i32, i32
  }
  func.func @transform_1(%arg0: i32, %arg1: i32, %arg2: i32) -> (i32, i32, i32, i32) {
    %c0_i32 = arith.constant 0 : i32
    %c0_i32_0 = arith.constant 0 : i32
    %c0_i32_1 = arith.constant 0 : i32
    %c0_i32_2 = arith.constant 0 : i32
    return %arg0, %c0_i32, %c0_i32_0, %c0_i32_1 : i32, i32, i32, i32
  }
  func.func @transform_2(%arg0: i32, %arg1: i32, %arg2: i32) -> (i32, i32, i32) {
    %c0_i32 = arith.constant 0 : i32
    %c0_i32_0 = arith.constant 0 : i32
    %c0_i32_1 = arith.constant 0 : i32
    return %arg0, %c0_i32, %c0_i32_0 : i32, i32, i32
  }
  func.func @transform_3(%arg0: i32, %arg1: i32, %arg2: i32) -> (i32, i32, i32, i32, i32, i32) {
    %c0_i32 = arith.constant 0 : i32
    %c0_i32_0 = arith.constant 0 : i32
    %c0_i32_1 = arith.constant 0 : i32
    %c0_i32_2 = arith.constant 0 : i32
    return %arg0, %arg1, %arg2, %c0_i32, %c0_i32_0, %c0_i32_1 : i32, i32, i32, i32, i32, i32
  }
}

</mosaic_0001>

<bundles_post_ra>
// kernel: _upsample2x_conv3x3_pair.1
= control target key start
LH: loop header
LB: loop body
LE: loop exit
PB: predicated region body
PF: predicated region fallthrough
CT: control target
= control target key end

     0   :  { %s5398_s12 = smov 0   ;;  %s5400_s13 = smov 0   ;;  %s8189_s0 = inlined_call_operand.vmem [shape: f32[2,2,18,18,4], index: 0, kind: input, shape index: {}]   ;;  %s8190_s1 = inlined_call_operand.vmem [shape: f32[2,4,16,4], index: 1, kind: input, shape index: {}]   ;;  %s8191_s2 = inlined_call_operand.vmem [shape: f32[2,1,8], index: 2, kind: input, shape index: {}]   ;;  %s8192_s3 = inlined_call_operand.vmem [shape: f32[2,2,16,2,16,8], index: 3, kind: output, shape index: {}]  }
   0x1   :  { %s5402_s14 = smov 0   ;;  %s5404_s15 = smov 0  }
   0x2   :  { %s5406_s16 = smov 0  }
   0x3 LB: > { %s28_s17 = sadd.s32 1, %s5365_s14  ;;  %s32_s18 = sadd.s32 1, %s5369_s15  ;;  %s5373_s16 = sphi %s5406_s16, %s13_s16   ;;  %s5369_s15 = sphi %s5404_s15, %s8501_s15   ;;  %s5365_s14 = sphi %s5402_s14, %s8500_s14   ;;  %s5361_s13 = sphi %s5400_s13, %s8499_s13   ;;  %s5357_s12 = sphi %s5398_s12, %s8498_s12  }
   0x4   : > { %p30_p0 = scmp.ge.s32.totalorder %s28_s17, 2  ;;  %p4418_p1 = scmp.ge.s32.totalorder %s5373_s16, 1 }
   0x5   : > { %p184_p2 = scmp.lt.s32.totalorder %s5373_s16, 5 }
   0x6   : > { %s8503_s17 = smov (%p30_p0, %s28_s17), 0  ;;  %s8505_s18 = smov (!%p30_p0, %s32_s18), %s5369_s15 }
   0x7   : > { %p185_p3 = pnand %p4418_p1, %p184_p2  ;;  %p34_p4 = scmp.ge.s32.totalorder %s8505_s18, 2 }
   0x9   : > { %s8507_s18 = smov (%p34_p4, %s8505_s18), 0  ;;  %188 = sbr.rel (%p185_p3) target bundleno = 1455 (0x5af), region = 32 }
  0x10   : > { %p229_p5 = scmp.lt.s32.totalorder %s5361_s13, 1  ;;  %p231_p6 = scmp.lt.s32.totalorder %s5357_s12, 1  ;;  %vm780_vm0 = vcmask 31744   ;;  %vm813_vm1 = vcmask 64512   ;;  %vm846_vm2 = vcmask 97280   ;;  %vm881_vm3 = vcmask 130048  }
  0x11   : > { %s5375_s26 = smov 4   ;;  %s5376_s27 = smov 8  }
  0x12   : > { %s8509_s13 = smov (!%p229_p5, %s5361_s13), 1  ;;  %s8511_s12 = smov (!%p231_p6, %s5357_s12), 1 }
  0x13   : > { %s5244_s19 = smul.u32 108, %s8509_s13  ;;  %s4882_s28 = sshll.u32 %s8509_s13, 6 }
  0x14   : > { %s5243_s20 = smul.u32 54, %s8511_s12  ;;  %s5723_s4 = scalar_lea.vmem %s8190_s1, %s4882_s28 }
  0x15   : > { %v879_v58 = vld [vmem:[%s5723_s4] sm:$0xff]  ;;  %v880_v59 = vld [vmem:[%s5723_s4 + $0x8] sm:$0xff]  ;;  %s5377_s5 = smov 12   ;;  %s4422_s6 = sshll.u32 %s8511_s12, 6 }
  0x16   : > { %s235_s21 = sadd.s32 %s5244_s19, %s5243_s20  ;;  %v5227_v60 = vpack.c.bf16 %v880_v59, %v879_v58  ;;  %s4423_s7 = sshll.u32 %s8509_s13, 7 }
  0x17   : > { %s4419_s22 = sshll.u32 %s235_s21, 3  ;;  %s257_s8 = sadd.s32 %s4423_s7, %s4422_s6 }
  0x18   : > { %s5437_s25 = scalar_lea.vmem %s8189_s0, %s4419_s22  ;;  %5228 = vmatprep.subr.bf16.mxu0 %v5227_v60  ;;  %s7022_s11 = scalar_lea.vmem %s8191_s2, %s8509_s13 }
  0x19   : > { %v5440_v0 = vld [vmem:[%s5437_s25 + $0x19] sm:$0xff]  ;;  %v297_v1 = vld [vmem:[%s5437_s25 + $0x1] sm:$0xff]  ;;  %v298_v3 = vld [vmem:[%s5437_s25 + $0x9] sm:$0xff]  ;;  %5230 = vmatpush3.bf16.msra.mxu0 %v5227_v60  ;;  %s4424_s12 = sshll.u32 %s257_s8, 3 }
  0x1a   : > { %432 = vrot.lane.b32.xlu1 %v5440_v0, %s5375_s26  ;;  %428 = vrot.lane.b32.xlu0 %v297_v1, %s5375_s26  ;;  %v5447_v2 = vld [vmem:[%s5437_s25 + $0x21] sm:$0xff]  ;;  %v5454_v4 = vld [vmem:[%s5437_s25 + $0x39] sm:$0xff]  ;;  %s7038_s13 = scalar_lea.vmem %s8192_s3, %s4424_s12 }
  0x1b   : > { %v5457_v5 = vld [vmem:[%s5437_s25 + $0x31] sm:$0xff]  ;;  %v5467_v7 = vld [vmem:[%s5437_s25 + $0x49] sm:$0xff]  ;;  %v5477_v9 = vld [vmem:[%s5437_s25 + $0x61] sm:$0xff] }
  0x1c   : > { %v5464_v6 = vld [vmem:[%s5437_s25 + $0x51] sm:$0xff]  ;;  %v5474_v8 = vld [vmem:[%s5437_s25 + $0x69] sm:$0xff]  ;;  %v5484_v10 = vld [vmem:[%s5437_s25 + $0x81] sm:$0xff] }
  0x1d   : > { %8262 = vst [vmem:[#allocation2_spill] sm:$0xff] %v5484_v10  ;;  %v5487_v11 = vld [vmem:[%s5437_s25 + $0x79] sm:$0xff]  ;;  %v5497_v13 = vld [vmem:[%s5437_s25 + $0x91] sm:$0xff]  ;;  %v5507_v15 = vld [vmem:[%s5437_s25 + $0xa9] sm:$0xff] }
  0x1e   : > { %434 = vrot.lane.b32.xlu1 %v5447_v2, %s5375_s26  ;;  %430 = vrot.lane.b32.xlu0 %v298_v3, %s5375_s26  ;;  %8263 = vst [vmem:[#allocation3_spill] sm:$0xff] %v5487_v11  ;;  %v5494_v12 = vld [vmem:[%s5437_s25 + $0x99] sm:$0xff]  ;;  %8265 = vst [vmem:[#allocation5_spill] sm:$0xff] %v5497_v13  ;;  %v5504_v14 = vld [vmem:[%s5437_s25 + $0xb1] sm:$0xff] }
  0x1f   : > { %8264 = vst [vmem:[#allocation4_spill] sm:$0xff] %v5494_v12  ;;  %8266 = vst [vmem:[#allocation6_spill] sm:$0xff] %v5504_v14  ;;  %v5514_v16 = vld [vmem:[%s5437_s25 + $0xc9] sm:$0xff]  ;;  %v5517_v17 = vld [vmem:[%s5437_s25 + $0xc1] sm:$0xff] }
  0x20   : > { %8267 = vst [vmem:[#allocation7_spill] sm:$0xff] %v5507_v15  ;;  %8268 = vst [vmem:[#allocation8_spill] sm:$0xff] %v5514_v16  ;;  %v5524_v18 = vld [vmem:[%s5437_s25 + $0xe1] sm:$0xff]  ;;  %v5527_v19 = vld [vmem:[%s5437_s25 + $0xd9] sm:$0xff] }
  0x21   : > { %8269 = vst [vmem:[#allocation9_spill] sm:$0xff] %v5517_v17  ;;  %8270 = vst [vmem:[#allocation10_spill] sm:$0xff] %v5524_v18  ;;  %v5534_v20 = vld [vmem:[%s5437_s25 + $0xf9] sm:$0xff]  ;;  %v5537_v21 = vld [vmem:[%s5437_s25 + $0xf1] sm:$0xff] }
  0x22   : > { %438 = vrot.lane.b32.xlu1 %v5454_v4, %s5375_s26  ;;  %436 = vrot.lane.b32.xlu0 %v5457_v5, %s5375_s26  ;;  %8271 = vst [vmem:[#allocation11_spill] sm:$0xff] %v5527_v19  ;;  %8272 = vst [vmem:[#allocation12_spill] sm:$0xff] %v5534_v20  ;;  %v5544_v22 = vld [vmem:[%s5437_s25 + $0x111] sm:$0xff]  ;;  %v5547_v23 = vld [vmem:[%s5437_s25 + $0x109] sm:$0xff] }
  0x23   : > { %8273 = vst [vmem:[#allocation13_spill] sm:$0xff] %v5537_v21  ;;  %8274 = vst [vmem:[#allocation14_spill] sm:$0xff] %v5544_v22  ;;  %v5554_v24 = vld [vmem:[%s5437_s25 + $0x129] sm:$0xff]  ;;  %v5557_v25 = vld [vmem:[%s5437_s25 + $0x121] sm:$0xff] }
  0x24   : > { %8275 = vst [vmem:[#allocation15_spill] sm:$0xff] %v5547_v23  ;;  %8276 = vst [vmem:[#allocation16_spill] sm:$0xff] %v5554_v24  ;;  %v5564_v26 = vld [vmem:[%s5437_s25 + $0x141] sm:$0xff]  ;;  %v5567_v27 = vld [vmem:[%s5437_s25 + $0x139] sm:$0xff] }
  0x25   : > { %8277 = vst [vmem:[#allocation17_spill] sm:$0xff] %v5557_v25  ;;  %8278 = vst [vmem:[#allocation18_spill] sm:$0xff] %v5564_v26  ;;  %v5574_v28 = vld [vmem:[%s5437_s25 + $0x159] sm:$0xff]  ;;  %v5577_v29 = vld [vmem:[%s5437_s25 + $0x151] sm:$0xff] }
  0x26   : > { %442 = vrot.lane.b32.xlu1 %v5464_v6, %s5375_s26  ;;  %440 = vrot.lane.b32.xlu0 %v5467_v7, %s5375_s26  ;;  %8279 = vst [vmem:[#allocation19_spill] sm:$0xff] %v5567_v27  ;;  %8280 = vst [vmem:[#allocation20_spill] sm:$0xff] %v5574_v28  ;;  %v5584_v30 = vld [vmem:[%s5437_s25 + $0x171] sm:$0xff]  ;;  %v5587_v31 = vld [vmem:[%s5437_s25 + $0x169] sm:$0xff] }
  0x27   : > { %8281 = vst [vmem:[#allocation21_spill] sm:$0xff] %v5577_v29  ;;  %8282 = vst [vmem:[#allocation22_spill] sm:$0xff] %v5584_v30  ;;  %v5594_v32 = vld [vmem:[%s5437_s25 + $0x20] sm:$0xff]  ;;  %v5597_v33 = vld [vmem:[%s5437_s25 + $0x18] sm:$0xff] }
  0x28   : > { %8283 = vst [vmem:[#allocation23_spill] sm:$0xff] %v5587_v31  ;;  %v5604_v34 = vld [vmem:[%s5437_s25 + $0x38] sm:$0xff]  ;;  %v5607_v35 = vld [vmem:[%s5437_s25 + $0x30] sm:$0xff]  ;;  %v5617_v37 = vld [vmem:[%s5437_s25 + $0x48] sm:$0xff] }
  0x29   : > { %v5614_v36 = vld [vmem:[%s5437_s25 + $0x50] sm:$0xff]  ;;  %v5624_v38 = vld [vmem:[%s5437_s25 + $0x68] sm:$0xff]  ;;  %v5627_v39 = vld [vmem:[%s5437_s25 + $0x60] sm:$0xff] }
  0x2a   : > { %446 = vrot.lane.b32.xlu1 %v5474_v8, %s5375_s26  ;;  %444 = vrot.lane.b32.xlu0 %v5477_v9, %s5375_s26  ;;  %v5634_v40 = vld [vmem:[%s5437_s25 + $0x80] sm:$0xff]  ;;  %v5637_v41 = vld [vmem:[%s5437_s25 + $0x78] sm:$0xff] }
  0x2b   : > { %v5644_v42 = vld [vmem:[%s5437_s25 + $0x98] sm:$0xff]  ;;  %v5647_v43 = vld [vmem:[%s5437_s25 + $0x90] sm:$0xff]  ;;  %v5657_v45 = vld [vmem:[%s5437_s25 + $0xa8] sm:$0xff] }
  0x2c   : > { %v5654_v44 = vld [vmem:[%s5437_s25 + $0xb0] sm:$0xff]  ;;  %v5664_v46 = vld [vmem:[%s5437_s25 + $0xc8] sm:$0xff]  ;;  %v5667_v47 = vld [vmem:[%s5437_s25 + $0xc0] sm:$0xff] }
  0x2d   : > { %8284 = vst [vmem:[#allocation24_spill] sm:$0xff] %v5664_v46  ;;  %8285 = vst [vmem:[#allocation25_spill] sm:$0xff] %v5667_v47  ;;  %v5674_v48 = vld [vmem:[%s5437_s25 + $0xe0] sm:$0xff]  ;;  %v5677_v49 = vld [vmem:[%s5437_s25 + $0xd8] sm:$0xff] }
  0x2e   : > { %450 = vrot.lane.b32.xlu1 %v5484_v10, %s5375_s26  ;;  %448 = vrot.lane.b32.xlu0 %v5487_v11, %s5375_s26  ;;  %8286 = vst [vmem:[#allocation26_spill] sm:$0xff] %v5674_v48  ;;  %8287 = vst [vmem:[#allocation27_spill] sm:$0xff] %v5677_v49  ;;  %v5684_v50 = vld [vmem:[%s5437_s25 + $0xf8] sm:$0xff]  ;;  %v5687_v51 = vld [vmem:[%s5437_s25 + $0xf0] sm:$0xff] }
  0x2f   : > { %8288 = vst [vmem:[#allocation28_spill] sm:$0xff] %v5684_v50  ;;  %8289 = vst [vmem:[#allocation29_spill] sm:$0xff] %v5687_v51  ;;  %v5694_v52 = vld [vmem:[%s5437_s25 + $0x110] sm:$0xff]  ;;  %v5697_v53 = vld [vmem:[%s5437_s25 + $0x108] sm:$0xff] }
  0x30   : > { %8290 = vst [vmem:[#allocation30_spill] sm:$0xff] %v5694_v52  ;;  %8291 = vst [vmem:[#allocation31_spill] sm:$0xff] %v5697_v53  ;;  %v5704_v54 = vld [vmem:[%s5437_s25 + $0x128] sm:$0xff]  ;;  %v5707_v55 = vld [vmem:[%s5437_s25 + $0x120] sm:$0xff] }
  0x31   : > { %8292 = vst [vmem:[#allocation32_spill] sm:$0xff] %v5704_v54  ;;  %8293 = vst [vmem:[#allocation33_spill] sm:$0xff] %v5707_v55  ;;  %v5715_v56 = vld [vmem:[%s5437_s25 + $0x140] sm:$0xff]  ;;  %v5718_v57 = vld [vmem:[%s5437_s25 + $0x138] sm:$0xff] }
  0x32   : > { %454 = vrot.lane.b32.xlu1 %v5494_v12, %s5375_s26  ;;  %452 = vrot.lane.b32.xlu0 %v5497_v13, %s5375_s26  ;;  %8294 = vst [vmem:[#allocation34_spill] sm:$0xff] %v5715_v56  ;;  %8295 = vst [vmem:[#allocation35_spill] sm:$0xff] %v5718_v57  ;;  %v5732_v61 = vld [vmem:[%s5437_s25 + $0x158] sm:$0xff]  ;;  %v5735_v62 = vld [vmem:[%s5437_s25 + $0x150] sm:$0xff] }
  0x33   : > { %8296 = vst [vmem:[#allocation36_spill] sm:$0xff] %v5732_v61  ;;  %8297 = vst [vmem:[#allocation37_spill] sm:$0xff] %v5735_v62  ;;  %v5746_v3 = vld [vmem:[%s5437_s25 + $0x170] sm:$0xff]  ;;  %v5749_v58 = vld [vmem:[%s5437_s25 + $0x168] sm:$0xff] }
  0x34   : > { %8298 = vst [vmem:[#allocation38_spill] sm:$0xff] %v5746_v3  ;;  %8299 = vst [vmem:[#allocation39_spill] sm:$0xff] %v5749_v58  ;;  %v4456_v60 = vld [vmem:[%s5437_s25 + $0x188] sm:$0xff] }
  0x36   : > { %458 = vrot.lane.b32.xlu1 %v5504_v14, %s5375_s26  ;;  %456 = vrot.lane.b32.xlu0 %v5507_v15, %s5375_s26 }
  0x3a   : > { %462 = vrot.lane.b32.xlu1 %v5514_v16, %s5375_s26  ;;  %460 = vrot.lane.b32.xlu0 %v5517_v17, %s5375_s26 }
  0x3e   : > { %466 = vrot.lane.b32.xlu1 %v5524_v18, %s5375_s26  ;;  %464 = vrot.lane.b32.xlu0 %v5527_v19, %s5375_s26 }
  0x42   : > { %470 = vrot.lane.b32.xlu1 %v5534_v20, %s5375_s26  ;;  %468 = vrot.lane.b32.xlu0 %v5537_v21, %s5375_s26 }
  0x46   : > { %474 = vrot.lane.b32.xlu1 %v5544_v22, %s5375_s26  ;;  %472 = vrot.lane.b32.xlu0 %v5547_v23, %s5375_s26 }
  0x4a   : > { %478 = vrot.lane.b32.xlu1 %v5554_v24, %s5375_s26  ;;  %476 = vrot.lane.b32.xlu0 %v5557_v25, %s5375_s26 }
  0x4e   : > { %482 = vrot.lane.b32.xlu1 %v5564_v26, %s5375_s26  ;;  %480 = vrot.lane.b32.xlu0 %v5567_v27, %s5375_s26 }
  0x52   : > { %486 = vrot.lane.b32.xlu1 %v5574_v28, %s5375_s26  ;;  %484 = vrot.lane.b32.xlu0 %v5577_v29, %s5375_s26 }
  0x56   : > { %490 = vrot.lane.b32.xlu1 %v5584_v30, %s5375_s26  ;;  %488 = vrot.lane.b32.xlu0 %v5587_v31, %s5375_s26 }
  0x5a   : > { %558 = vrot.lane.b32.xlu1 %v5594_v32, %s5376_s27  ;;  %556 = vrot.lane.b32.xlu0 %v5597_v33, %s5376_s27 }
  0x5e   : > { %562 = vrot.lane.b32.xlu1 %v5604_v34, %s5376_s27  ;;  %560 = vrot.lane.b32.xlu0 %v5607_v35, %s5376_s27 }
  0x62   : > { %566 = vrot.lane.b32.xlu1 %v5614_v36, %s5376_s27  ;;  %564 = vrot.lane.b32.xlu0 %v5617_v37, %s5376_s27 }
  0x66   : > { %570 = vrot.lane.b32.xlu1 %v5624_v38, %s5376_s27  ;;  %568 = vrot.lane.b32.xlu0 %v5627_v39, %s5376_s27 }
  0x6a   : > { %574 = vrot.lane.b32.xlu1 %v5634_v40, %s5376_s27  ;;  %572 = vrot.lane.b32.xlu0 %v5637_v41, %s5376_s27 }
  0x6e   : > { %578 = vrot.lane.b32.xlu1 %v5644_v42, %s5376_s27  ;;  %576 = vrot.lane.b32.xlu0 %v5647_v43, %s5376_s27 }
  0x72   : > { %582 = vrot.lane.b32.xlu1 %v5654_v44, %s5376_s27  ;;  %580 = vrot.lane.b32.xlu0 %v5657_v45, %s5376_s27 }
  0x76   : > { %586 = vrot.lane.b32.xlu1 %v5664_v46, %s5376_s27  ;;  %584 = vrot.lane.b32.xlu0 %v5667_v47, %s5376_s27 }
  0x7a   : > { %590 = vrot.lane.b32.xlu1 %v5674_v48, %s5376_s27  ;;  %588 = vrot.lane.b32.xlu0 %v5677_v49, %s5376_s27 }
  0x7e   : > { %594 = vrot.lane.b32.xlu1 %v5684_v50, %s5376_s27  ;;  %592 = vrot.lane.b32.xlu0 %v5687_v51, %s5376_s27 }
  0x82   : > { %598 = vrot.lane.b32.xlu1 %v5694_v52, %s5376_s27  ;;  %596 = vrot.lane.b32.xlu0 %v5697_v53, %s5376_s27 }
  0x86   : > { %602 = vrot.lane.b32.xlu1 %v5704_v54, %s5376_s27  ;;  %600 = vrot.lane.b32.xlu0 %v5707_v55, %s5376_s27 }
  0x8a   : > { %606 = vrot.lane.b32.xlu1 %v5715_v56, %s5376_s27  ;;  %604 = vrot.lane.b32.xlu0 %v5718_v57, %s5376_s27  ;;  %v4455_v56 = vld [vmem:[%s5437_s25 + $0x180] sm:$0xff] }
  0x8c   : > { %v5737_v63 = vpop.permute.xlu1 %432  ;;  %v5739_v1 = vpop.permute.xlu0 %428 }
  0x8e   : > { %610 = vrot.lane.b32.xlu1 %v5732_v61, %s5376_s27  ;;  %608 = vrot.lane.b32.xlu0 %v5735_v62, %s5376_s27 }
  0x90   : > { %v5751_v59 = vpop.permute.xlu1 %434  ;;  %v5753_v57 = vpop.permute.xlu0 %430 }
  0x92   : > { %614 = vrot.lane.b32.xlu1 %v5746_v3, %s5376_s27  ;;  %612 = vrot.lane.b32.xlu0 %v5749_v58, %s5376_s27 }
  0x94   : > { %v5761_v61 = vpop.permute.xlu1 %438  ;;  %v5763_v55 = vpop.permute.xlu0 %436 }
  0x96   : > { %618 = vrot.lane.b32.xlu1 %v4456_v60, %s5376_s27  ;;  %616 = vrot.lane.b32.xlu0 %v4455_v56, %s5376_s27 }
  0x98   : > { %v5767_v62 = vpop.permute.xlu1 %442  ;;  %v5769_v54 = vpop.permute.xlu0 %440 }
  0x9a   : > { %686 = vrot.lane.b32.xlu1 %v5447_v2, %s5377_s5  ;;  %684 = vrot.lane.b32.xlu0 %v5440_v0, %s5377_s5 }
  0x9c   : > { %v5775_v58 = vpop.permute.xlu1 %446  ;;  %v5777_v3 = vpop.permute.xlu0 %444 }
  0x9e   : > { %690 = vrot.lane.b32.xlu1 %v5454_v4, %s5377_s5  ;;  %688 = vrot.lane.b32.xlu0 %v5457_v5, %s5377_s5 }
  0xa0   : > { %v5783_v56 = vpop.permute.xlu1 %450  ;;  %v5785_v60 = vpop.permute.xlu0 %448 }
  0xa2   : > { %694 = vrot.lane.b32.xlu1 %v5464_v6, %s5377_s5  ;;  %692 = vrot.lane.b32.xlu0 %v5467_v7, %s5377_s5 }
  0xa4   : > { %v5791_v53 = vpop.permute.xlu1 %454  ;;  %v5793_v52 = vpop.permute.xlu0 %452 }
  0xa6   : > { %698 = vrot.lane.b32.xlu1 %v5474_v8, %s5377_s5  ;;  %696 = vrot.lane.b32.xlu0 %v5477_v9, %s5377_s5 }
  0xa8   : > { %v5799_v51 = vpop.permute.xlu1 %458  ;;  %v5801_v50 = vpop.permute.xlu0 %456 }
  0xaa   : > { %702 = vrot.lane.b32.xlu1 %v5484_v10, %s5377_s5  ;;  %700 = vrot.lane.b32.xlu0 %v5487_v11, %s5377_s5 }
  0xac   : > { %v5807_v49 = vpop.permute.xlu1 %462  ;;  %v5809_v48 = vpop.permute.xlu0 %460 }
  0xad   : > { %8300 = vst [vmem:[#allocation40_spill] sm:$0xff] %v5807_v49  ;;  %8301 = vst [vmem:[#allocation41_spill] sm:$0xff] %v5809_v48 }
  0xae   : > { %706 = vrot.lane.b32.xlu1 %v5494_v12, %s5377_s5  ;;  %704 = vrot.lane.b32.xlu0 %v5497_v13, %s5377_s5 }
  0xb0   : > { %v5815_v47 = vpop.permute.xlu1 %466  ;;  %v5817_v46 = vpop.permute.xlu0 %464 }
  0xb1   : > { %8302 = vst [vmem:[#allocation42_spill] sm:$0xff] %v5815_v47  ;;  %8303 = vst [vmem:[#allocation43_spill] sm:$0xff] %v5817_v46  ;;  %v5983_v46 = vld [vmem:[%s5437_s25 + $0x92] sm:$0xff] }
  0xb2   : > { %710 = vrot.lane.b32.xlu1 %v5504_v14, %s5377_s5  ;;  %708 = vrot.lane.b32.xlu0 %v5507_v15, %s5377_s5  ;;  %8331 = vst [vmem:[#allocation71_spill] sm:$0xff] %v5983_v46 }
  0xb4   : > { %v5823_v11 = vpop.permute.xlu1 %470  ;;  %v5825_v49 = vpop.permute.xlu0 %468 }
  0xb5   : > { %8304 = vst [vmem:[#allocation44_spill] sm:$0xff] %v5823_v11  ;;  %8305 = vst [vmem:[#allocation45_spill] sm:$0xff] %v5825_v49  ;;  %v5969_v49 = vld [vmem:[%s5437_s25 + $0x7a] sm:$0xff] }
  0xb6   : > { %714 = vrot.lane.b32.xlu1 %v5514_v16, %s5377_s5  ;;  %712 = vrot.lane.b32.xlu0 %v5517_v17, %s5377_s5  ;;  %8327 = vst [vmem:[#allocation67_spill] sm:$0xff] %v5969_v49 }
  0xb8   : > { %v5831_v13 = vpop.permute.xlu1 %474  ;;  %v5833_v47 = vpop.permute.xlu0 %472 }
  0xb9   : > { %8306 = vst [vmem:[#allocation46_spill] sm:$0xff] %v5831_v13  ;;  %8307 = vst [vmem:[#allocation47_spill] sm:$0xff] %v5833_v47  ;;  %v5955_v47 = vld [vmem:[%s5437_s25 + $0x62] sm:$0xff] }
  0xba   : > { %718 = vrot.lane.b32.xlu1 %v5524_v18, %s5377_s5  ;;  %716 = vrot.lane.b32.xlu0 %v5527_v19, %s5377_s5  ;;  %8325 = vst [vmem:[#allocation65_spill] sm:$0xff] %v5955_v47 }
  0xbc   : > { %v5839_v15 = vpop.permute.xlu1 %478  ;;  %v5841_v11 = vpop.permute.xlu0 %476 }
  0xbd   : > { %8308 = vst [vmem:[#allocation48_spill] sm:$0xff] %v5839_v15  ;;  %8309 = vst [vmem:[#allocation49_spill] sm:$0xff] %v5841_v11  ;;  %v5941_v15 = vld [vmem:[%s5437_s25 + $0x4a] sm:$0xff] }
  0xbe   : > { %722 = vrot.lane.b32.xlu1 %v5534_v20, %s5377_s5  ;;  %720 = vrot.lane.b32.xlu0 %v5537_v21, %s5377_s5  ;;  %v5924_v21 = vld [vmem:[%s5437_s25 + $0x3a] sm:$0xff]  ;;  %8323 = vst [vmem:[#allocation63_spill] sm:$0xff] %v5941_v15 }
  0xbf   : > { %8320 = vst [vmem:[#allocation60_spill] sm:$0xff] %v5924_v21 }
  0xc0   : > { %v5847_v17 = vpop.permute.xlu1 %482  ;;  %v5849_v13 = vpop.permute.xlu0 %480 }
  0xc1   : > { %8310 = vst [vmem:[#allocation50_spill] sm:$0xff] %v5847_v17  ;;  %8311 = vst [vmem:[#allocation51_spill] sm:$0xff] %v5849_v13 }
  0xc2   : > { %726 = vrot.lane.b32.xlu1 %v5544_v22, %s5377_s5  ;;  %724 = vrot.lane.b32.xlu0 %v5547_v23, %s5377_s5  ;;  %v5910_v23 = vld [vmem:[%s5437_s25 + $0x22] sm:$0xff]  ;;  %v5913_v22 = vld [vmem:[%s5437_s25 + $0x1a] sm:$0xff] }
  0xc3   : > { %8318 = vst [vmem:[#allocation58_spill] sm:$0xff] %v5910_v23  ;;  %8319 = vst [vmem:[#allocation59_spill] sm:$0xff] %v5913_v22 }
  0xc4   : > { %v5855_v19 = vpop.permute.xlu1 %486  ;;  %v5857_v11 = vpop.permute.xlu0 %484 }
  0xc5   : > { %8312 = vst [vmem:[#allocation52_spill] sm:$0xff] %v5855_v19  ;;  %8313 = vst [vmem:[#allocation53_spill] sm:$0xff] %v5857_v11 }
  0xc6   : > { %730 = vrot.lane.b32.xlu1 %v5554_v24, %s5377_s5  ;;  %728 = vrot.lane.b32.xlu0 %v5557_v25, %s5377_s5  ;;  %v1203_v25 = vld [vmem:[%s5437_s25 + $0x2] sm:$0xff] }
  0xc8   : > { %v5863_v17 = vpop.permute.xlu1 %490  ;;  %v5865_v13 = vpop.permute.xlu0 %488 }
  0xc9   : > { %8314 = vst [vmem:[#allocation54_spill] sm:$0xff] %v5863_v17  ;;  %8315 = vst [vmem:[#allocation55_spill] sm:$0xff] %v5865_v13 }
  0xca   : > { %734 = vrot.lane.b32.xlu1 %v5564_v26, %s5377_s5  ;;  %732 = vrot.lane.b32.xlu0 %v5567_v27, %s5377_s5  ;;  %v5888_v27 = vld [vmem:[%s5437_s25 + $0x189] sm:$0xff]  ;;  %v5891_v26 = vld [vmem:[%s5437_s25 + $0x181] sm:$0xff] }
  0xcb   : > { %8316 = vst [vmem:[#allocation56_spill] sm:$0xff] %v5888_v27  ;;  %8317 = vst [vmem:[#allocation57_spill] sm:$0xff] %v5891_v26 }
  0xcc   : > { %v5871_v11 = vpop.permute.xlu1 %558  ;;  %v5873_v19 = vpop.permute.xlu0 %556 }
  0xce   : > { %738 = vrot.lane.b32.xlu1 %v5574_v28, %s5377_s5  ;;  %736 = vrot.lane.b32.xlu0 %v5577_v29, %s5377_s5 }
  0xd0   : > { %v5879_v17 = vpop.permute.xlu1 %562  ;;  %v5881_v13 = vpop.permute.xlu0 %560 }
  0xd2   : > { %742 = vrot.lane.b32.xlu1 %v5584_v30, %s5377_s5  ;;  %740 = vrot.lane.b32.xlu0 %v5587_v31, %s5377_s5  ;;  %v1204_v30 = vld [vmem:[%s5437_s25 + $0xa] sm:$0xff] }
  0xd4   : > { %v5893_v28 = vpop.permute.xlu1 %566  ;;  %v5895_v29 = vpop.permute.xlu0 %564 }
  0xd6   : > { %746 = vrot.lane.b32.xlu1 %v5888_v27, %s5377_s5  ;;  %744 = vrot.lane.b32.xlu0 %v5891_v26, %s5377_s5 }
  0xd8   : > { %v5903_v24 = vpop.permute.xlu1 %570  ;;  %v5905_v31 = vpop.permute.xlu0 %568 }
  0xda   : > { %1301 = vrot.lane.b32.xlu1 %v1204_v30, %s5375_s26  ;;  %1299 = vrot.lane.b32.xlu0 %v1203_v25, %s5375_s26  ;;  %v5927_v30 = vld [vmem:[%s5437_s25 + $0x32] sm:$0xff] }
  0xdb   : > { %8321 = vst [vmem:[#allocation61_spill] sm:$0xff] %v5927_v30 }
  0xdc   : > { %v5915_v27 = vpop.permute.xlu1 %574  ;;  %v5917_v26 = vpop.permute.xlu0 %572 }
  0xde   : > { %1305 = vrot.lane.b32.xlu1 %v5910_v23, %s5375_s26  ;;  %1303 = vrot.lane.b32.xlu0 %v5913_v22, %s5375_s26  ;;  %v5938_v23 = vld [vmem:[%s5437_s25 + $0x52] sm:$0xff] }
  0xdf   : > { %8322 = vst [vmem:[#allocation62_spill] sm:$0xff] %v5938_v23 }
  0xe0   : > { %v5929_v25 = vpop.permute.xlu1 %578  ;;  %v5931_v20 = vpop.permute.xlu0 %576 }
  0xe2   : > { %1309 = vrot.lane.b32.xlu1 %v5924_v21, %s5375_s26  ;;  %1307 = vrot.lane.b32.xlu0 %v5927_v30, %s5375_s26  ;;  %v5952_v21 = vld [vmem:[%s5437_s25 + $0x6a] sm:$0xff] }
  0xe3   : > { %8324 = vst [vmem:[#allocation64_spill] sm:$0xff] %v5952_v21 }
  0xe4   : > { %v5943_v22 = vpop.permute.xlu1 %582  ;;  %v5945_v18 = vpop.permute.xlu0 %580 }
  0xe6   : > { %1313 = vrot.lane.b32.xlu1 %v5938_v23, %s5375_s26  ;;  %1311 = vrot.lane.b32.xlu0 %v5941_v15, %s5375_s26  ;;  %v5966_v23 = vld [vmem:[%s5437_s25 + $0x82] sm:$0xff] }
  0xe7   : > { %8326 = vst [vmem:[#allocation66_spill] sm:$0xff] %v5966_v23 }
  0xe8   : > { %v5957_v30 = vpop.permute.xlu1 %586  ;;  %v5959_v16 = vpop.permute.xlu0 %584 }
  0xea   : > { %1317 = vrot.lane.b32.xlu1 %v5952_v21, %s5375_s26  ;;  %1315 = vrot.lane.b32.xlu0 %v5955_v47, %s5375_s26  ;;  %v5980_v21 = vld [vmem:[%s5437_s25 + $0x9a] sm:$0xff] }
  0xeb   : > { %8330 = vst [vmem:[#allocation70_spill] sm:$0xff] %v5980_v21 }
  0xec   : > { %v5971_v15 = vpop.permute.xlu1 %590  ;;  %v5973_v14 = vpop.permute.xlu0 %588 }
  0xed   : > { %8328 = vst [vmem:[#allocation68_spill] sm:$0xff] %v5971_v15  ;;  %8329 = vst [vmem:[#allocation69_spill] sm:$0xff] %v5973_v14  ;;  %v5997_v14 = vld [vmem:[%s5437_s25 + $0xaa] sm:$0xff] }
  0xee   : > { %1321 = vrot.lane.b32.xlu1 %v5966_v23, %s5375_s26  ;;  %1319 = vrot.lane.b32.xlu0 %v5969_v49, %s5375_s26  ;;  %v5994_v23 = vld [vmem:[%s5437_s25 + $0xb2] sm:$0xff]  ;;  %8335 = vst [vmem:[#allocation75_spill] sm:$0xff] %v5997_v14 }
  0xef   : > { %8334 = vst [vmem:[#allocation74_spill] sm:$0xff] %v5994_v23 }
  0xf0   : > { %v5985_v47 = vpop.permute.xlu1 %594  ;;  %v5987_v12 = vpop.permute.xlu0 %592 }
  0xf1   : > { %8332 = vst [vmem:[#allocation72_spill] sm:$0xff] %v5985_v47  ;;  %8333 = vst [vmem:[#allocation73_spill] sm:$0xff] %v5987_v12  ;;  %v6011_v12 = vld [vmem:[%s5437_s25 + $0xc2] sm:$0xff] }
  0xf2   : > { %1325 = vrot.lane.b32.xlu1 %v5980_v21, %s5375_s26  ;;  %1323 = vrot.lane.b32.xlu0 %v5983_v46, %s5375_s26  ;;  %v6008_v21 = vld [vmem:[%s5437_s25 + $0xca] sm:$0xff]  ;;  %8339 = vst [vmem:[#allocation79_spill] sm:$0xff] %v6011_v12 }
  0xf3   : > { %8338 = vst [vmem:[#allocation78_spill] sm:$0xff] %v6008_v21 }
  0xf4   : > { %v5999_v49 = vpop.permute.xlu1 %598  ;;  %v6001_v15 = vpop.permute.xlu0 %596 }
  0xf5   : > { %8336 = vst [vmem:[#allocation76_spill] sm:$0xff] %v5999_v49  ;;  %8337 = vst [vmem:[#allocation77_spill] sm:$0xff] %v6001_v15  ;;  %v6025_v15 = vld [vmem:[%s5437_s25 + $0xda] sm:$0xff] }
  0xf6   : > { %1329 = vrot.lane.b32.xlu1 %v5994_v23, %s5375_s26  ;;  %1327 = vrot.lane.b32.xlu0 %v5997_v14, %s5375_s26  ;;  %v6022_v23 = vld [vmem:[%s5437_s25 + $0xe2] sm:$0xff]  ;;  %8343 = vst [vmem:[#allocation83_spill] sm:$0xff] %v6025_v15 }
  0xf7   : > { %8342 = vst [vmem:[#allocation82_spill] sm:$0xff] %v6022_v23 }
  0xf8   : > { %v6013_v46 = vpop.permute.xlu1 %602  ;;  %v6015_v47 = vpop.permute.xlu0 %600 }
  0xf9   : > { %8340 = vst [vmem:[#allocation80_spill] sm:$0xff] %v6013_v46  ;;  %8341 = vst [vmem:[#allocation81_spill] sm:$0xff] %v6015_v47 }
  0xfa   : > { %1333 = vrot.lane.b32.xlu1 %v6008_v21, %s5375_s26  ;;  %1331 = vrot.lane.b32.xlu0 %v6011_v12, %s5375_s26  ;;  %v6036_v21 = vld [vmem:[%s5437_s25 + $0xfa] sm:$0xff]  ;;  %v6039_v12 = vld [vmem:[%s5437_s25 + $0xf2] sm:$0xff] }
  0xfb   : > { %8346 = vst [vmem:[#allocation86_spill] sm:$0xff] %v6036_v21  ;;  %8347 = vst [vmem:[#allocation87_spill] sm:$0xff] %v6039_v12 }
  0xfc   : > { %v6027_v14 = vpop.permute.xlu1 %606  ;;  %v6029_v49 = vpop.permute.xlu0 %604 }
  0xfd   : > { %8344 = vst [vmem:[#allocation84_spill] sm:$0xff] %v6027_v14  ;;  %8345 = vst [vmem:[#allocation85_spill] sm:$0xff] %v6029_v49  ;;  %v6053_v49 = vld [vmem:[%s5437_s25 + $0x10a] sm:$0xff] }
  0xfe   : > { %1337 = vrot.lane.b32.xlu1 %v6022_v23, %s5375_s26  ;;  %1335 = vrot.lane.b32.xlu0 %v6025_v15, %s5375_s26  ;;  %v6050_v23 = vld [vmem:[%s5437_s25 + $0x112] sm:$0xff]  ;;  %8351 = vst [vmem:[#allocation91_spill] sm:$0xff] %v6053_v49 }
  0xff   : > { %8350 = vst [vmem:[#allocation90_spill] sm:$0xff] %v6050_v23 }
 0x100   : > { %v6041_v47 = vpop.permute.xlu1 %610  ;;  %v6043_v46 = vpop.permute.xlu0 %608 }
 0x101   : > { %8348 = vst [vmem:[#allocation88_spill] sm:$0xff] %v6041_v47  ;;  %8349 = vst [vmem:[#allocation89_spill] sm:$0xff] %v6043_v46  ;;  %v6067_v46 = vld [vmem:[%s5437_s25 + $0x122] sm:$0xff] }
 0x102   : > { %1341 = vrot.lane.b32.xlu1 %v6036_v21, %s5375_s26  ;;  %1339 = vrot.lane.b32.xlu0 %v6039_v12, %s5375_s26  ;;  %v6064_v21 = vld [vmem:[%s5437_s25 + $0x12a] sm:$0xff]  ;;  %8355 = vst [vmem:[#allocation95_spill] sm:$0xff] %v6067_v46  ;;  %v265_v12 = vld [vmem:[%s5437_s25] sm:$0xff] }
 0x103   : > { %8354 = vst [vmem:[#allocation94_spill] sm:$0xff] %v6064_v21  ;;  %v266_v47 = vld [vmem:[%s5437_s25 + $0x8] sm:$0xff] }
 0x104   : > { %v6055_v15 = vpop.permute.xlu1 %614  ;;  %v6057_v14 = vpop.permute.xlu0 %612 }
 0x105   : > { %8352 = vst [vmem:[#allocation92_spill] sm:$0xff] %v6055_v15  ;;  %8353 = vst [vmem:[#allocation93_spill] sm:$0xff] %v6057_v14  ;;  %v6084_v14 = vld [vmem:[%s5437_s25 + $0x142] sm:$0xff] }
 0x106   : > { %1345 = vrot.lane.b32.xlu1 %v6050_v23, %s5375_s26  ;;  %1343 = vrot.lane.b32.xlu0 %v6053_v49, %s5375_s26  ;;  %v781_v49 = vsel %vm780_vm0, %v265_v12, %v5739_v1  ;;  %v782_v23 = vsel %vm780_vm0, %v266_v47, %v5753_v57  ;;  %v6134_v57 = vld [vmem:[%s5437_s25 + $0x16a] sm:$0xff] }
 0x108   : > { %v6071_v48 = vpop.permute.xlu1 %618  ;;  %v6073_v15 = vpop.permute.xlu0 %616 }
 0x109   : > { %8356 = vst [vmem:[#allocation96_spill] sm:$0xff] %v6071_v48  ;;  %8357 = vst [vmem:[#allocation97_spill] sm:$0xff] %v6073_v15  ;;  %v6087_v48 = vld [vmem:[%s5437_s25 + $0x13a] sm:$0xff]  ;;  %v815_v15 = vsel %vm813_vm1, %v782_v23, %v5871_v11  ;;  %v783_v11 = vsel %vm780_vm0, %v5597_v33, %v5737_v63 }
 0x10a   : > { %1349 = vrot.lane.b32.xlu1 %v6064_v21, %s5375_s26  ;;  %1347 = vrot.lane.b32.xlu0 %v6067_v46, %s5375_s26  ;;  %v814_v21 = vsel %vm813_vm1, %v781_v49, %v5873_v19  ;;  %v784_v19 = vsel %vm780_vm0, %v5594_v32, %v5751_v59  ;;  %v816_v23 = vsel %vm813_vm1, %v783_v11, %v5881_v13  ;;  %v6131_v49 = vld [vmem:[%s5437_s25 + $0x172] sm:$0xff] }
 0x10b   : > { %v785_v13 = vsel %vm780_vm0, %v5607_v35, %v5763_v55 }
 0x10c   : > { %v687_v46 = vpop.permute.xlu1 %686  ;;  %v685_v10 = vpop.permute.xlu0 %684  ;;  %v818_v59 = vsel %vm813_vm1, %v785_v13, %v5895_v29  ;;  %v787_v29 = vsel %vm780_vm0, %v5617_v37, %v5769_v54 }
 0x10d   : > { %v848_v12 = vsel %vm846_vm2, %v815_v15, %v687_v46  ;;  %v847_v1 = vsel %vm846_vm2, %v814_v21, %v685_v10  ;;  %v6107_v15 = vld [vmem:[%s5437_s25 + $0x15a] sm:$0xff]  ;;  %v6110_v10 = vld [vmem:[%s5437_s25 + $0x152] sm:$0xff]  ;;  %v817_v21 = vsel %vm813_vm1, %v784_v19, %v5879_v17  ;;  %v786_v17 = vsel %vm780_vm0, %v5604_v34, %v5761_v61 }
 0x10e   : > { %1353 = vrot.lane.b32.xlu1 %v6084_v14, %s5375_s26  ;;  %1351 = vrot.lane.b32.xlu0 %v6087_v48, %s5375_s26  ;;  %v819_v63 = vsel %vm813_vm1, %v786_v17, %v5893_v28  ;;  %v788_v28 = vsel %vm780_vm0, %v5614_v36, %v5767_v62  ;;  %v8365_v17 = vld [vmem:[#allocation69_spill] sm:$0xff] }
 0x10f   : > { %5023 = vmatprep.mubr.msk.f32.mxu0 %vm881_vm3, %v847_v1  ;;  %v821_v55 = vsel %vm813_vm1, %v788_v28, %v5903_v24  ;;  %v820_v1 = vsel %vm813_vm1, %v787_v29, %v5905_v31  ;;  %v790_v24 = vsel %vm780_vm0, %v5624_v38, %v5775_v58  ;;  %v789_v31 = vsel %vm780_vm0, %v5627_v39, %v5777_v3  ;;  %v8368_v28 = vld [vmem:[#allocation42_spill] sm:$0xff] }
 0x110   : > { %5024 = vmatmul.mubr.msk.f32.vlgmr.msra.gmra.mrb[0].mxu0 %vm881_vm3, %v848_v12  ;;  %v691_v33 = vpop.permute.xlu1 %690  ;;  %v689_v46 = vpop.permute.xlu0 %688  ;;  %v823_v37 = vsel %vm813_vm1, %v790_v24, %v5915_v27  ;;  %v822_v54 = vsel %vm813_vm1, %v789_v31, %v5917_v26  ;;  %v792_v27 = vsel %vm780_vm0, %v5634_v40, %v5783_v56  ;;  %v791_v26 = vsel %vm780_vm0, %v5637_v41, %v5785_v60  ;;  %v8369_v29 = vld [vmem:[#allocation26_spill] sm:$0xff]  ;;  %v8373_v24 = vld [vmem:[#allocation73_spill] sm:$0xff] }
 0x111   : > { %v850_v32 = vsel %vm846_vm2, %v817_v21, %v691_v33  ;;  %v849_v47 = vsel %vm846_vm2, %v816_v23, %v689_v46  ;;  %v825_v39 = vsel %vm813_vm1, %v792_v27, %v5929_v25  ;;  %v824_v3 = vsel %vm813_vm1, %v791_v26, %v5931_v20  ;;  %v8361_v23 = vld [vmem:[#allocation24_spill] sm:$0xff]  ;;  %v8362_v33 = vld [vmem:[#allocation41_spill] sm:$0xff] }
 0x112   : > { %1357 = vrot.lane.b32.xlu1 %v6107_v15, %s5375_s26  ;;  %1355 = vrot.lane.b32.xlu0 %v6110_v10, %s5375_s26  ;;  %v794_v41 = vsel %vm780_vm0, %v5644_v42, %v5791_v53  ;;  %v793_v20 = vsel %vm780_vm0, %v5647_v43, %v5793_v52  ;;  %v8376_v27 = vld [vmem:[#allocation44_spill] sm:$0xff] }
 0x113   : > { %5026 = vmatprep.mubr.msk.f32.mxu0 %vm881_vm3, %v849_v47  ;;  %v827_v56 = vsel %vm813_vm1, %v794_v41, %v5943_v22  ;;  %v826_v60 = vsel %vm813_vm1, %v793_v20, %v5945_v18  ;;  %v796_v22 = vsel %vm780_vm0, %v5654_v44, %v5799_v51  ;;  %v795_v18 = vsel %vm780_vm0, %v5657_v45, %v5801_v50  ;;  %v8358_v51 = vld [vmem:[#allocation2_spill] sm:$0xff]  ;;  %v8359_v45 = vld [vmem:[#allocation3_spill] sm:$0xff]  ;;  %v8360_v50 = vld [vmem:[#allocation40_spill] sm:$0xff] }
 0x114   : > { %5027 = vmatmul.mubr.msk.f32.gmra.mrb[2].mxu0 %vm881_vm3, %v850_v32  ;;  %v695_v12 = vpop.permute.xlu1 %694  ;;  %v693_v34 = vpop.permute.xlu0 %692  ;;  %v829_v43 = vsel %vm813_vm1, %v796_v22, %v5957_v30  ;;  %v828_v52 = vsel %vm813_vm1, %v795_v18, %v5959_v16  ;;  %v798_v30 = vsel %vm780_vm0, %v8361_v23, %v8360_v50  ;;  %v8363_v16 = vld [vmem:[#allocation25_spill] sm:$0xff]  ;;  %v8364_v32 = vld [vmem:[#allocation68_spill] sm:$0xff]  ;;  %v8384_v22 = vld [vmem:[#allocation46_spill] sm:$0xff] }
 0x115   : > { %v852_v61 = vsel %vm846_vm2, %v819_v63, %v695_v12  ;;  %v851_v35 = vsel %vm846_vm2, %v818_v59, %v693_v34  ;;  %v797_v46 = vsel %vm780_vm0, %v8363_v16, %v8362_v33  ;;  %v831_v47 = vsel %vm813_vm1, %v798_v30, %v8364_v32  ;;  %v8377_v26 = vld [vmem:[#allocation28_spill] sm:$0xff]  ;;  %v8381_v41 = vld [vmem:[#allocation77_spill] sm:$0xff]  ;;  %v8385_v18 = vld [vmem:[#allocation30_spill] sm:$0xff] }
 0x116   : > { %1361 = vrot.lane.b32.xlu1 %v6131_v49, %s5375_s26  ;;  %1359 = vrot.lane.b32.xlu0 %v6134_v57, %s5375_s26  ;;  %v830_v13 = vsel %vm813_vm1, %v797_v46, %v8365_v17  ;;  %v8390_v16 = vld [vmem:[#allocation10_spill] sm:$0xff]  ;;  %v8391_v46 = vld [vmem:[#allocation11_spill] sm:$0xff]  ;;  %v8392_v32 = vld [vmem:[#allocation48_spill] sm:$0xff] }
 0x117   : > { %5029 = vmatprep.mubr.msk.f32.mxu0 %vm881_vm3, %v851_v35  ;;  %v8367_v35 = vld [vmem:[#allocation5_spill] sm:$0xff] }
 0x118   : > { %5030 = vmatmul.mubr.msk.f32.gmra.mrb[4].mxu0 %vm881_vm3, %v852_v61  ;;  %v699_v11 = vpop.permute.xlu1 %698  ;;  %v697_v19 = vpop.permute.xlu0 %696  ;;  %v8366_v61 = vld [vmem:[#allocation4_spill] sm:$0xff] }
 0x119   : > { %v854_v21 = vsel %vm846_vm2, %v821_v55, %v699_v11  ;;  %v853_v36 = vsel %vm846_vm2, %v820_v1, %v697_v19  ;;  %v800_v55 = vsel %vm780_vm0, %v8369_v29, %v8368_v28  ;;  %v8370_v1 = vld [vmem:[#allocation43_spill] sm:$0xff] }
 0x11a   : > { %1397 = vrot.lane.b32.xlu1 %v5447_v2, %s5376_s27  ;;  %1395 = vrot.lane.b32.xlu0 %v5440_v0, %s5376_s27  ;;  %v8371_v11 = vld [vmem:[#allocation27_spill] sm:$0xff] }
 0x11b   : > { %5032 = vmatprep.mubr.msk.f32.mxu0 %vm881_vm3, %v853_v36  ;;  %v799_v19 = vsel %vm780_vm0, %v8371_v11, %v8370_v1  ;;  %v8398_v11 = vld [vmem:[#allocation12_spill] sm:$0xff] }
 0x11c   : > { %5033 = vmatmul.mubr.msk.f32.gmra.mrb[6].mxu0 %vm881_vm3, %v854_v21  ;;  %v703_v2 = vpop.permute.xlu1 %702  ;;  %v701_v0 = vpop.permute.xlu0 %700  ;;  %v8372_v21 = vld [vmem:[#allocation72_spill] sm:$0xff]  ;;  %v832_v31 = vsel %vm813_vm1, %v799_v19, %v8373_v24  ;;  %v8399_v19 = vld [vmem:[#allocation13_spill] sm:$0xff] }
 0x11d   : > { %v856_v62 = vsel %vm846_vm2, %v823_v37, %v703_v2  ;;  %v855_v38 = vsel %vm846_vm2, %v822_v54, %v701_v0  ;;  %v833_v36 = vsel %vm813_vm1, %v800_v55, %v8372_v21  ;;  %v8400_v21 = vld [vmem:[#allocation50_spill] sm:$0xff] }
 0x11e   : > { %1401 = vrot.lane.b32.xlu1 %v5454_v4, %s5376_s27  ;;  %1399 = vrot.lane.b32.xlu0 %v5457_v5, %s5376_s27 }
 0x11f   : > { %5035 = vmatprep.mubr.msk.f32.mxu0 %vm881_vm3, %v855_v38  ;;  %v8375_v38 = vld [vmem:[#allocation7_spill] sm:$0xff] }
 0x120   : > { %5036 = vmatmul.mubr.msk.f32.gmra.mrb[8].mxu0 %vm881_vm3, %v856_v62  ;;  %v707_v4 = vpop.permute.xlu1 %706  ;;  %v705_v5 = vpop.permute.xlu0 %704  ;;  %v8374_v62 = vld [vmem:[#allocation6_spill] sm:$0xff] }
 0x121   : > { %v858_v58 = vsel %vm846_vm2, %v825_v39, %v707_v4  ;;  %v857_v40 = vsel %vm846_vm2, %v824_v3, %v705_v5  ;;  %v802_v39 = vsel %vm780_vm0, %v8377_v26, %v8376_v27  ;;  %v8378_v3 = vld [vmem:[#allocation45_spill] sm:$0xff] }
 0x122   : > { %1405 = vrot.lane.b32.xlu1 %v5464_v6, %s5376_s27  ;;  %1403 = vrot.lane.b32.xlu0 %v5467_v7, %s5376_s27  ;;  %v8379_v4 = vld [vmem:[#allocation29_spill] sm:$0xff] }
 0x123   : > { %5038 = vmatprep.mubr.msk.f32.mxu0 %vm881_vm3, %v857_v40  ;;  %v801_v5 = vsel %vm780_vm0, %v8379_v4, %v8378_v3  ;;  %v8406_v4 = vld [vmem:[#allocation14_spill] sm:$0xff] }
 0x124   : > { %5039 = vmatmul.mubr.msk.f32.gmra.mrb[10].mxu0 %vm881_vm3, %v858_v58  ;;  %v711_v6 = vpop.permute.xlu1 %710  ;;  %v709_v7 = vpop.permute.xlu0 %708  ;;  %v8380_v58 = vld [vmem:[#allocation76_spill] sm:$0xff]  ;;  %v834_v20 = vsel %vm813_vm1, %v801_v5, %v8381_v41  ;;  %v8407_v5 = vld [vmem:[#allocation15_spill] sm:$0xff] }
 0x125   : > { %v860_v25 = vsel %vm846_vm2, %v827_v56, %v711_v6  ;;  %v859_v42 = vsel %vm846_vm2, %v826_v60, %v709_v7  ;;  %v835_v40 = vsel %vm813_vm1, %v802_v39, %v8380_v58  ;;  %v8408_v58 = vld [vmem:[#allocation52_spill] sm:$0xff] }
 0x126   : > { %1409 = vrot.lane.b32.xlu1 %v5474_v8, %s5376_s27  ;;  %1407 = vrot.lane.b32.xlu0 %v5477_v9, %s5376_s27 }
 0x127   : > { %5041 = vmatprep.mubr.msk.f32.mxu0 %vm881_vm3, %v859_v42  ;;  %v8383_v42 = vld [vmem:[#allocation9_spill] sm:$0xff] }
 0x128   : > { %5042 = vmatmul.mubr.msk.f32.gmra.mrb[12].mxu0 %vm881_vm3, %v860_v25  ;;  %v715_v8 = vpop.permute.xlu1 %714  ;;  %v713_v9 = vpop.permute.xlu0 %712  ;;  %v8382_v25 = vld [vmem:[#allocation8_spill] sm:$0xff] }
 0x129   : > { %v862_v53 = vsel %vm846_vm2, %v829_v43, %v715_v8  ;;  %v861_v44 = vsel %vm846_vm2, %v828_v52, %v713_v9  ;;  %v804_v43 = vsel %vm780_vm0, %v8385_v18, %v8384_v22  ;;  %v8386_v52 = vld [vmem:[#allocation47_spill] sm:$0xff] }
 0x12a   : > { %1413 = vrot.lane.b32.xlu1 %v8358_v51, %s5376_s27  ;;  %1411 = vrot.lane.b32.xlu0 %v8359_v45, %s5376_s27  ;;  %v8387_v8 = vld [vmem:[#allocation31_spill] sm:$0xff]  ;;  %v8389_v51 = vld [vmem:[#allocation81_spill] sm:$0xff] }
 0x12b   : > { %5044 = vmatprep.mubr.msk.f32.mxu0 %vm881_vm3, %v861_v44  ;;  %v803_v9 = vsel %vm780_vm0, %v8387_v8, %v8386_v52  ;;  %v8414_v8 = vld [vmem:[#allocation16_spill] sm:$0xff] }
 0x12c   : > { %5045 = vmatmul.mubr.msk.f32.gmra.mrb[14].mxu0 %vm881_vm3, %v862_v53  ;;  %v719_v63 = vpop.permute.xlu1 %718  ;;  %v717_v59 = vpop.permute.xlu0 %716  ;;  %v8388_v53 = vld [vmem:[#allocation80_spill] sm:$0xff]  ;;  %v836_v45 = vsel %vm813_vm1, %v803_v9, %v8389_v51  ;;  %v8415_v9 = vld [vmem:[#allocation17_spill] sm:$0xff] }
 0x12d   : > { %v864_v12 = vsel %vm846_vm2, %v831_v47, %v719_v63  ;;  %v863_v34 = vsel %vm846_vm2, %v830_v13, %v717_v59  ;;  %v837_v44 = vsel %vm813_vm1, %v804_v43, %v8388_v53  ;;  %v8393_v47 = vld [vmem:[#allocation32_spill] sm:$0xff]  ;;  %v8394_v13 = vld [vmem:[#allocation49_spill] sm:$0xff]  ;;  %v8416_v53 = vld [vmem:[#allocation54_spill] sm:$0xff] }
 0x12e   : > { %1417 = vrot.lane.b32.xlu1 %v8366_v61, %s5376_s27  ;;  %1415 = vrot.lane.b32.xlu0 %v8367_v35, %s5376_s27  ;;  %v806_v17 = vsel %vm780_vm0, %v8393_v47, %v8392_v32  ;;  %v8395_v63 = vld [vmem:[#allocation33_spill] sm:$0xff] }
 0x12f   : > { %5047 = vmatprep.mubr.msk.f32.mxu0 %vm881_vm3, %v863_v34  ;;  %v805_v59 = vsel %vm780_vm0, %v8395_v63, %v8394_v13  ;;  %v8397_v61 = vld [vmem:[#allocation85_spill] sm:$0xff]  ;;  %v4553_v63 = vld [vmem:[%s5723_s4 + $0x10] sm:$0xff] }
 0x130   : > { %5048 = vmatmul.mubr.msk.f32.gmra.mrb[16].mxu0 %vm881_vm3, %v864_v12  ;;  %v723_v37 = vpop.permute.xlu1 %722  ;;  %v721_v54 = vpop.permute.xlu0 %720  ;;  %v8396_v12 = vld [vmem:[#allocation84_spill] sm:$0xff]  ;;  %v838_v35 = vsel %vm813_vm1, %v805_v59, %v8397_v61  ;;  %v4554_v59 = vld [vmem:[%s5723_s4 + $0x18] sm:$0xff] }
 0x131   : > { %v866_v2 = vsel %vm846_vm2, %v833_v36, %v723_v37  ;;  %v865_v0 = vsel %vm846_vm2, %v832_v31, %v721_v54  ;;  %v839_v34 = vsel %vm813_vm1, %v806_v17, %v8396_v12  ;;  %v8401_v36 = vld [vmem:[#allocation34_spill] sm:$0xff]  ;;  %v8402_v31 = vld [vmem:[#allocation51_spill] sm:$0xff]  ;;  %v5231_v61 = vpack.c.bf16 %v4554_v59, %v4553_v63 }
 0x132   : > { %1421 = vrot.lane.b32.xlu1 %v8374_v62, %s5376_s27  ;;  %1419 = vrot.lane.b32.xlu0 %v8375_v38, %s5376_s27  ;;  %v808_v24 = vsel %vm780_vm0, %v8401_v36, %v8400_v21  ;;  %v8403_v37 = vld [vmem:[#allocation35_spill] sm:$0xff]  ;;  %v8405_v62 = vld [vmem:[#allocation89_spill] sm:$0xff]  ;;  %v8422_v12 = vld [vmem:[#allocation18_spill] sm:$0xff] }
 0x133   : > { %5050 = vmatprep.mubr.msk.f32.mxu0 %vm881_vm3, %v865_v0  ;;  %v807_v54 = vsel %vm780_vm0, %v8403_v37, %v8402_v31  ;;  %5232 = vmatprep.subr.bf16.mxu1 %v5231_v61  ;;  %v8427_v21 = vld [vmem:[#allocation23_spill] sm:$0xff]  ;;  %v8428_v31 = vld [vmem:[#allocation56_spill] sm:$0xff]  ;;  %v8429_v37 = vld [vmem:[#allocation57_spill] sm:$0xff] }
 0x134   : > { %5051 = vmatmul.mubr.msk.f32.gmra.mrb[18].mxu0 %vm881_vm3, %v866_v2  ;;  %v727_v56 = vpop.permute.xlu1 %726  ;;  %v725_v60 = vpop.permute.xlu0 %724  ;;  %v8404_v2 = vld [vmem:[#allocation88_spill] sm:$0xff]  ;;  %v840_v38 = vsel %vm813_vm1, %v807_v54, %v8405_v62  ;;  %5234 = vmatpush3.bf16.msra.mxu1 %v5231_v61  ;;  %v8431_v62 = vld [vmem:[#allocation59_spill] sm:$0xff]  ;;  %v8451_v59 = vld [vmem:[#allocation90_spill] sm:$0xff] }
 0x135   : > { %v868_v6 = vsel %vm846_vm2, %v835_v40, %v727_v56  ;;  %v867_v7 = vsel %vm846_vm2, %v834_v20, %v725_v60  ;;  %v841_v0 = vsel %vm813_vm1, %v808_v24, %v8404_v2  ;;  %v8409_v40 = vld [vmem:[#allocation36_spill] sm:$0xff]  ;;  %v8410_v20 = vld [vmem:[#allocation53_spill] sm:$0xff] }
 0x136   : > { %1425 = vrot.lane.b32.xlu1 %v8382_v25, %s5376_s27  ;;  %1423 = vrot.lane.b32.xlu0 %v8383_v42, %s5376_s27  ;;  %v810_v41 = vsel %vm780_vm0, %v8409_v40, %v8408_v58  ;;  %v8411_v56 = vld [vmem:[#allocation37_spill] sm:$0xff]  ;;  %v8435_v58 = vld [vmem:[#allocation63_spill] sm:$0xff] }
 0x137   : > { %5053 = vmatprep.mubr.msk.f32.mxu0 %vm881_vm3, %v867_v7  ;;  %v809_v60 = vsel %vm780_vm0, %v8411_v56, %v8410_v20  ;;  %v8413_v25 = vld [vmem:[#allocation93_spill] sm:$0xff]  ;;  %v8436_v20 = vld [vmem:[#allocation64_spill] sm:$0xff] }
 0x138   : > { %5054 = vmatmul.mubr.msk.f32.gmra.mrb[20].mxu0 %vm881_vm3, %v868_v6  ;;  %v731_v50 = vpop.permute.xlu1 %730  ;;  %v729_v23 = vpop.permute.xlu0 %728  ;;  %v8412_v6 = vld [vmem:[#allocation92_spill] sm:$0xff]  ;;  %v842_v42 = vsel %vm813_vm1, %v809_v60, %v8413_v25  ;;  %v8437_v56 = vld [vmem:[#allocation65_spill] sm:$0xff]  ;;  %v8439_v25 = vld [vmem:[#allocation67_spill] sm:$0xff] }
 0x139   : > { %v870_v30 = vsel %vm846_vm2, %v837_v44, %v731_v50  ;;  %v869_v33 = vsel %vm846_vm2, %v836_v45, %v729_v23  ;;  %v843_v7 = vsel %vm813_vm1, %v810_v41, %v8412_v6  ;;  %v8417_v44 = vld [vmem:[#allocation38_spill] sm:$0xff]  ;;  %v8418_v45 = vld [vmem:[#allocation55_spill] sm:$0xff] }
 0x13a   : > { %1429 = vrot.lane.b32.xlu1 %v8390_v16, %s5376_s27  ;;  %1427 = vrot.lane.b32.xlu0 %v8391_v46, %s5376_s27  ;;  %v812_v51 = vsel %vm780_vm0, %v8417_v44, %v8416_v53  ;;  %v8419_v50 = vld [vmem:[#allocation39_spill] sm:$0xff]  ;;  %v8421_v16 = vld [vmem:[#allocation97_spill] sm:$0xff] }
 0x13b   : > { %5056 = vmatprep.mubr.msk.f32.mxu0 %vm881_vm3, %v869_v33  ;;  %v811_v23 = vsel %vm780_vm0, %v8419_v50, %v8418_v45  ;;  %v8443_v53 = vld [vmem:[#allocation75_spill] sm:$0xff]  ;;  %v8444_v45 = vld [vmem:[#allocation78_spill] sm:$0xff] }
 0x13c   : > { %5057 = vmatmul.mubr.msk.f32.gmra.mrb[22].mxu0 %vm881_vm3, %v870_v30  ;;  %v735_v28 = vpop.permute.xlu1 %734  ;;  %v733_v29 = vpop.permute.xlu0 %732  ;;  %v8420_v30 = vld [vmem:[#allocation96_spill] sm:$0xff]  ;;  %v844_v46 = vsel %vm813_vm1, %v811_v23, %v8421_v16  ;;  %v8445_v50 = vld [vmem:[#allocation79_spill] sm:$0xff] }
 0x13d   : > { %v872_v55 = vsel %vm846_vm2, %v839_v34, %v735_v28  ;;  %v871_v1 = vsel %vm846_vm2, %v838_v35, %v733_v29  ;;  %v845_v33 = vsel %vm813_vm1, %v812_v51, %v8420_v30  ;;  %v8423_v34 = vld [vmem:[#allocation19_spill] sm:$0xff]  ;;  %v8424_v29 = vld [vmem:[#allocation20_spill] sm:$0xff] }
 0x13e   : > { %1433 = vrot.lane.b32.xlu1 %v8398_v11, %s5376_s27  ;;  %1431 = vrot.lane.b32.xlu0 %v8399_v19, %s5376_s27  ;;  %v8426_v19 = vld [vmem:[#allocation22_spill] sm:$0xff]  ;;  %v8447_v16 = vld [vmem:[#allocation83_spill] sm:$0xff] }
 0x13f   : > { %5059 = vmatprep.mubr.msk.f32.mxu0 %vm881_vm3, %v871_v1 }
 0x140   : > { %5060 = vmatmul.mubr.msk.f32.gmra.mrb[24].mxu0 %vm881_vm3, %v872_v55  ;;  %v739_v27 = vpop.permute.xlu1 %738  ;;  %v737_v26 = vpop.permute.xlu0 %736  ;;  %v8425_v55 = vld [vmem:[#allocation21_spill] sm:$0xff] }
 0x141   : > { %v874_v39 = vsel %vm846_vm2, %v841_v0, %v739_v27  ;;  %v873_v3 = vsel %vm846_vm2, %v840_v38, %v737_v26  ;;  %v8430_v0 = vld [vmem:[#allocation58_spill] sm:$0xff]  ;;  %v8432_v26 = vld [vmem:[#allocation60_spill] sm:$0xff] }
 0x142   : > { %1437 = vrot.lane.b32.xlu1 %v8406_v4, %s5376_s27  ;;  %1435 = vrot.lane.b32.xlu0 %v8407_v5, %s5376_s27  ;;  %v8434_v5 = vld [vmem:[#allocation62_spill] sm:$0xff] }
 0x143   : > { %5062 = vmatprep.mubr.msk.f32.mxu0 %vm881_vm3, %v873_v3 }
 0x144   : > { %5063 = vmatmul.mubr.msk.f32.gmra.mrb[26].mxu0 %vm881_vm3, %v874_v39  ;;  %v743_v22 = vpop.permute.xlu1 %742  ;;  %v741_v18 = vpop.permute.xlu0 %740  ;;  %v8433_v39 = vld [vmem:[#allocation61_spill] sm:$0xff] }
 0x145   : > { %v876_v43 = vsel %vm846_vm2, %v843_v7, %v743_v22  ;;  %v875_v52 = vsel %vm846_vm2, %v842_v42, %v741_v18  ;;  %v8438_v7 = vld [vmem:[#allocation66_spill] sm:$0xff] }
 0x146   : > { %1441 = vrot.lane.b32.xlu1 %v8414_v8, %s5376_s27  ;;  %1439 = vrot.lane.b32.xlu0 %v8415_v9, %s5376_s27  ;;  %v8440_v18 = vld [vmem:[#allocation70_spill] sm:$0xff] }
 0x147   : > { %5065 = vmatprep.mubr.msk.f32.mxu0 %vm881_vm3, %v875_v52  ;;  %v8442_v9 = vld [vmem:[#allocation74_spill] sm:$0xff] }
 0x148   : > { %5066 = vmatmul.mubr.msk.f32.gmra.mrb[28].mxu0 %vm881_vm3, %v876_v43  ;;  %v747_v32 = vpop.permute.xlu1 %746  ;;  %v745_v47 = vpop.permute.xlu0 %744  ;;  %v8441_v43 = vld [vmem:[#allocation71_spill] sm:$0xff] }
 0x149   : > { %v878_v17 = vsel %vm846_vm2, %v845_v33, %v747_v32  ;;  %v877_v13 = vsel %vm846_vm2, %v844_v46, %v745_v47  ;;  %v8446_v33 = vld [vmem:[#allocation82_spill] sm:$0xff] }
 0x14a   : > { %1445 = vrot.lane.b32.xlu1 %v8422_v12, %s5376_s27  ;;  %1443 = vrot.lane.b32.xlu0 %v8423_v34, %s5376_s27  ;;  %v8448_v47 = vld [vmem:[#allocation86_spill] sm:$0xff]  ;;  %v8452_v12 = vld [vmem:[#allocation91_spill] sm:$0xff] }
 0x14b   : > { %5068 = vmatprep.mubr.msk.f32.mxu0 %vm881_vm3, %v877_v13 }
 0x14c   : > { %5069 = vmatmul.mubr.msk.f32.gmra.mrb[30].mxu0 %vm881_vm3, %v878_v17  ;;  %v6385_v35 = vpop.permute.xlu1 %1301  ;;  %v6387_v28 = vpop.permute.xlu0 %1299  ;;  %v8449_v17 = vld [vmem:[#allocation87_spill] sm:$0xff] }
 0x14e   : > { %1449 = vrot.lane.b32.xlu1 %v8424_v29, %s5376_s27  ;;  %1447 = vrot.lane.b32.xlu0 %v8425_v55, %s5376_s27  ;;  %v8455_v29 = vld [vmem:[#allocation94_spill] sm:$0xff]  ;;  %v8456_v55 = vld [vmem:[#allocation95_spill] sm:$0xff] }
 0x150   : > { %v6393_v1 = vpop.permute.xlu1 %1305  ;;  %v6395_v11 = vpop.permute.xlu0 %1303 }
 0x152   : > { %1453 = vrot.lane.b32.xlu1 %v8426_v19, %s5376_s27  ;;  %1451 = vrot.lane.b32.xlu0 %v8427_v21, %s5376_s27 }
 0x154   : > { %v6401_v36 = vpop.permute.xlu1 %1309  ;;  %v6403_v24 = vpop.permute.xlu0 %1307 }
 0x156   : > { %1457 = vrot.lane.b32.xlu1 %v8428_v31, %s5376_s27  ;;  %1455 = vrot.lane.b32.xlu0 %v8429_v37, %s5376_s27 }
 0x158   : > { %v6409_v54 = vpop.permute.xlu1 %1313  ;;  %v6411_v2 = vpop.permute.xlu0 %1311 }
 0x15a   : > { %1525 = vrot.lane.b32.xlu1 %v8430_v0, %s5377_s5  ;;  %1523 = vrot.lane.b32.xlu0 %v8431_v62, %s5377_s5 }
 0x15c   : > { %v6417_v38 = vpop.permute.xlu1 %1317  ;;  %v6419_v27 = vpop.permute.xlu0 %1315 }
 0x15e   : > { %1529 = vrot.lane.b32.xlu1 %v8432_v26, %s5377_s5  ;;  %1527 = vrot.lane.b32.xlu0 %v8433_v39, %s5377_s5  ;;  %v4551_v26 = vld [vmem:[%s5437_s25 + $0x182] sm:$0xff] }
 0x160   : > { %v6425_v3 = vpop.permute.xlu1 %1321  ;;  %v6427_v4 = vpop.permute.xlu0 %1319 }
 0x162   : > { %1533 = vrot.lane.b32.xlu1 %v8434_v5, %s5377_s5  ;;  %1531 = vrot.lane.b32.xlu0 %v8435_v58, %s5377_s5 }
 0x164   : > { %v6433_v40 = vpop.permute.xlu1 %1325  ;;  %v6435_v41 = vpop.permute.xlu0 %1323 }
 0x166   : > { %1537 = vrot.lane.b32.xlu1 %v8436_v20, %s5377_s5  ;;  %1535 = vrot.lane.b32.xlu0 %v8437_v56, %s5377_s5 }
 0x168   : > { %v6441_v60 = vpop.permute.xlu1 %1329  ;;  %v6443_v6 = vpop.permute.xlu0 %1327 }
 0x16a   : > { %1541 = vrot.lane.b32.xlu1 %v8438_v7, %s5377_s5  ;;  %1539 = vrot.lane.b32.xlu0 %v8439_v25, %s5377_s5 }
 0x16c   : > { %v6449_v42 = vpop.permute.xlu1 %1333  ;;  %v6451_v22 = vpop.permute.xlu0 %1331 }
 0x16e   : > { %1545 = vrot.lane.b32.xlu1 %v8440_v18, %s5377_s5  ;;  %1543 = vrot.lane.b32.xlu0 %v8441_v43, %s5377_s5 }
 0x170   : > { %v6457_v52 = vpop.permute.xlu1 %1337  ;;  %v6459_v8 = vpop.permute.xlu0 %1335 }
 0x172   : > { %1549 = vrot.lane.b32.xlu1 %v8442_v9, %s5377_s5  ;;  %1547 = vrot.lane.b32.xlu0 %v8443_v53, %s5377_s5 }
 0x174   : > { %v6465_v44 = vpop.permute.xlu1 %1341  ;;  %v6467_v51 = vpop.permute.xlu0 %1339 }
 0x176   : > { %1553 = vrot.lane.b32.xlu1 %v8444_v45, %s5377_s5  ;;  %1551 = vrot.lane.b32.xlu0 %v8445_v50, %s5377_s5 }
 0x178   : > { %v6473_v23 = vpop.permute.xlu1 %1345  ;;  %v6475_v30 = vpop.permute.xlu0 %1343 }
 0x17a   : > { %1557 = vrot.lane.b32.xlu1 %v8446_v33, %s5377_s5  ;;  %1555 = vrot.lane.b32.xlu0 %v8447_v16, %s5377_s5 }
 0x17c   : > { %v6481_v46 = vpop.permute.xlu1 %1349  ;;  %v6483_v32 = vpop.permute.xlu0 %1347 }
 0x17e   : > { %1561 = vrot.lane.b32.xlu1 %v8448_v47, %s5377_s5  ;;  %1559 = vrot.lane.b32.xlu0 %v8449_v17, %s5377_s5 }
 0x180   : > { %v6489_v13 = vpop.permute.xlu1 %1353  ;;  %v6491_v63 = vpop.permute.xlu0 %1351 }
 0x181   : > { %8450 = vst [vmem:[#allocation2_spill] sm:$0xff] %v6491_v63 }
 0x182   : > { %1565 = vrot.lane.b32.xlu1 %v8451_v59, %s5377_s5  ;;  %1563 = vrot.lane.b32.xlu0 %v8452_v12, %s5377_s5 }
 0x184   : > { %v6497_v34 = vpop.permute.xlu1 %1357  ;;  %v6499_v61 = vpop.permute.xlu0 %1355 }
 0x185   : > { %8453 = vst [vmem:[#allocation3_spill] sm:$0xff] %v6497_v34  ;;  %8454 = vst [vmem:[#allocation40_spill] sm:$0xff] %v6499_v61  ;;  %v5289_v61 = vld [vmem:[%s5437_s25 + $0x1] sm:$0xff] }
 0x186   : > { %1569 = vrot.lane.b32.xlu1 %v8455_v29, %s5377_s5  ;;  %1567 = vrot.lane.b32.xlu0 %v8456_v55, %s5377_s5  ;;  %v1619_v34 = vsel %vm780_vm0, %v5289_v61, %v6387_v28 }
 0x188   : > { %v6505_v19 = vpop.permute.xlu1 %1361  ;;  %v6507_v21 = vpop.permute.xlu0 %1359 }
 0x189   : > { %8457 = vst [vmem:[#allocation24_spill] sm:$0xff] %v6505_v19  ;;  %8458 = vst [vmem:[#allocation41_spill] sm:$0xff] %v6507_v21  ;;  %v5288_v21 = vld [vmem:[%s5437_s25 + $0x9] sm:$0xff] }
 0x18a   : > { %1573 = vrot.lane.b32.xlu1 %v6084_v14, %s5377_s5  ;;  %1571 = vrot.lane.b32.xlu0 %v6087_v48, %s5377_s5  ;;  %v4552_v14 = vld [vmem:[%s5437_s25 + $0x18a] sm:$0xff]  ;;  %v1620_v19 = vsel %vm780_vm0, %v5288_v21, %v6385_v35  ;;  %v5291_v21 = vld [vmem:[%s5437_s25 + $0x19] sm:$0xff] }
 0x18b   : > { %v1621_v28 = vsel %vm780_vm0, %v5291_v21, %v6395_v11 }
 0x18c   : > { %v1398_v31 = vpop.permute.xlu1 %1397  ;;  %v1396_v37 = vpop.permute.xlu0 %1395 }
 0x18e   : > { %1577 = vrot.lane.b32.xlu1 %v6107_v15, %s5377_s5  ;;  %1575 = vrot.lane.b32.xlu0 %v6110_v10, %s5377_s5 }
 0x190   : > { %v1402_v0 = vpop.permute.xlu1 %1401  ;;  %v1400_v62 = vpop.permute.xlu0 %1399 }
 0x191   : > { %v1653_v61 = vsel %vm813_vm1, %v1621_v28, %v1400_v62 }
 0x192   : > { %1581 = vrot.lane.b32.xlu1 %v6131_v49, %s5377_s5  ;;  %1579 = vrot.lane.b32.xlu0 %v6134_v57, %s5377_s5 }
 0x194   : > { %v1406_v39 = vpop.permute.xlu1 %1405  ;;  %v1404_v48 = vpop.permute.xlu0 %1403 }
 0x196   : > { %1585 = vrot.lane.b32.xlu1 %v4552_v14, %s5377_s5  ;;  %1583 = vrot.lane.b32.xlu0 %v4551_v26, %s5377_s5 }
 0x198   : > { %v6525_v15 = vpop.permute.xlu1 %1409  ;;  %v6527_v5 = vpop.permute.xlu0 %1407 }
 0x19c   : > { %v6529_v10 = vpop.permute.xlu1 %1413  ;;  %v6531_v58 = vpop.permute.xlu0 %1411 }
 0x1a0   : > { %v6533_v49 = vpop.permute.xlu1 %1417  ;;  %v6535_v20 = vpop.permute.xlu0 %1415 }
 0x1a4   : > { %v6537_v57 = vpop.permute.xlu1 %1421  ;;  %v6539_v56 = vpop.permute.xlu0 %1419 }
 0x1a8   : > { %v6541_v7 = vpop.permute.xlu1 %1425  ;;  %v6543_v25 = vpop.permute.xlu0 %1423 }
 0x1ac   : > { %v6545_v18 = vpop.permute.xlu1 %1429  ;;  %v6547_v43 = vpop.permute.xlu0 %1427 }
 0x1b0   : > { %v6549_v9 = vpop.permute.xlu1 %1433  ;;  %v6551_v53 = vpop.permute.xlu0 %1431 }
 0x1b4   : > { %v6553_v45 = vpop.permute.xlu1 %1437  ;;  %v6555_v50 = vpop.permute.xlu0 %1435 }
 0x1b8   : > { %v6557_v33 = vpop.permute.xlu1 %1441  ;;  %v6559_v16 = vpop.permute.xlu0 %1439 }
 0x1bc   : > { %v6561_v47 = vpop.permute.xlu1 %1445  ;;  %v6563_v17 = vpop.permute.xlu0 %1443 }
 0x1c0   : > { %v6565_v59 = vpop.permute.xlu1 %1449  ;;  %v6567_v12 = vpop.permute.xlu0 %1447 }
 0x1c1   : > { %8459 = vst [vmem:[#allocation25_spill] sm:$0xff] %v6565_v59  ;;  %8460 = vst [vmem:[#allocation68_spill] sm:$0xff] %v6567_v12  ;;  %v1652_v12 = vsel %vm813_vm1, %v1620_v19, %v1398_v31  ;;  %v1651_v59 = vsel %vm813_vm1, %v1619_v34, %v1396_v37 }
 0x1c4   : > { %v6569_v29 = vpop.permute.xlu1 %1453  ;;  %v6571_v55 = vpop.permute.xlu0 %1451 }
 0x1c5   : > { %8461 = vst [vmem:[#allocation69_spill] sm:$0xff] %v6569_v29  ;;  %8462 = vst [vmem:[#allocation4_spill] sm:$0xff] %v6571_v55 }
 0x1c8   : > { %v6573_v14 = vpop.permute.xlu1 %1457  ;;  %v6575_v26 = vpop.permute.xlu0 %1455 }
 0x1c9   : > { %8463 = vst [vmem:[#allocation5_spill] sm:$0xff] %v6573_v14  ;;  %8464 = vst [vmem:[#allocation42_spill] sm:$0xff] %v6575_v26  ;;  %v5290_v26 = vld [vmem:[%s5437_s25 + $0x21] sm:$0xff] }
 0x1ca   : > { %v1622_v35 = vsel %vm780_vm0, %v5290_v26, %v6393_v1  ;;  %v5292_v1 = vld [vmem:[%s5437_s25 + $0x39] sm:$0xff] }
 0x1cb   : > { %v1654_v34 = vsel %vm813_vm1, %v1622_v35, %v1402_v0  ;;  %v1624_v11 = vsel %vm780_vm0, %v5292_v1, %v6401_v36  ;;  %v5294_v36 = vld [vmem:[%s5437_s25 + $0x51] sm:$0xff]  ;;  %v5295_v35 = vld [vmem:[%s5437_s25 + $0x49] sm:$0xff] }
 0x1cc   : > { %v1526_v29 = vpop.permute.xlu1 %1525  ;;  %v1524_v63 = vpop.permute.xlu0 %1523  ;;  %v1656_v62 = vsel %vm813_vm1, %v1624_v11, %v1406_v39  ;;  %v1625_v39 = vsel %vm780_vm0, %v5295_v35, %v6411_v2 }
 0x1cd   : > { %v1684_v55 = vsel %vm846_vm2, %v1652_v12, %v1526_v29  ;;  %v1683_v14 = vsel %vm846_vm2, %v1651_v59, %v1524_v63  ;;  %v5293_v59 = vld [vmem:[%s5437_s25 + $0x31] sm:$0xff]  ;;  %v1657_v21 = vsel %vm813_vm1, %v1625_v39, %v6527_v5 }
 0x1ce   : > { %5075 = vmatprep.mubr.msk.f32.mxu1 %vm881_vm3, %v1683_v14  ;;  %v1623_v0 = vsel %vm780_vm0, %v5293_v59, %v6403_v24  ;;  %v1626_v24 = vsel %vm780_vm0, %v5294_v36, %v6409_v54  ;;  %v5296_v54 = vld [vmem:[%s5437_s25 + $0x69] sm:$0xff] }
 0x1cf   : > { %5076 = vmatmul.mubr.msk.f32.vlgmr.msra.gmra.mrb[0].mxu1 %vm881_vm3, %v1684_v55  ;;  %v1655_v12 = vsel %vm813_vm1, %v1623_v0, %v1404_v48  ;;  %v1658_v48 = vsel %vm813_vm1, %v1626_v24, %v6525_v15  ;;  %v1628_v2 = vsel %vm780_vm0, %v5296_v54, %v6417_v38  ;;  %v5298_v38 = vld [vmem:[%s5437_s25 + $0x81] sm:$0xff]  ;;  %v5299_v0 = vld [vmem:[%s5437_s25 + $0x79] sm:$0xff] }
 0x1d0   : > { %v1530_v19 = vpop.permute.xlu1 %1529  ;;  %v1528_v31 = vpop.permute.xlu0 %1527  ;;  %v1660_v5 = vsel %vm813_vm1, %v1628_v2, %v6529_v10  ;;  %v1629_v10 = vsel %vm780_vm0, %v5299_v0, %v6427_v4  ;;  %v5306_v0 = vld [vmem:[%s5437_s25 + $0xe1] sm:$0xff] }
 0x1d1   : > { %v1686_v63 = vsel %vm846_vm2, %v1654_v34, %v1530_v19  ;;  %v1685_v37 = vsel %vm846_vm2, %v1653_v61, %v1528_v31  ;;  %v5297_v31 = vld [vmem:[%s5437_s25 + $0x61] sm:$0xff] }
 0x1d2   : > { %5078 = vmatprep.mubr.msk.f32.mxu1 %vm881_vm3, %v1685_v37  ;;  %v1627_v15 = vsel %vm780_vm0, %v5297_v31, %v6419_v27  ;;  %v1630_v27 = vsel %vm780_vm0, %v5298_v38, %v6425_v3  ;;  %v5300_v3 = vld [vmem:[%s5437_s25 + $0x99] sm:$0xff] }
 0x1d3   : > { %5079 = vmatmul.mubr.msk.f32.gmra.mrb[2].mxu1 %vm881_vm3, %v1686_v63  ;;  %v1659_v63 = vsel %vm813_vm1, %v1627_v15, %v6531_v58  ;;  %v1662_v58 = vsel %vm813_vm1, %v1630_v27, %v6533_v49  ;;  %v1632_v4 = vsel %vm780_vm0, %v5300_v3, %v6433_v40  ;;  %v5301_v49 = vld [vmem:[%s5437_s25 + $0x91] sm:$0xff]  ;;  %v5308_v3 = vld [vmem:[%s5437_s25 + $0xf9] sm:$0xff] }
 0x1d4   : > { %v1534_v29 = vpop.permute.xlu1 %1533  ;;  %v1532_v55 = vpop.permute.xlu0 %1531  ;;  %v1664_v36 = vsel %vm813_vm1, %v1632_v4, %v6537_v57  ;;  %v5303_v57 = vld [vmem:[%s5437_s25 + $0xa9] sm:$0xff] }
 0x1d5   : > { %v1688_v14 = vsel %vm846_vm2, %v1656_v62, %v1534_v29  ;;  %v1687_v26 = vsel %vm846_vm2, %v1655_v12, %v1532_v55  ;;  %v1661_v62 = vsel %vm813_vm1, %v1629_v10, %v6535_v20  ;;  %v1631_v20 = vsel %vm780_vm0, %v5301_v49, %v6435_v41 }
 0x1d6   : > { %5081 = vmatprep.mubr.msk.f32.mxu1 %vm881_vm3, %v1687_v26  ;;  %v1663_v39 = vsel %vm813_vm1, %v1631_v20, %v6539_v56 }
 0x1d7   : > { %5082 = vmatmul.mubr.msk.f32.gmra.mrb[4].mxu1 %vm881_vm3, %v1688_v14 }
 0x1d8   : > { %v1538_v28 = vpop.permute.xlu1 %1537  ;;  %v1536_v34 = vpop.permute.xlu0 %1535 }
 0x1d9   : > { %v1690_v61 = vsel %vm846_vm2, %v1658_v48, %v1538_v28  ;;  %v1689_v19 = vsel %vm846_vm2, %v1657_v21, %v1536_v34  ;;  %v5302_v28 = vld [vmem:[%s5437_s25 + $0xb1] sm:$0xff] }
 0x1da   : > { %5084 = vmatprep.mubr.msk.f32.mxu1 %vm881_vm3, %v1689_v19  ;;  %v1634_v34 = vsel %vm780_vm0, %v5302_v28, %v6441_v60 }
 0x1db   : > { %5085 = vmatmul.mubr.msk.f32.gmra.mrb[6].mxu1 %vm881_vm3, %v1690_v61  ;;  %v1633_v61 = vsel %vm780_vm0, %v5303_v57, %v6443_v6  ;;  %v1666_v56 = vsel %vm813_vm1, %v1634_v34, %v6541_v7  ;;  %v5305_v7 = vld [vmem:[%s5437_s25 + $0xc1] sm:$0xff] }
 0x1dc   : > { %v1542_v37 = vpop.permute.xlu1 %1541  ;;  %v1540_v1 = vpop.permute.xlu0 %1539  ;;  %v1665_v60 = vsel %vm813_vm1, %v1633_v61, %v6543_v25 }
 0x1dd   : > { %v1692_v11 = vsel %vm846_vm2, %v1660_v5, %v1542_v37  ;;  %v1691_v59 = vsel %vm846_vm2, %v1659_v63, %v1540_v1  ;;  %v5304_v5 = vld [vmem:[%s5437_s25 + $0xc9] sm:$0xff]  ;;  %v1635_v37 = vsel %vm780_vm0, %v5305_v7, %v6451_v22  ;;  %v1638_v22 = vsel %vm780_vm0, %v5306_v0, %v6457_v52 }
 0x1de   : > { %5087 = vmatprep.mubr.msk.f32.mxu1 %vm881_vm3, %v1691_v59  ;;  %v1636_v6 = vsel %vm780_vm0, %v5304_v5, %v6449_v42  ;;  %v1667_v42 = vsel %vm813_vm1, %v1635_v37, %v6547_v43  ;;  %v1670_v43 = vsel %vm813_vm1, %v1638_v22, %v6549_v9  ;;  %v5309_v9 = vld [vmem:[%s5437_s25 + $0xf1] sm:$0xff] }
 0x1df   : > { %5088 = vmatmul.mubr.msk.f32.gmra.mrb[8].mxu1 %vm881_vm3, %v1692_v11  ;;  %v1668_v25 = vsel %vm813_vm1, %v1636_v6, %v6545_v18  ;;  %v5307_v18 = vld [vmem:[%s5437_s25 + $0xd9] sm:$0xff]  ;;  %v1639_v49 = vsel %vm780_vm0, %v5309_v9, %v6467_v51  ;;  %v8467_v22 = vld [vmem:[#allocation68_spill] sm:$0xff] }
 0x1e0   : > { %v1546_v12 = vpop.permute.xlu1 %1545  ;;  %v1544_v29 = vpop.permute.xlu0 %1543  ;;  %v8470_v9 = vld [vmem:[#allocation69_spill] sm:$0xff] }
 0x1e1   : > { %v1694_v55 = vsel %vm846_vm2, %v1662_v58, %v1546_v12  ;;  %v1693_v14 = vsel %vm846_vm2, %v1661_v62, %v1544_v29  ;;  %v1637_v58 = vsel %vm780_vm0, %v5307_v18, %v6459_v8  ;;  %v1640_v8 = vsel %vm780_vm0, %v5308_v3, %v6465_v44  ;;  %v8469_v3 = vld [vmem:[#allocation40_spill] sm:$0xff] }
 0x1e2   : > { %5090 = vmatprep.mubr.msk.f32.mxu1 %vm881_vm3, %v1693_v14  ;;  %v1669_v52 = vsel %vm813_vm1, %v1637_v58, %v6551_v53  ;;  %v1672_v53 = vsel %vm813_vm1, %v1640_v8, %v6553_v45  ;;  %v1671_v44 = vsel %vm813_vm1, %v1639_v49, %v6555_v50  ;;  %v5311_v45 = vld [vmem:[%s5437_s25 + $0x109] sm:$0xff] }
 0x1e3   : > { %v6657_v26 = vpop.f32.mrb[0].mxu0  ;;  %5091 = vmatmul.mubr.msk.f32.gmra.mrb[10].mxu1 %vm881_vm3, %v1694_v55  ;;  %v1641_v28 = vsel %vm780_vm0, %v5311_v45, %v6475_v30  ;;  %v8472_v45 = vld [vmem:[#allocation24_spill] sm:$0xff] }
 0x1e4   : > { %v6665_v24 = vpop.f32.mrb[1].mxu0  ;;  %v1550_v35 = vpop.permute.xlu1 %1549 }
 0x1e5   : > { %v1696_v40 = vsel %vm846_vm2, %v1664_v36, %v1550_v35  ;;  %v1548_v48 = vpop.permute.xlu0 %1547 }
 0x1e6   : > { %v1695_v21 = vsel %vm846_vm2, %v1663_v39, %v1548_v48  ;;  %v5310_v48 = vld [vmem:[%s5437_s25 + $0x111] sm:$0xff] }
 0x1e7   : > { %v6674_v41 = vpop.f32.mrb[2].mxu0  ;;  %5093 = vmatprep.mubr.msk.f32.mxu1 %vm881_vm3, %v1695_v21  ;;  %v1642_v51 = vsel %vm780_vm0, %v5310_v48, %v6473_v23  ;;  %v1673_v23 = vsel %vm813_vm1, %v1641_v28, %v6559_v16 }
 0x1e8   : > { %v6682_v19 = vpop.f32.mrb[3].mxu0  ;;  %5094 = vmatmul.mubr.msk.f32.gmra.mrb[12].mxu1 %vm881_vm3, %v1696_v40  ;;  %v1554_v54 = vpop.permute.xlu1 %1553  ;;  %v1674_v50 = vsel %vm813_vm1, %v1642_v51, %v6557_v33  ;;  %v5313_v33 = vld [vmem:[%s5437_s25 + $0x121] sm:$0xff]  ;;  %v5318_v51 = vld [vmem:[%s5437_s25 + $0x171] sm:$0xff] }
 0x1e9   : > { %v1698_v2 = vsel %vm846_vm2, %v1666_v56, %v1554_v54  ;;  %v1552_v31 = vpop.permute.xlu0 %1551  ;;  %v1650_v28 = vsel %vm780_vm0, %v5318_v51, %v8472_v45 }
 0x1ea   : > { %v1697_v15 = vsel %vm846_vm2, %v1665_v60, %v1552_v31  ;;  %v5312_v60 = vld [vmem:[%s5437_s25 + $0x129] sm:$0xff]  ;;  %v1643_v31 = vsel %vm780_vm0, %v5313_v33, %v6483_v32  ;;  %v8475_v33 = vld [vmem:[#allocation42_spill] sm:$0xff] }
 0x1eb   : > { %v6692_v63 = vpop.f32.mrb[4].mxu0  ;;  %5096 = vmatprep.mubr.msk.f32.mxu1 %vm881_vm3, %v1697_v15  ;;  %v1644_v30 = vsel %vm780_vm0, %v5312_v60, %v6481_v46  ;;  %v1675_v46 = vsel %vm813_vm1, %v1643_v31, %v6563_v17  ;;  %v8466_v17 = vld [vmem:[#allocation25_spill] sm:$0xff] }
 0x1ec   : > { %v6700_v1 = vpop.f32.mrb[5].mxu0  ;;  %5097 = vmatmul.mubr.msk.f32.gmra.mrb[14].mxu1 %vm881_vm3, %v1698_v2  ;;  %v1558_v11 = vpop.permute.xlu1 %1557  ;;  %v1676_v16 = vsel %vm813_vm1, %v1644_v30, %v6561_v47  ;;  %v5315_v47 = vld [vmem:[%s5437_s25 + $0x139] sm:$0xff] }
 0x1ed   : > { %v1700_v59 = vsel %vm846_vm2, %v1668_v25, %v1558_v11  ;;  %v1556_v38 = vpop.permute.xlu0 %1555  ;;  %v5314_v25 = vld [vmem:[%s5437_s25 + $0x141] sm:$0xff] }
 0x1ee   : > { %v1699_v27 = vsel %vm846_vm2, %v1667_v42, %v1556_v38  ;;  %v1646_v32 = vsel %vm780_vm0, %v5314_v25, %v6489_v13  ;;  %v8465_v42 = vld [vmem:[#allocation2_spill] sm:$0xff] }
 0x1ef   : > { %v6710_v10 = vpop.f32.mrb[6].mxu0  ;;  %5099 = vmatprep.mubr.msk.f32.mxu1 %vm881_vm3, %v1699_v27  ;;  %v1678_v38 = vsel %vm813_vm1, %v1646_v32, %v8466_v17 }
 0x1f0   : > { %v6718_v62 = vpop.f32.mrb[7].mxu0  ;;  %5100 = vmatmul.mubr.msk.f32.gmra.mrb[16].mxu1 %vm881_vm3, %v1700_v59  ;;  %v1562_v12 = vpop.permute.xlu1 %1561  ;;  %v1645_v59 = vsel %vm780_vm0, %v5315_v47, %v8465_v42 }
 0x1f1   : > { %v1702_v29 = vsel %vm846_vm2, %v1670_v43, %v1562_v12  ;;  %v1560_v55 = vpop.permute.xlu0 %1559  ;;  %v1677_v13 = vsel %vm813_vm1, %v1645_v59, %v8467_v22  ;;  %v5316_v12 = vld [vmem:[%s5437_s25 + $0x159] sm:$0xff] }
 0x1f2   : > { %v1701_v14 = vsel %vm846_vm2, %v1669_v52, %v1560_v55  ;;  %v8468_v52 = vld [vmem:[#allocation3_spill] sm:$0xff] }
 0x1f3   : > { %v6728_v4 = vpop.f32.mrb[8].mxu0  ;;  %5102 = vmatprep.mubr.msk.f32.mxu1 %vm881_vm3, %v1701_v14  ;;  %v5317_v14 = vld [vmem:[%s5437_s25 + $0x151] sm:$0xff] }
 0x1f4   : > { %v6736_v20 = vpop.f32.mrb[9].mxu0  ;;  %5103 = vmatmul.mubr.msk.f32.gmra.mrb[18].mxu1 %vm881_vm3, %v1702_v29  ;;  %v1566_v36 = vpop.permute.xlu1 %1565  ;;  %v1648_v29 = vsel %vm780_vm0, %v5316_v12, %v8468_v52  ;;  %v1647_v8 = vsel %vm780_vm0, %v5317_v14, %v8469_v3 }
 0x1f5   : > { %v1704_v35 = vsel %vm846_vm2, %v1672_v53, %v1566_v36  ;;  %v1564_v39 = vpop.permute.xlu0 %1563  ;;  %v1680_v49 = vsel %vm813_vm1, %v1648_v29, %v8470_v9 }
 0x1f6   : > { %v1703_v40 = vsel %vm846_vm2, %v1671_v44, %v1564_v39  ;;  %v8471_v44 = vld [vmem:[#allocation4_spill] sm:$0xff] }
 0x1f7   : > { %v6746_v21 = vpop.f32.mrb[10].mxu0  ;;  %5105 = vmatprep.mubr.msk.f32.mxu1 %vm881_vm3, %v1703_v40 }
 0x1f8   : > { %v6754_v34 = vpop.f32.mrb[11].mxu0  ;;  %5106 = vmatmul.mubr.msk.f32.gmra.mrb[20].mxu1 %vm881_vm3, %v1704_v35  ;;  %v1570_v57 = vpop.permute.xlu1 %1569  ;;  %v1679_v35 = vsel %vm813_vm1, %v1647_v8, %v8471_v44 }
 0x1f9   : > { %v1706_v61 = vsel %vm846_vm2, %v1674_v50, %v1570_v57  ;;  %v1568_v56 = vpop.permute.xlu0 %1567  ;;  %v5319_v57 = vld [vmem:[%s5437_s25 + $0x169] sm:$0xff] }
 0x1fa   : > { %v1705_v54 = vsel %vm846_vm2, %v1673_v23, %v1568_v56  ;;  %v8473_v23 = vld [vmem:[#allocation41_spill] sm:$0xff] }
 0x1fb   : > { %v6764_v2 = vpop.f32.mrb[12].mxu0  ;;  %5108 = vmatprep.mubr.msk.f32.mxu1 %vm881_vm3, %v1705_v54  ;;  %v8474_v56 = vld [vmem:[#allocation5_spill] sm:$0xff] }
 0x1fc   : > { %v6772_v15 = vpop.f32.mrb[13].mxu0  ;;  %5109 = vmatmul.mubr.msk.f32.gmra.mrb[22].mxu1 %vm881_vm3, %v1706_v61  ;;  %v1574_v5 = vpop.permute.xlu1 %1573  ;;  %v1649_v61 = vsel %vm780_vm0, %v5319_v57, %v8473_v23  ;;  %v1682_v54 = vsel %vm813_vm1, %v1650_v28, %v8474_v56 }
 0x1fd   : > { %v1708_v6 = vsel %vm846_vm2, %v1676_v16, %v1574_v5  ;;  %v1572_v7 = vpop.permute.xlu0 %1571  ;;  %v1681_v31 = vsel %vm813_vm1, %v1649_v61, %v8475_v33 }
 0x1fe   : > { %v1707_v37 = vsel %vm846_vm2, %v1675_v46, %v1572_v7 }
 0x1ff   : > { %v6782_v11 = vpop.f32.mrb[14].mxu0  ;;  %5111 = vmatprep.mubr.msk.f32.mxu1 %vm881_vm3, %v1707_v37 }
 0x200   : > { %v6790_v27 = vpop.f32.mrb[15].mxu0  ;;  %5112 = vmatmul.mubr.msk.f32.gmra.mrb[24].mxu1 %vm881_vm3, %v1708_v6  ;;  %v1578_v0 = vpop.permute.xlu1 %1577 }
 0x201   : > { %v1710_v18 = vsel %vm846_vm2, %v1678_v38, %v1578_v0  ;;  %v1576_v58 = vpop.permute.xlu0 %1575 }
 0x202   : > { %v1709_v43 = vsel %vm846_vm2, %v1677_v13, %v1576_v58 }
 0x203   : > { %v6800_v55 = vpop.f32.mrb[16].mxu0  ;;  %5114 = vmatprep.mubr.msk.f32.mxu1 %vm881_vm3, %v1709_v43 }
 0x204   : > { %v6808_v53 = vpop.f32.mrb[17].mxu0  ;;  %5115 = vmatmul.mubr.msk.f32.gmra.mrb[26].mxu1 %vm881_vm3, %v1710_v18  ;;  %v1582_v36 = vpop.permute.xlu1 %1581 }
 0x205   : > { %v1712_v39 = vsel %vm846_vm2, %v1680_v49, %v1582_v36  ;;  %v1580_v40 = vpop.permute.xlu0 %1579 }
 0x206   : > { %v1711_v48 = vsel %vm846_vm2, %v1679_v35, %v1580_v40 }
 0x207   : > { %v6818_v50 = vpop.f32.mrb[18].mxu0  ;;  %5117 = vmatprep.mubr.msk.f32.mxu1 %vm881_vm3, %v1711_v48 }
 0x208   : > { %v6826_v60 = vpop.f32.mrb[19].mxu0  ;;  %5118 = vmatmul.mubr.msk.f32.gmra.mrb[28].mxu1 %vm881_vm3, %v1712_v39  ;;  %v1586_v30 = vpop.permute.xlu1 %1585 }
 0x209   : > { %v1714_v16 = vsel %vm846_vm2, %v1682_v54, %v1586_v30  ;;  %v1584_v5 = vpop.permute.xlu0 %1583 }
 0x20a   : > { %v1713_v46 = vsel %vm846_vm2, %v1681_v31, %v1584_v5 }
 0x20b   : > { %v6833_v6 = vpop.f32.mrb[20].mxu0  ;;  %5120 = vmatprep.mubr.msk.f32.mxu1 %vm881_vm3, %v1713_v46 }
 0x20c   : > { %v6836_v7 = vpop.f32.mrb[21].mxu0  ;;  %5121 = vmatmul.mubr.msk.f32.gmra.mrb[30].mxu1 %vm881_vm3, %v1714_v16 }
 0x20f   : > { %v6839_v37 = vpop.f32.mrb[22].mxu0 }
 0x210   : > { %v6841_v25 = vpop.f32.mrb[23].mxu0 }
 0x213   : > { %v6843_v32 = vpop.f32.mrb[24].mxu0 }
 0x214   : > { %v6845_v47 = vpop.f32.mrb[25].mxu0 }
 0x217   : > { %v6847_v42 = vpop.f32.mrb[26].mxu0 }
 0x218   : > { %v6849_v59 = vpop.f32.mrb[27].mxu0 }
 0x21b   : > { %v6851_v17 = vpop.f32.mrb[28].mxu0 }
 0x21c   : > { %v6853_v38 = vpop.f32.mrb[29].mxu0 }
 0x21f   : > { %v6855_v0 = vpop.f32.mrb[30].mxu0 }
 0x220   : > { %v6857_v22 = vpop.f32.mrb[31].mxu0 }
 0x2a2   : > { %v5077_v13 = vpop.f32.mrb[0].mxu1 }
 0x2a3   : > { %2073 = vrot.lane.b32.xlu1 %v5077_v13, %s5375_s26  ;;  %v1880_v18 = vpop.f32.mrb[1].mxu1  ;;  %v6892_v13 = vld [vmem:[%s5437_s25 + $0x21] sm:$0xff] }
 0x2a4   : > { %2071 = vrot.lane.b32.xlu0 %v1880_v18, %s5375_s26  ;;  %v6895_v18 = vld [vmem:[%s5437_s25 + $0x19] sm:$0xff] }
 0x2a6   : > { %v5080_v58 = vpop.f32.mrb[2].mxu1 }
 0x2a7   : > { %2077 = vrot.lane.b32.xlu1 %v5080_v58, %s5375_s26  ;;  %v1890_v43 = vpop.f32.mrb[3].mxu1  ;;  %v6902_v58 = vld [vmem:[%s5437_s25 + $0x39] sm:$0xff] }
 0x2a8   : > { %2075 = vrot.lane.b32.xlu0 %v1890_v43, %s5375_s26  ;;  %v6905_v43 = vld [vmem:[%s5437_s25 + $0x31] sm:$0xff] }
 0x2aa   : > { %v5083_v12 = vpop.f32.mrb[4].mxu1 }
 0x2ab   : > { %2081 = vrot.lane.b32.xlu1 %v5083_v12, %s5375_s26  ;;  %v1900_v52 = vpop.f32.mrb[5].mxu1  ;;  %v6912_v12 = vld [vmem:[%s5437_s25 + $0x51] sm:$0xff] }
 0x2ac   : > { %2079 = vrot.lane.b32.xlu0 %v1900_v52, %s5375_s26  ;;  %v6915_v52 = vld [vmem:[%s5437_s25 + $0x49] sm:$0xff] }
 0x2ae   : > { %v5086_v29 = vpop.f32.mrb[6].mxu1 }
 0x2af   : > { %2085 = vrot.lane.b32.xlu1 %v5086_v29, %s5375_s26  ;;  %v1910_v14 = vpop.f32.mrb[7].mxu1  ;;  %v6922_v29 = vld [vmem:[%s5437_s25 + $0x69] sm:$0xff] }
 0x2b0   : > { %2083 = vrot.lane.b32.xlu0 %v1910_v14, %s5375_s26  ;;  %v6925_v14 = vld [vmem:[%s5437_s25 + $0x61] sm:$0xff] }
 0x2b2   : > { %v5089_v3 = vpop.f32.mrb[8].mxu1 }
 0x2b3   : > { %2089 = vrot.lane.b32.xlu1 %v5089_v3, %s5375_s26  ;;  %v1920_v8 = vpop.f32.mrb[9].mxu1  ;;  %v6932_v3 = vld [vmem:[%s5437_s25 + $0x81] sm:$0xff] }
 0x2b4   : > { %2087 = vrot.lane.b32.xlu0 %v1920_v8, %s5375_s26  ;;  %v6935_v8 = vld [vmem:[%s5437_s25 + $0x79] sm:$0xff] }
 0x2b6   : > { %v5092_v9 = vpop.f32.mrb[10].mxu1 }
 0x2b7   : > { %2093 = vrot.lane.b32.xlu1 %v5092_v9, %s5375_s26  ;;  %v1930_v49 = vpop.f32.mrb[11].mxu1  ;;  %v6942_v9 = vld [vmem:[%s5437_s25 + $0x99] sm:$0xff] }
 0x2b8   : > { %2091 = vrot.lane.b32.xlu0 %v1930_v49, %s5375_s26  ;;  %v6945_v49 = vld [vmem:[%s5437_s25 + $0x91] sm:$0xff] }
 0x2bb   : > { %v5095_v36 = vpop.f32.mrb[12].mxu1 }
 0x2bc   : > { %2097 = vrot.lane.b32.xlu1 %v5095_v36, %s5375_s26  ;;  %v1940_v44 = vpop.f32.mrb[13].mxu1  ;;  %v6952_v36 = vld [vmem:[%s5437_s25 + $0xb1] sm:$0xff] }
 0x2bd   : > { %2095 = vrot.lane.b32.xlu0 %v1940_v44, %s5375_s26  ;;  %v6955_v44 = vld [vmem:[%s5437_s25 + $0xa9] sm:$0xff] }
 0x2bf   : > { %v5098_v35 = vpop.f32.mrb[14].mxu1 }
 0x2c0   : > { %2101 = vrot.lane.b32.xlu1 %v5098_v35, %s5375_s26  ;;  %v1950_v39 = vpop.f32.mrb[15].mxu1  ;;  %v6962_v35 = vld [vmem:[%s5437_s25 + $0xc9] sm:$0xff] }
 0x2c1   : > { %2099 = vrot.lane.b32.xlu0 %v1950_v39, %s5375_s26  ;;  %v6965_v39 = vld [vmem:[%s5437_s25 + $0xc1] sm:$0xff] }
 0x2c3   : > { %v5101_v40 = vpop.f32.mrb[16].mxu1 }
 0x2c4   : > { %2105 = vrot.lane.b32.xlu1 %v5101_v40, %s5375_s26  ;;  %v1960_v48 = vpop.f32.mrb[17].mxu1  ;;  %v6972_v40 = vld [vmem:[%s5437_s25 + $0xe1] sm:$0xff] }
 0x2c5   : > { %2103 = vrot.lane.b32.xlu0 %v1960_v48, %s5375_s26  ;;  %v6975_v48 = vld [vmem:[%s5437_s25 + $0xd9] sm:$0xff] }
 0x2c7   : > { %v5104_v51 = vpop.f32.mrb[18].mxu1 }
 0x2c8   : > { %2109 = vrot.lane.b32.xlu1 %v5104_v51, %s5375_s26  ;;  %v1970_v45 = vpop.f32.mrb[19].mxu1  ;;  %v6982_v51 = vld [vmem:[%s5437_s25 + $0xf9] sm:$0xff] }
 0x2c9   : > { %2107 = vrot.lane.b32.xlu0 %v1970_v45, %s5375_s26  ;;  %v6985_v45 = vld [vmem:[%s5437_s25 + $0xf1] sm:$0xff] }
 0x2cb   : > { %v5107_v28 = vpop.f32.mrb[20].mxu1 }
 0x2cc   : > { %2113 = vrot.lane.b32.xlu1 %v5107_v28, %s5375_s26  ;;  %v1980_v57 = vpop.f32.mrb[21].mxu1  ;;  %v6992_v28 = vld [vmem:[%s5437_s25 + $0x111] sm:$0xff] }
 0x2cd   : > { %2111 = vrot.lane.b32.xlu0 %v1980_v57, %s5375_s26  ;;  %v6995_v57 = vld [vmem:[%s5437_s25 + $0x109] sm:$0xff] }
 0x2cf   : > { %v5110_v23 = vpop.f32.mrb[22].mxu1 }
 0x2d0   : > { %2117 = vrot.lane.b32.xlu1 %v5110_v23, %s5375_s26  ;;  %v1990_v61 = vpop.f32.mrb[23].mxu1  ;;  %v7002_v23 = vld [vmem:[%s5437_s25 + $0x129] sm:$0xff] }
 0x2d1   : > { %2115 = vrot.lane.b32.xlu0 %v1990_v61, %s5375_s26  ;;  %v7007_v61 = vld [vmem:[%s5437_s25 + $0x121] sm:$0xff] }
 0x2d2   : > { %8476 = vst [vmem:[#allocation26_spill] sm:$0xff] %v7007_v61 }
 0x2d3   : > { %v5113_v56 = vpop.f32.mrb[24].mxu1 }
 0x2d4   : > { %2121 = vrot.lane.b32.xlu1 %v5113_v56, %s5375_s26  ;;  %v2000_v54 = vpop.f32.mrb[25].mxu1  ;;  %v4814_v56 = vld [vmem:[%s5723_s4 + $0x30] sm:$0xff] }
 0x2d5   : > { %2119 = vrot.lane.b32.xlu0 %v2000_v54, %s5375_s26  ;;  %v4815_v54 = vld [vmem:[%s5723_s4 + $0x38] sm:$0xff] }
 0x2d7   : > { %v5116_v30 = vpop.f32.mrb[26].mxu1 }
 0x2d8   : > { %2125 = vrot.lane.b32.xlu1 %v5116_v30, %s5375_s26  ;;  %v2010_v33 = vpop.f32.mrb[27].mxu1  ;;  %v5239_v30 = vpack.c.bf16 %v4815_v54, %v4814_v56 }
 0x2d9   : > { %2123 = vrot.lane.b32.xlu0 %v2010_v33, %s5375_s26  ;;  %v7016_v33 = vld [vmem:[%s5437_s25 + $0x141] sm:$0xff] }
 0x2da   : > { %8477 = vst [vmem:[#allocation43_spill] sm:$0xff] %v7016_v33  ;;  %5240 = vmatprep.subr.bf16.mxu1 %v5239_v30 }
 0x2db   : > { %v5119_v31 = vpop.f32.mrb[28].mxu1  ;;  %5242 = vmatpush3.bf16.msra.mxu1 %v5239_v30  ;;  %v4750_v30 = vld [vmem:[%s5437_s25 + $0x1a] sm:$0xff] }
 0x2dc   : > { %2129 = vrot.lane.b32.xlu1 %v5119_v31, %s5375_s26  ;;  %v2020_v16 = vpop.f32.mrb[29].mxu1  ;;  %v7025_v31 = vld [vmem:[%s5437_s25 + $0x139] sm:$0xff] }
 0x2dd   : > { %2127 = vrot.lane.b32.xlu0 %v2020_v16, %s5375_s26  ;;  %8478 = vst [vmem:[#allocation27_spill] sm:$0xff] %v7025_v31  ;;  %v7030_v16 = vld [vmem:[%s7022_s11] ss:$0 sm:$0xff] }
 0x2df   : > { %v5122_v5 = vpop.f32.mrb[30].mxu1 }
 0x2e0   : > { %2133 = vrot.lane.b32.xlu1 %v5122_v5, %s5375_s26  ;;  %v2030_v46 = vpop.f32.mrb[31].mxu1 }
 0x2e1   : > { %2131 = vrot.lane.b32.xlu0 %v2030_v46, %s5375_s26  ;;  %v4751_v46 = vld [vmem:[%s5437_s25 + $0x22] sm:$0xff] }
 0x2e4   : > { %2434 = vrot.lane.b32.xlu1 %v6892_v13, %s5375_s26 }
 0x2e5   : > { %2432 = vrot.lane.b32.xlu0 %v6895_v18, %s5375_s26 }
 0x2e8   : > { %2438 = vrot.lane.b32.xlu1 %v6902_v58, %s5375_s26 }
 0x2e9   : > { %2436 = vrot.lane.b32.xlu0 %v6905_v43, %s5375_s26 }
 0x2ec   : > { %2442 = vrot.lane.b32.xlu1 %v6912_v12, %s5375_s26 }
 0x2ed   : > { %2440 = vrot.lane.b32.xlu0 %v6915_v52, %s5375_s26 }
 0x2f0   : > { %2446 = vrot.lane.b32.xlu1 %v6922_v29, %s5375_s26 }
 0x2f1   : > { %2444 = vrot.lane.b32.xlu0 %v6925_v14, %s5375_s26 }
 0x2f4   : > { %2450 = vrot.lane.b32.xlu1 %v6932_v3, %s5375_s26 }
 0x2f5   : > { %2448 = vrot.lane.b32.xlu0 %v6935_v8, %s5375_s26 }
 0x2f8   : > { %2454 = vrot.lane.b32.xlu1 %v6942_v9, %s5375_s26 }
 0x2f9   : > { %2452 = vrot.lane.b32.xlu0 %v6945_v49, %s5375_s26 }
 0x2fc   : > { %2458 = vrot.lane.b32.xlu1 %v6952_v36, %s5375_s26 }
 0x2fd   : > { %2456 = vrot.lane.b32.xlu0 %v6955_v44, %s5375_s26 }
 0x300   : > { %2462 = vrot.lane.b32.xlu1 %v6962_v35, %s5375_s26 }
 0x301   : > { %2460 = vrot.lane.b32.xlu0 %v6965_v39, %s5375_s26 }
 0x304   : > { %2466 = vrot.lane.b32.xlu1 %v6972_v40, %s5375_s26 }
 0x305   : > { %2464 = vrot.lane.b32.xlu0 %v6975_v48, %s5375_s26 }
 0x308   : > { %2470 = vrot.lane.b32.xlu1 %v6982_v51, %s5375_s26 }
 0x309   : > { %2468 = vrot.lane.b32.xlu0 %v6985_v45, %s5375_s26 }
 0x30c   : > { %2474 = vrot.lane.b32.xlu1 %v6992_v28, %s5375_s26 }
 0x30d   : > { %2472 = vrot.lane.b32.xlu0 %v6995_v57, %s5375_s26 }
 0x310   : > { %2478 = vrot.lane.b32.xlu1 %v7002_v23, %s5375_s26 }
 0x311   : > { %2476 = vrot.lane.b32.xlu0 %v7007_v61, %s5375_s26 }
 0x314   : > { %2482 = vrot.lane.b32.xlu1 %v7016_v33, %s5375_s26 }
 0x315   : > { %2480 = vrot.lane.b32.xlu0 %v7025_v31, %s5375_s26  ;;  %v2074_v5 = vpop.permute.xlu1 %2073 }
 0x316   : > { %v2168_v56 = vsel %vm780_vm0, %v6657_v26, %v2074_v5  ;;  %v2072_v54 = vpop.permute.xlu0 %2071 }
 0x317   : > { %v2206_v33 = vadd.f32 %v7030_v16, %v2168_v56  ;;  %v2167_v31 = vsel %vm780_vm0, %v6665_v24, %v2072_v54 }
 0x318   : > { %v2205_v61 = vadd.f32 %v7030_v16, %v2167_v31  ;;  %3302 = vrot.lane.b32.xlu1 %v4751_v46, %s5375_s26 }
 0x319   : > { %2238 = vst.msk [vmem:[%s7038_s13 + $0x8] sm:$0xff] %vm813_vm1, %v2206_v33  ;;  %3300 = vrot.lane.b32.xlu0 %v4750_v30, %s5375_s26  ;;  %v2078_v26 = vpop.permute.xlu1 %2077 }
 0x31a   : > { %2237 = vst.msk [vmem:[%s7038_s13] sm:$0xff] %vm813_vm1, %v2205_v61  ;;  %v2170_v5 = vsel %vm780_vm0, %v6674_v41, %v2078_v26  ;;  %v2076_v56 = vpop.permute.xlu0 %2075  ;;  %v4783_v41 = vld [vmem:[%s5437_s25 + $0x3a] sm:$0xff] }
 0x31b   : > { %v2208_v24 = vadd.f32 %v7030_v16, %v2170_v5  ;;  %v2169_v31 = vsel %vm780_vm0, %v6682_v19, %v2076_v56  ;;  %v4782_v19 = vld [vmem:[%s5437_s25 + $0x32] sm:$0xff] }
 0x31c   : > { %v2207_v46 = vadd.f32 %v7030_v16, %v2169_v31  ;;  %3398 = vrot.lane.b32.xlu1 %v6902_v58, %s5376_s27 }
 0x31d   : > { %2240 = vst.msk [vmem:[%s7038_s13 + $0x28] sm:$0xff] %vm813_vm1, %v2208_v24  ;;  %3396 = vrot.lane.b32.xlu0 %v6905_v43, %s5376_s27  ;;  %v2082_v61 = vpop.permute.xlu1 %2081 }
 0x31e   : > { %2239 = vst.msk [vmem:[%s7038_s13 + $0x20] sm:$0xff] %vm813_vm1, %v2207_v46  ;;  %v2172_v33 = vsel %vm780_vm0, %v6692_v63, %v2082_v61  ;;  %v2080_v54 = vpop.permute.xlu0 %2079 }
 0x31f   : > { %v2210_v30 = vadd.f32 %v7030_v16, %v2172_v33  ;;  %v2171_v26 = vsel %vm780_vm0, %v6700_v1, %v2080_v54 }
 0x320   : > { %v2209_v5 = vadd.f32 %v7030_v16, %v2171_v26  ;;  %3526 = vrot.lane.b32.xlu1 %v4783_v41, %s5377_s5 }
 0x321   : > { %2242 = vst.msk [vmem:[%s7038_s13 + $0x48] sm:$0xff] %vm813_vm1, %v2210_v30  ;;  %3524 = vrot.lane.b32.xlu0 %v4782_v19, %s5377_s5  ;;  %v2086_v56 = vpop.permute.xlu1 %2085 }
 0x322   : > { %2241 = vst.msk [vmem:[%s7038_s13 + $0x40] sm:$0xff] %vm813_vm1, %v2209_v5  ;;  %v2174_v63 = vsel %vm780_vm0, %v6710_v10, %v2086_v56  ;;  %v2084_v24 = vpop.permute.xlu0 %2083 }
 0x323   : > { %v2212_v31 = vadd.f32 %v7030_v16, %v2174_v63  ;;  %v2173_v1 = vsel %vm780_vm0, %v6718_v62, %v2084_v24 }
 0x324   : > { %v2211_v46 = vadd.f32 %v7030_v16, %v2173_v1  ;;  %3306 = vrot.lane.b32.xlu1 %v4783_v41, %s5375_s26 }
 0x325   : > { %2244 = vst.msk [vmem:[%s7038_s13 + $0x68] sm:$0xff] %vm813_vm1, %v2212_v31  ;;  %3304 = vrot.lane.b32.xlu0 %v4782_v19, %s5375_s26  ;;  %v2090_v61 = vpop.permute.xlu1 %2089 }
 0x326   : > { %2243 = vst.msk [vmem:[%s7038_s13 + $0x60] sm:$0xff] %vm813_vm1, %v2211_v46  ;;  %v2176_v10 = vsel %vm780_vm0, %v6728_v4, %v2090_v61  ;;  %v2088_v33 = vpop.permute.xlu0 %2087  ;;  %v4785_v4 = vld [vmem:[%s5437_s25 + $0x52] sm:$0xff] }
 0x327   : > { %v2214_v62 = vadd.f32 %v7030_v16, %v2176_v10  ;;  %v2175_v54 = vsel %vm780_vm0, %v6736_v20, %v2088_v33  ;;  %v4784_v20 = vld [vmem:[%s5437_s25 + $0x4a] sm:$0xff] }
 0x328   : > { %v2213_v41 = vadd.f32 %v7030_v16, %v2175_v54  ;;  %3402 = vrot.lane.b32.xlu1 %v6912_v12, %s5376_s27  ;;  %v4787_v54 = vld [vmem:[%s5437_s25 + $0x6a] sm:$0xff] }
 0x329   : > { %2246 = vst.msk [vmem:[%s7038_s13 + $0x88] sm:$0xff] %vm813_vm1, %v2214_v62  ;;  %3400 = vrot.lane.b32.xlu0 %v6915_v52, %s5376_s27  ;;  %v2094_v19 = vpop.permute.xlu1 %2093 }
 0x32a   : > { %2245 = vst.msk [vmem:[%s7038_s13 + $0x80] sm:$0xff] %vm813_vm1, %v2213_v41  ;;  %v2178_v30 = vsel %vm780_vm0, %v6746_v21, %v2094_v19  ;;  %v2092_v26 = vpop.permute.xlu0 %2091  ;;  %v4786_v41 = vld [vmem:[%s5437_s25 + $0x62] sm:$0xff] }
 0x32b   : > { %v2216_v5 = vadd.f32 %v7030_v16, %v2178_v30  ;;  %v2177_v56 = vsel %vm780_vm0, %v6754_v34, %v2092_v26 }
 0x32c   : > { %v2215_v63 = vadd.f32 %v7030_v16, %v2177_v56  ;;  %3530 = vrot.lane.b32.xlu1 %v4785_v4, %s5377_s5 }
 0x32d   : > { %2248 = vst.msk [vmem:[%s7038_s13 + $0xa8] sm:$0xff] %vm813_vm1, %v2216_v5  ;;  %3528 = vrot.lane.b32.xlu0 %v4784_v20, %s5377_s5 }
 0x32e   : > { %2247 = vst.msk [vmem:[%s7038_s13 + $0xa0] sm:$0xff] %vm813_vm1, %v2215_v63  ;;  %v2098_v21 = vpop.permute.xlu1 %2097 }
 0x32f   : > { %v2180_v24 = vsel %vm780_vm0, %v6764_v2, %v2098_v21  ;;  %v2096_v31 = vpop.permute.xlu0 %2095 }
 0x330   : > { %v2218_v1 = vadd.f32 %v7030_v16, %v2180_v24  ;;  %v2179_v34 = vsel %vm780_vm0, %v6772_v15, %v2096_v31  ;;  %3310 = vrot.lane.b32.xlu1 %v4785_v4, %s5375_s26 }
 0x331   : > { %v2217_v46 = vadd.f32 %v7030_v16, %v2179_v34  ;;  %3308 = vrot.lane.b32.xlu0 %v4784_v20, %s5375_s26  ;;  %v4789_v34 = vld [vmem:[%s5437_s25 + $0x82] sm:$0xff] }
 0x332   : > { %2250 = vst.msk [vmem:[%s7038_s13 + $0xc8] sm:$0xff] %vm813_vm1, %v2218_v1  ;;  %v2102_v61 = vpop.permute.xlu1 %2101 }
 0x333   : > { %2249 = vst.msk [vmem:[%s7038_s13 + $0xc0] sm:$0xff] %vm813_vm1, %v2217_v46  ;;  %v2182_v2 = vsel %vm780_vm0, %v6782_v11, %v2102_v61  ;;  %v2100_v10 = vpop.permute.xlu0 %2099  ;;  %v4788_v46 = vld [vmem:[%s5437_s25 + $0x7a] sm:$0xff] }
 0x334   : > { %v2220_v33 = vadd.f32 %v7030_v16, %v2182_v2  ;;  %v2181_v15 = vsel %vm780_vm0, %v6790_v27, %v2100_v10  ;;  %3406 = vrot.lane.b32.xlu1 %v6922_v29, %s5376_s27 }
 0x335   : > { %v2219_v62 = vadd.f32 %v7030_v16, %v2181_v15  ;;  %3404 = vrot.lane.b32.xlu0 %v6925_v14, %s5376_s27 }
 0x336   : > { %2252 = vst.msk [vmem:[%s7038_s13 + $0xe8] sm:$0xff] %vm813_vm1, %v2220_v33  ;;  %v2106_v11 = vpop.permute.xlu1 %2105 }
 0x337   : > { %2251 = vst.msk [vmem:[%s7038_s13 + $0xe0] sm:$0xff] %vm813_vm1, %v2219_v62  ;;  %v2184_v27 = vsel %vm780_vm0, %v6800_v55, %v2106_v11  ;;  %v2104_v19 = vpop.permute.xlu0 %2103 }
 0x338   : > { %v2222_v4 = vadd.f32 %v7030_v16, %v2184_v27  ;;  %v2183_v30 = vsel %vm780_vm0, %v6808_v53, %v2104_v19  ;;  %3534 = vrot.lane.b32.xlu1 %v4787_v54, %s5377_s5 }
 0x339   : > { %v2221_v26 = vadd.f32 %v7030_v16, %v2183_v30  ;;  %3532 = vrot.lane.b32.xlu0 %v4786_v41, %s5377_s5  ;;  %v4791_v30 = vld [vmem:[%s5437_s25 + $0x9a] sm:$0xff] }
 0x33a   : > { %2254 = vst.msk [vmem:[%s7038_s13 + $0x108] sm:$0xff] %vm813_vm1, %v2222_v4  ;;  %v2110_v20 = vpop.permute.xlu1 %2109 }
 0x33b   : > { %2253 = vst.msk [vmem:[%s7038_s13 + $0x100] sm:$0xff] %vm813_vm1, %v2221_v26  ;;  %v2186_v55 = vsel %vm780_vm0, %v6818_v50, %v2110_v20  ;;  %v2108_v5 = vpop.permute.xlu0 %2107  ;;  %v4790_v26 = vld [vmem:[%s5437_s25 + $0x92] sm:$0xff] }
 0x33c   : > { %v2224_v56 = vadd.f32 %v7030_v16, %v2186_v55  ;;  %v2185_v53 = vsel %vm780_vm0, %v6826_v60, %v2108_v5  ;;  %3314 = vrot.lane.b32.xlu1 %v4787_v54, %s5375_s26 }
 0x33d   : > { %v2223_v63 = vadd.f32 %v7030_v16, %v2185_v53  ;;  %3312 = vrot.lane.b32.xlu0 %v4786_v41, %s5375_s26 }
 0x33e   : > { %2256 = vst.msk [vmem:[%s7038_s13 + $0x128] sm:$0xff] %vm813_vm1, %v2224_v56  ;;  %v2114_v21 = vpop.permute.xlu1 %2113 }
 0x33f   : > { %2255 = vst.msk [vmem:[%s7038_s13 + $0x120] sm:$0xff] %vm813_vm1, %v2223_v63  ;;  %v2188_v50 = vsel %vm780_vm0, %v6833_v6, %v2114_v21  ;;  %v2112_v24 = vpop.permute.xlu0 %2111 }
 0x340   : > { %v2226_v31 = vadd.f32 %v7030_v16, %v2188_v50  ;;  %v2187_v60 = vsel %vm780_vm0, %v6836_v7, %v2112_v24  ;;  %3410 = vrot.lane.b32.xlu1 %v6932_v3, %s5376_s27 }
 0x341   : > { %v2225_v1 = vadd.f32 %v7030_v16, %v2187_v60  ;;  %3408 = vrot.lane.b32.xlu0 %v6935_v8, %s5376_s27 }
 0x342   : > { %2258 = vst.msk [vmem:[%s7038_s13 + $0x148] sm:$0xff] %vm813_vm1, %v2226_v31  ;;  %v2118_v6 = vpop.permute.xlu1 %2117 }
 0x343   : > { %2257 = vst.msk [vmem:[%s7038_s13 + $0x140] sm:$0xff] %vm813_vm1, %v2225_v1  ;;  %v2190_v7 = vsel %vm780_vm0, %v6839_v37, %v2118_v6  ;;  %v2116_v61 = vpop.permute.xlu0 %2115 }
 0x344   : > { %v2228_v2 = vadd.f32 %v7030_v16, %v2190_v7  ;;  %v2189_v10 = vsel %vm780_vm0, %v6841_v25, %v2116_v61  ;;  %3538 = vrot.lane.b32.xlu1 %v4789_v34, %s5377_s5  ;;  %v4795_v7 = vld [vmem:[%s5437_s25 + $0xca] sm:$0xff] }
 0x345   : > { %v2227_v33 = vadd.f32 %v7030_v16, %v2189_v10  ;;  %3536 = vrot.lane.b32.xlu0 %v4788_v46, %s5377_s5 }
 0x346   : > { %2260 = vst.msk [vmem:[%s7038_s13 + $0x168] sm:$0xff] %vm813_vm1, %v2228_v2  ;;  %v2122_v15 = vpop.permute.xlu1 %2121  ;;  %v4794_v2 = vld [vmem:[%s5437_s25 + $0xc2] sm:$0xff] }
 0x347   : > { %2259 = vst.msk [vmem:[%s7038_s13 + $0x160] sm:$0xff] %vm813_vm1, %v2227_v33  ;;  %v2192_v37 = vsel %vm780_vm0, %v6843_v32, %v2122_v15  ;;  %v2120_v62 = vpop.permute.xlu0 %2119 }
 0x348   : > { %v2230_v54 = vadd.f32 %v7030_v16, %v2192_v37  ;;  %v2191_v25 = vsel %vm780_vm0, %v6845_v47, %v2120_v62  ;;  %3318 = vrot.lane.b32.xlu1 %v4789_v34, %s5375_s26 }
 0x349   : > { %v2229_v11 = vadd.f32 %v7030_v16, %v2191_v25  ;;  %3316 = vrot.lane.b32.xlu0 %v4788_v46, %s5375_s26 }
 0x34a   : > { %2262 = vst.msk [vmem:[%s7038_s13 + $0x188] sm:$0xff] %vm813_vm1, %v2230_v54  ;;  %v2126_v41 = vpop.permute.xlu1 %2125  ;;  %v4797_v54 = vld [vmem:[%s5437_s25 + $0xe2] sm:$0xff] }
 0x34b   : > { %2261 = vst.msk [vmem:[%s7038_s13 + $0x180] sm:$0xff] %vm813_vm1, %v2229_v11  ;;  %v2194_v32 = vsel %vm780_vm0, %v6847_v42, %v2126_v41  ;;  %v2124_v27 = vpop.permute.xlu0 %2123  ;;  %v4796_v11 = vld [vmem:[%s5437_s25 + $0xda] sm:$0xff] }
 0x34c   : > { %v2232_v19 = vadd.f32 %v7030_v16, %v2194_v32  ;;  %v2193_v47 = vsel %vm780_vm0, %v6849_v59, %v2124_v27  ;;  %3414 = vrot.lane.b32.xlu1 %v6942_v9, %s5376_s27 }
 0x34d   : > { %v2231_v4 = vadd.f32 %v7030_v16, %v2193_v47  ;;  %3412 = vrot.lane.b32.xlu0 %v6945_v49, %s5376_s27 }
 0x34e   : > { %2264 = vst.msk [vmem:[%s7038_s13 + $0x1a8] sm:$0xff] %vm813_vm1, %v2232_v19  ;;  %v2130_v42 = vpop.permute.xlu1 %2129 }
 0x34f   : > { %2263 = vst.msk [vmem:[%s7038_s13 + $0x1a0] sm:$0xff] %vm813_vm1, %v2231_v4  ;;  %v2196_v59 = vsel %vm780_vm0, %v6851_v17, %v2130_v42  ;;  %v2128_v20 = vpop.permute.xlu0 %2127  ;;  %v4799_v4 = vld [vmem:[%s5437_s25 + $0xfa] sm:$0xff]  ;;  %v4798_v42 = vld [vmem:[%s5437_s25 + $0xf2] sm:$0xff] }
 0x350   : > { %v2234_v55 = vadd.f32 %v7030_v16, %v2196_v59  ;;  %v2195_v5 = vsel %vm780_vm0, %v6853_v38, %v2128_v20  ;;  %3542 = vrot.lane.b32.xlu1 %v4791_v30, %s5377_s5 }
 0x351   : > { %v2233_v56 = vadd.f32 %v7030_v16, %v2195_v5  ;;  %3540 = vrot.lane.b32.xlu0 %v4790_v26, %s5377_s5 }
 0x352   : > { %2266 = vst.msk [vmem:[%s7038_s13 + $0x1c8] sm:$0xff] %vm813_vm1, %v2234_v55  ;;  %v2134_v53 = vpop.permute.xlu1 %2133 }
 0x353   : > { %2265 = vst.msk [vmem:[%s7038_s13 + $0x1c0] sm:$0xff] %vm813_vm1, %v2233_v56  ;;  %v2198_v17 = vsel %vm780_vm0, %v6855_v0, %v2134_v53  ;;  %v2132_v63 = vpop.permute.xlu0 %2131  ;;  %v4793_v0 = vld [vmem:[%s5437_s25 + $0xb2] sm:$0xff] }
 0x354   : > { %v2236_v38 = vadd.f32 %v7030_v16, %v2198_v17  ;;  %v2197_v21 = vsel %vm780_vm0, %v6857_v22, %v2132_v63  ;;  %3322 = vrot.lane.b32.xlu1 %v4791_v30, %s5375_s26  ;;  %v4801_v56 = vld [vmem:[%s5437_s25 + $0x112] sm:$0xff]  ;;  %v4800_v17 = vld [vmem:[%s5437_s25 + $0x10a] sm:$0xff] }
 0x355   : > { %v2235_v50 = vadd.f32 %v7030_v16, %v2197_v21  ;;  %3320 = vrot.lane.b32.xlu0 %v4790_v26, %s5375_s26  ;;  %v4792_v16 = vld [vmem:[%s5437_s25 + $0xaa] sm:$0xff] }
 0x356   : > { %2268 = vst.msk [vmem:[%s7038_s13 + $0x1e8] sm:$0xff] %vm813_vm1, %v2236_v38  ;;  %v7251_v24 = vpop.permute.xlu1 %2434 }
 0x357   : > { %2267 = vst.msk [vmem:[%s7038_s13 + $0x1e0] sm:$0xff] %vm813_vm1, %v2235_v50  ;;  %v7255_v31 = vpop.permute.xlu0 %2432 }
 0x358   : > { %3418 = vrot.lane.b32.xlu1 %v6952_v36, %s5376_s27 }
 0x359   : > { %3416 = vrot.lane.b32.xlu0 %v6955_v44, %s5376_s27 }
 0x35a   : > { %v7262_v22 = vpop.permute.xlu1 %2438 }
 0x35b   : > { %v7265_v60 = vpop.permute.xlu0 %2436 }
 0x35c   : > { %3546 = vrot.lane.b32.xlu1 %v4793_v0, %s5377_s5 }
 0x35d   : > { %3544 = vrot.lane.b32.xlu0 %v4792_v16, %s5377_s5 }
 0x35e   : > { %v7269_v1 = vpop.permute.xlu1 %2442 }
 0x35f   : > { %v7271_v34 = vpop.permute.xlu0 %2440 }
 0x360   : > { %3326 = vrot.lane.b32.xlu1 %v4793_v0, %s5375_s26 }
 0x361   : > { %3324 = vrot.lane.b32.xlu0 %v4792_v16, %s5375_s26 }
 0x362   : > { %v7275_v6 = vpop.permute.xlu1 %2446 }
 0x363   : > { %v7277_v46 = vpop.permute.xlu0 %2444 }
 0x364   : > { %3422 = vrot.lane.b32.xlu1 %v6962_v35, %s5376_s27 }
 0x365   : > { %3420 = vrot.lane.b32.xlu0 %v6965_v39, %s5376_s27 }
 0x366   : > { %v7284_v61 = vpop.permute.xlu1 %2450 }
 0x367   : > { %v7287_v10 = vpop.permute.xlu0 %2448 }
 0x368   : > { %3550 = vrot.lane.b32.xlu1 %v4795_v7, %s5377_s5 }
 0x369   : > { %3548 = vrot.lane.b32.xlu0 %v4794_v2, %s5377_s5 }
 0x36a   : > { %v7291_v33 = vpop.permute.xlu1 %2454 }
 0x36b   : > { %v7293_v15 = vpop.permute.xlu0 %2452 }
 0x36c   : > { %3330 = vrot.lane.b32.xlu1 %v4795_v7, %s5375_s26 }
 0x36d   : > { %3328 = vrot.lane.b32.xlu0 %v4794_v2, %s5375_s26 }
 0x36e   : > { %v7297_v37 = vpop.permute.xlu1 %2458 }
 0x36f   : > { %v7299_v62 = vpop.permute.xlu0 %2456 }
 0x370   : > { %3426 = vrot.lane.b32.xlu1 %v6972_v40, %s5376_s27 }
 0x371   : > { %3424 = vrot.lane.b32.xlu0 %v6975_v48, %s5376_s27 }
 0x372   : > { %v7306_v25 = vpop.permute.xlu1 %2462 }
 0x373   : > { %v7309_v41 = vpop.permute.xlu0 %2460 }
 0x374   : > { %3554 = vrot.lane.b32.xlu1 %v4797_v54, %s5377_s5 }
 0x375   : > { %3552 = vrot.lane.b32.xlu0 %v4796_v11, %s5377_s5 }
 0x376   : > { %v7313_v32 = vpop.permute.xlu1 %2466 }
 0x377   : > { %v7315_v27 = vpop.permute.xlu0 %2464 }
 0x378   : > { %3334 = vrot.lane.b32.xlu1 %v4797_v54, %s5375_s26 }
 0x379   : > { %3332 = vrot.lane.b32.xlu0 %v4796_v11, %s5375_s26 }
 0x37a   : > { %v7319_v19 = vpop.permute.xlu1 %2470 }
 0x37b   : > { %v7321_v47 = vpop.permute.xlu0 %2468 }
 0x37c   : > { %3430 = vrot.lane.b32.xlu1 %v6982_v51, %s5376_s27 }
 0x37d   : > { %3428 = vrot.lane.b32.xlu0 %v6985_v45, %s5376_s27 }
 0x37e   : > { %v7328_v30 = vpop.permute.xlu1 %2474 }
 0x37f   : > { %8479 = vst [vmem:[#allocation72_spill] sm:$0xff] %v7328_v30  ;;  %v7331_v26 = vpop.permute.xlu0 %2472 }
 0x380   : > { %8480 = vst [vmem:[#allocation73_spill] sm:$0xff] %v7331_v26  ;;  %3558 = vrot.lane.b32.xlu1 %v4799_v4, %s5377_s5  ;;  %v5333_v26 = vld [vmem:[%s5437_s25 + $0x109] sm:$0xff] }
 0x381   : > { %3556 = vrot.lane.b32.xlu0 %v4798_v42, %s5377_s5 }
 0x382   : > { %v7335_v59 = vpop.permute.xlu1 %2478 }
 0x383   : > { %8481 = vst [vmem:[#allocation6_spill] sm:$0xff] %v7335_v59  ;;  %v7337_v20 = vpop.permute.xlu0 %2476 }
 0x384   : > { %8482 = vst [vmem:[#allocation7_spill] sm:$0xff] %v7337_v20  ;;  %3338 = vrot.lane.b32.xlu1 %v4799_v4, %s5375_s26 }
 0x385   : > { %3336 = vrot.lane.b32.xlu0 %v4798_v42, %s5375_s26  ;;  %v4803_v42 = vld [vmem:[%s5437_s25 + $0x12a] sm:$0xff] }
 0x386   : > { %v7341_v55 = vpop.permute.xlu1 %2482 }
 0x387   : > { %8483 = vst [vmem:[#allocation44_spill] sm:$0xff] %v7341_v55  ;;  %v7343_v5 = vpop.permute.xlu0 %2480 }
 0x388   : > { %8484 = vst [vmem:[#allocation28_spill] sm:$0xff] %v7343_v5  ;;  %3434 = vrot.lane.b32.xlu1 %v6992_v28, %s5376_s27 }
 0x389   : > { %3432 = vrot.lane.b32.xlu0 %v6995_v57, %s5376_s27 }
 0x38a   : > { %v3303_v53 = vpop.permute.xlu1 %3302 }
 0x38b   : > { %v3301_v63 = vpop.permute.xlu0 %3300  ;;  %v3621_v50 = vsel %vm780_vm0, %v6892_v13, %v3303_v53  ;;  %v8485_v13 = vld [vmem:[#allocation26_spill] sm:$0xff] }
 0x38c   : > { %3562 = vrot.lane.b32.xlu1 %v4801_v56, %s5377_s5  ;;  %v3620_v0 = vsel %vm780_vm0, %v6895_v18, %v3301_v63 }
 0x38d   : > { %3560 = vrot.lane.b32.xlu0 %v4800_v17, %s5377_s5 }
 0x38e   : > { %v3399_v38 = vpop.permute.xlu1 %3398 }
 0x38f   : > { %v3397_v21 = vpop.permute.xlu0 %3396  ;;  %v3653_v54 = vsel %vm813_vm1, %v3621_v50, %v3399_v38 }
 0x390   : > { %3342 = vrot.lane.b32.xlu1 %v4801_v56, %s5375_s26  ;;  %v3652_v7 = vsel %vm813_vm1, %v3620_v0, %v3397_v21  ;;  %v4802_v56 = vld [vmem:[%s5437_s25 + $0x122] sm:$0xff] }
 0x391   : > { %3340 = vrot.lane.b32.xlu0 %v4800_v17, %s5375_s26 }
 0x392   : > { %v3527_v16 = vpop.permute.xlu1 %3526 }
 0x393   : > { %v3525_v2 = vpop.permute.xlu0 %3524  ;;  %v3685_v4 = vsel %vm846_vm2, %v3653_v54, %v3527_v16 }
 0x394   : > { %v3684_v11 = vsel %vm846_vm2, %v3652_v7, %v3525_v2  ;;  %3438 = vrot.lane.b32.xlu1 %v7002_v23, %s5376_s27  ;;  %v8486_v2 = vld [vmem:[#allocation43_spill] sm:$0xff] }
 0x395   : > { %3436 = vrot.lane.b32.xlu0 %v8485_v13, %s5376_s27  ;;  %5179 = vmatprep.mubr.msk.f32.mxu1 %vm881_vm3, %v3684_v11  ;;  %v8487_v11 = vld [vmem:[#allocation27_spill] sm:$0xff] }
 0x396   : > { %v3307_v18 = vpop.permute.xlu1 %3306  ;;  %5180 = vmatmul.mubr.msk.f32.vlgmr.msra.gmra.mrb[32].mxu1 %vm881_vm3, %v3685_v4  ;;  %v4805_v4 = vld [vmem:[%s5437_s25 + $0x142] sm:$0xff] }
 0x397   : > { %v3305_v53 = vpop.permute.xlu0 %3304  ;;  %v3623_v63 = vsel %vm780_vm0, %v6902_v58, %v3307_v18 }
 0x398   : > { %3566 = vrot.lane.b32.xlu1 %v4803_v42, %s5377_s5  ;;  %v3622_v38 = vsel %vm780_vm0, %v6905_v43, %v3305_v53 }
 0x399   : > { %3564 = vrot.lane.b32.xlu0 %v4802_v56, %s5377_s5 }
 0x39a   : > { %v3403_v17 = vpop.permute.xlu1 %3402 }
 0x39b   : > { %v3401_v23 = vpop.permute.xlu0 %3400  ;;  %v3655_v16 = vsel %vm813_vm1, %v3623_v63, %v3403_v17 }
 0x39c   : > { %3346 = vrot.lane.b32.xlu1 %v4803_v42, %s5375_s26  ;;  %v3654_v50 = vsel %vm813_vm1, %v3622_v38, %v3401_v23  ;;  %v4804_v42 = vld [vmem:[%s5437_s25 + $0x13a] sm:$0xff] }
 0x39d   : > { %3344 = vrot.lane.b32.xlu0 %v4802_v56, %s5375_s26  ;;  %v7398_v23 = vld [vmem:[%s5437_s25 + $0x159] sm:$0xff] }
 0x39e   : > { %v3531_v21 = vpop.permute.xlu1 %3530 }
 0x39f   : > { %v3529_v0 = vpop.permute.xlu0 %3528  ;;  %v3687_v54 = vsel %vm846_vm2, %v3655_v16, %v3531_v21  ;;  %v7403_v21 = vld [vmem:[%s5437_s25 + $0x151] sm:$0xff] }
 0x3a0   : > { %v3686_v7 = vsel %vm846_vm2, %v3654_v50, %v3529_v0  ;;  %3442 = vrot.lane.b32.xlu1 %v8486_v2, %s5376_s27 }
 0x3a1   : > { %3440 = vrot.lane.b32.xlu0 %v8487_v11, %s5376_s27  ;;  %5182 = vmatprep.mubr.msk.f32.mxu1 %vm881_vm3, %v3686_v7 }
 0x3a2   : > { %v3311_v13 = vpop.permute.xlu1 %3310  ;;  %5183 = vmatmul.mubr.msk.f32.gmra.mrb[34].mxu1 %vm881_vm3, %v3687_v54  ;;  %v4807_v54 = vld [vmem:[%s5437_s25 + $0x15a] sm:$0xff] }
 0x3a3   : > { %v3309_v18 = vpop.permute.xlu0 %3308  ;;  %v3625_v17 = vsel %vm780_vm0, %v6912_v12, %v3311_v13 }
 0x3a4   : > { %3570 = vrot.lane.b32.xlu1 %v4805_v4, %s5377_s5  ;;  %v3624_v63 = vsel %vm780_vm0, %v6915_v52, %v3309_v18 }
 0x3a5   : > { %3568 = vrot.lane.b32.xlu0 %v4804_v42, %s5377_s5 }
 0x3a6   : > { %v3407_v56 = vpop.permute.xlu1 %3406 }
 0x3a7   : > { %v3405_v53 = vpop.permute.xlu0 %3404  ;;  %v3657_v16 = vsel %vm813_vm1, %v3625_v17, %v3407_v56 }
 0x3a8   : > { %3350 = vrot.lane.b32.xlu1 %v4805_v4, %s5375_s26  ;;  %v3656_v50 = vsel %vm813_vm1, %v3624_v63, %v3405_v53  ;;  %v4806_v4 = vld [vmem:[%s5437_s25 + $0x152] sm:$0xff] }
 0x3a9   : > { %3348 = vrot.lane.b32.xlu0 %v4804_v42, %s5375_s26  ;;  %v7424_v53 = vld [vmem:[%s5437_s25 + $0x171] sm:$0xff] }
 0x3aa   : > { %v3535_v38 = vpop.permute.xlu1 %3534 }
 0x3ab   : > { %v3533_v0 = vpop.permute.xlu0 %3532  ;;  %v3689_v2 = vsel %vm846_vm2, %v3657_v16, %v3535_v38  ;;  %v7429_v38 = vld [vmem:[%s5437_s25 + $0x169] sm:$0xff] }
 0x3ac   : > { %v3688_v7 = vsel %vm846_vm2, %v3656_v50, %v3533_v0  ;;  %3446 = vrot.lane.b32.xlu1 %v7398_v23, %s5376_s27 }
 0x3ad   : > { %3444 = vrot.lane.b32.xlu0 %v7403_v21, %s5376_s27  ;;  %5185 = vmatprep.mubr.msk.f32.mxu1 %vm881_vm3, %v3688_v7 }
 0x3ae   : > { %v3315_v11 = vpop.permute.xlu1 %3314  ;;  %5186 = vmatmul.mubr.msk.f32.gmra.mrb[36].mxu1 %vm881_vm3, %v3689_v2 }
 0x3af   : > { %v3313_v13 = vpop.permute.xlu0 %3312  ;;  %v3627_v56 = vsel %vm780_vm0, %v6922_v29, %v3315_v11 }
 0x3b0   : > { %3574 = vrot.lane.b32.xlu1 %v4807_v54, %s5377_s5  ;;  %v3626_v17 = vsel %vm780_vm0, %v6925_v14, %v3313_v13 }
 0x3b1   : > { %3572 = vrot.lane.b32.xlu0 %v4806_v4, %s5377_s5 }
 0x3b2   : > { %v3411_v42 = vpop.permute.xlu1 %3410 }
 0x3b3   : > { %v3409_v18 = vpop.permute.xlu0 %3408  ;;  %v3659_v16 = vsel %vm813_vm1, %v3627_v56, %v3411_v42 }
 0x3b4   : > { %3354 = vrot.lane.b32.xlu1 %v4807_v54, %s5375_s26  ;;  %v3658_v50 = vsel %vm813_vm1, %v3626_v17, %v3409_v18  ;;  %v4809_v54 = vld [vmem:[%s5437_s25 + $0x172] sm:$0xff]  ;;  %v7450_v17 = vld [vmem:[%s5437_s25 + $0x189] sm:$0xff] }
 0x3b5   : > { %3352 = vrot.lane.b32.xlu0 %v4806_v4, %s5375_s26  ;;  %v4808_v4 = vld [vmem:[%s5437_s25 + $0x16a] sm:$0xff] }
 0x3b6   : > { %v3539_v63 = vpop.permute.xlu1 %3538 }
 0x3b7   : > { %v3537_v0 = vpop.permute.xlu0 %3536  ;;  %v3691_v2 = vsel %vm846_vm2, %v3659_v16, %v3539_v63  ;;  %v4716_v16 = vld [vmem:[%s5723_s4 + $0x20] sm:$0xff] }
 0x3b8   : > { %v3690_v7 = vsel %vm846_vm2, %v3658_v50, %v3537_v0  ;;  %3450 = vrot.lane.b32.xlu1 %v7424_v53, %s5376_s27  ;;  %v7455_v0 = vld [vmem:[%s5437_s25 + $0x181] sm:$0xff] }
 0x3b9   : > { %3448 = vrot.lane.b32.xlu0 %v7429_v38, %s5376_s27  ;;  %5188 = vmatprep.mubr.msk.f32.mxu1 %vm881_vm3, %v3690_v7  ;;  %v4717_v7 = vld [vmem:[%s5723_s4 + $0x28] sm:$0xff] }
 0x3ba   : > { %v3319_v11 = vpop.permute.xlu1 %3318  ;;  %5189 = vmatmul.mubr.msk.f32.gmra.mrb[38].mxu1 %vm881_vm3, %v3691_v2  ;;  %v5235_v55 = vpack.c.bf16 %v4717_v7, %v4716_v16  ;;  %v7478_v16 = vld [vmem:[%s5437_s25 + $0x38] sm:$0xff] }
 0x3bb   : > { %v3317_v13 = vpop.permute.xlu0 %3316  ;;  %v3629_v56 = vsel %vm780_vm0, %v6932_v3, %v3319_v11 }
 0x3bc   : > { %3578 = vrot.lane.b32.xlu1 %v4809_v54, %s5377_s5  ;;  %v3628_v63 = vsel %vm780_vm0, %v6935_v8, %v3317_v13  ;;  %5236 = vmatprep.subr.bf16.mxu0 %v5235_v55 }
 0x3bd   : > { %3576 = vrot.lane.b32.xlu0 %v4808_v4, %s5377_s5  ;;  %5238 = vmatpush3.bf16.msra.mxu0 %v5235_v55 }
 0x3be   : > { %v3415_v42 = vpop.permute.xlu1 %3414 }
 0x3bf   : > { %v3413_v18 = vpop.permute.xlu0 %3412  ;;  %v3661_v11 = vsel %vm813_vm1, %v3629_v56, %v3415_v42  ;;  %v7471_v42 = vld [vmem:[%s5437_s25 + $0x30] sm:$0xff] }
 0x3c0   : > { %3358 = vrot.lane.b32.xlu1 %v4809_v54, %s5375_s26  ;;  %v3660_v2 = vsel %vm813_vm1, %v3628_v63, %v3413_v18  ;;  %v4810_v18 = vld [vmem:[%s5437_s25 + $0x182] sm:$0xff] }
 0x3c1   : > { %3356 = vrot.lane.b32.xlu0 %v4808_v4, %s5375_s26 }
 0x3c2   : > { %v3543_v50 = vpop.permute.xlu1 %3542 }
 0x3c3   : > { %v3541_v54 = vpop.permute.xlu0 %3540  ;;  %v3693_v13 = vsel %vm846_vm2, %v3661_v11, %v3543_v50  ;;  %v4811_v50 = vld [vmem:[%s5437_s25 + $0x18a] sm:$0xff] }
 0x3c4   : > { %v3692_v4 = vsel %vm846_vm2, %v3660_v2, %v3541_v54  ;;  %3454 = vrot.lane.b32.xlu1 %v7450_v17, %s5376_s27 }
 0x3c5   : > { %3452 = vrot.lane.b32.xlu0 %v7455_v0, %s5376_s27  ;;  %5191 = vmatprep.mubr.msk.f32.mxu1 %vm881_vm3, %v3692_v4 }
 0x3c6   : > { %v3323_v5 = vpop.permute.xlu1 %3322  ;;  %5192 = vmatmul.mubr.msk.f32.gmra.mrb[40].mxu1 %vm881_vm3, %v3693_v13 }
 0x3c7   : > { %v3321_v56 = vpop.permute.xlu0 %3320  ;;  %v3631_v2 = vsel %vm780_vm0, %v6942_v9, %v3323_v5 }
 0x3c8   : > { %2560 = vrot.lane.b32.xlu1 %v7471_v42, %s5376_s27  ;;  %v3630_v55 = vsel %vm780_vm0, %v6945_v49, %v3321_v56 }
 0x3c9   : > { %3580 = vrot.lane.b32.xlu0 %v4810_v18, %s5377_s5 }
 0x3ca   : > { %v3419_v63 = vpop.permute.xlu1 %3418 }
 0x3cb   : > { %v3417_v7 = vpop.permute.xlu0 %3416  ;;  %v3663_v13 = vsel %vm813_vm1, %v3631_v2, %v3419_v63  ;;  %v7500_v63 = vld [vmem:[%s5437_s25 + $0x1a1] sm:$0xff] }
 0x3cc   : > { %2562 = vrot.lane.b32.xlu1 %v7478_v16, %s5376_s27  ;;  %v3662_v11 = vsel %vm813_vm1, %v3630_v55, %v3417_v7  ;;  %v7503_v7 = vld [vmem:[%s5437_s25 + $0x199] sm:$0xff] }
 0x3cd   : > { %3582 = vrot.lane.b32.xlu0 %v4811_v50, %s5377_s5 }
 0x3ce   : > { %v3547_v54 = vpop.permute.xlu1 %3546 }
 0x3cf   : > { %v3545_v4 = vpop.permute.xlu0 %3544  ;;  %v3695_v20 = vsel %vm846_vm2, %v3663_v13, %v3547_v54  ;;  %v4813_v13 = vld [vmem:[%s5437_s25 + $0x1a2] sm:$0xff] }
 0x3d0   : > { %v3694_v59 = vsel %vm846_vm2, %v3662_v11, %v3545_v4  ;;  %3360 = vrot.lane.b32.xlu1 %v4810_v18, %s5375_s26 }
 0x3d1   : > { %2688 = vrot.lane.b32.xlu0 %v6905_v43, %s5377_s5  ;;  %5194 = vmatprep.mubr.msk.f32.mxu1 %vm881_vm3, %v3694_v59 }
 0x3d2   : > { %v3327_v5 = vpop.permute.xlu1 %3326  ;;  %5195 = vmatmul.mubr.msk.f32.gmra.mrb[42].mxu1 %vm881_vm3, %v3695_v20  ;;  %v4812_v20 = vld [vmem:[%s5437_s25 + $0x19a] sm:$0xff] }
 0x3d3   : > { %v3325_v56 = vpop.permute.xlu0 %3324  ;;  %v3633_v43 = vsel %vm780_vm0, %v6952_v36, %v3327_v5  ;;  %v7528_v5 = vld [vmem:[%s5437_s25 + $0x50] sm:$0xff] }
 0x3d4   : > { %3362 = vrot.lane.b32.xlu1 %v4811_v50, %s5375_s26  ;;  %v7515_v50 = vld [vmem:[%s5437_s25 + $0x48] sm:$0xff] }
 0x3d5   : > { %2690 = vrot.lane.b32.xlu0 %v6902_v58, %s5377_s5  ;;  %v3632_v58 = vsel %vm780_vm0, %v6955_v44, %v3325_v56 }
 0x3d6   : > { %v3423_v18 = vpop.permute.xlu1 %3422 }
 0x3d7   : > { %v3421_v2 = vpop.permute.xlu0 %3420  ;;  %v3665_v11 = vsel %vm813_vm1, %v3633_v43, %v3423_v18 }
 0x3d8   : > { %3458 = vrot.lane.b32.xlu1 %v7500_v63, %s5376_s27  ;;  %v3664_v55 = vsel %vm813_vm1, %v3632_v58, %v3421_v2 }
 0x3d9   : > { %3456 = vrot.lane.b32.xlu0 %v7503_v7, %s5376_s27 }
 0x3da   : > { %v3551_v59 = vpop.permute.xlu1 %3550 }
 0x3db   : > { %v3549_v54 = vpop.permute.xlu0 %3548  ;;  %v3697_v36 = vsel %vm846_vm2, %v3665_v11, %v3551_v59  ;;  %v7546_v11 = vld [vmem:[%s5437_s25 + $0x60] sm:$0xff] }
 0x3dc   : > { %v3696_v4 = vsel %vm846_vm2, %v3664_v55, %v3549_v54  ;;  %2564 = vrot.lane.b32.xlu1 %v7515_v50, %s5376_s27 }
 0x3dd   : > { %3584 = vrot.lane.b32.xlu0 %v4812_v20, %s5377_s5  ;;  %5197 = vmatprep.mubr.msk.f32.mxu1 %vm881_vm3, %v3696_v4  ;;  %v7542_v20 = vld [vmem:[%s5437_s25 + $0x68] sm:$0xff] }
 0x3de   : > { %v3331_v44 = vpop.permute.xlu1 %3330  ;;  %5198 = vmatmul.mubr.msk.f32.gmra.mrb[44].mxu1 %vm881_vm3, %v3697_v36 }
 0x3df   : > { %v3329_v56 = vpop.permute.xlu0 %3328  ;;  %v3635_v43 = vsel %vm780_vm0, %v6962_v35, %v3331_v44  ;;  %v7562_v44 = vld [vmem:[%s5437_s25 + $0x80] sm:$0xff] }
 0x3e0   : > { %2566 = vrot.lane.b32.xlu1 %v7528_v5, %s5376_s27  ;;  %v3634_v58 = vsel %vm780_vm0, %v6965_v39, %v3329_v56  ;;  %v7565_v56 = vld [vmem:[%s5437_s25 + $0x78] sm:$0xff] }
 0x3e1   : > { %3586 = vrot.lane.b32.xlu0 %v4813_v13, %s5377_s5 }
 0x3e2   : > { %v3427_v18 = vpop.permute.xlu1 %3426 }
 0x3e3   : > { %v3425_v2 = vpop.permute.xlu0 %3424 }
 0x3e4   : > { %2694 = vrot.lane.b32.xlu1 %v6912_v12, %s5377_s5  ;;  %v3666_v55 = vsel %vm813_vm1, %v3634_v58, %v3425_v2  ;;  %v3667_v12 = vsel %vm813_vm1, %v3635_v43, %v3427_v18 }
 0x3e5   : > { %2692 = vrot.lane.b32.xlu0 %v6915_v52, %s5377_s5 }
 0x3e6   : > { %v3555_v59 = vpop.permute.xlu1 %3554 }
 0x3e7   : > { %v3553_v54 = vpop.permute.xlu0 %3552  ;;  %v3699_v52 = vsel %vm846_vm2, %v3667_v12, %v3555_v59  ;;  %v7589_v12 = vld [vmem:[%s5437_s25 + $0x90] sm:$0xff] }
 0x3e8   : > { %v3698_v35 = vsel %vm846_vm2, %v3666_v55, %v3553_v54  ;;  %2570 = vrot.lane.b32.xlu1 %v7542_v20, %s5376_s27  ;;  %v7586_v55 = vld [vmem:[%s5437_s25 + $0x98] sm:$0xff] }
 0x3e9   : > { %2568 = vrot.lane.b32.xlu0 %v7546_v11, %s5376_s27  ;;  %5200 = vmatprep.mubr.msk.f32.mxu1 %vm881_vm3, %v3698_v35 }
 0x3ea   : > { %v3335_v39 = vpop.permute.xlu1 %3334  ;;  %5201 = vmatmul.mubr.msk.f32.gmra.mrb[46].mxu1 %vm881_vm3, %v3699_v52 }
 0x3eb   : > { %v3333_v4 = vpop.permute.xlu0 %3332  ;;  %v3637_v18 = vsel %vm780_vm0, %v6972_v40, %v3335_v39 }
 0x3ec   : > { %2698 = vrot.lane.b32.xlu1 %v6922_v29, %s5377_s5  ;;  %v3636_v29 = vsel %vm780_vm0, %v6975_v48, %v3333_v4  ;;  %v7604_v4 = vld [vmem:[%s5437_s25 + $0xb0] sm:$0xff] }
 0x3ed   : > { %2696 = vrot.lane.b32.xlu0 %v6925_v14, %s5377_s5 }
 0x3ee   : > { %v3431_v36 = vpop.permute.xlu1 %3430 }
 0x3ef   : > { %v3429_v13 = vpop.permute.xlu0 %3428  ;;  %v3669_v58 = vsel %vm813_vm1, %v3637_v18, %v3431_v36  ;;  %v7608_v18 = vld [vmem:[%s5437_s25 + $0xa8] sm:$0xff] }
 0x3f0   : > { %2574 = vrot.lane.b32.xlu1 %v7562_v44, %s5376_s27  ;;  %v3668_v2 = vsel %vm813_vm1, %v3636_v29, %v3429_v13 }
 0x3f1   : > { %2572 = vrot.lane.b32.xlu0 %v7565_v56, %s5376_s27 }
 0x3f2   : > { %v3559_v14 = vpop.permute.xlu1 %3558 }
 0x3f3   : > { %v3557_v43 = vpop.permute.xlu0 %3556  ;;  %v3701_v40 = vsel %vm846_vm2, %v3669_v58, %v3559_v14  ;;  %v5320_v14 = vld [vmem:[%s5437_s25 + $0xb1] sm:$0xff]  ;;  %v7624_v58 = vld [vmem:[%s5437_s25 + $0xc8] sm:$0xff] }
 0x3f4   : > { %v3700_v59 = vsel %vm846_vm2, %v3668_v2, %v3557_v43  ;;  %2702 = vrot.lane.b32.xlu1 %v6932_v3, %s5377_s5  ;;  %v5321_v2 = vld [vmem:[%s5437_s25 + $0xa9] sm:$0xff] }
 0x3f5   : > { %2700 = vrot.lane.b32.xlu0 %v6935_v8, %s5377_s5  ;;  %5203 = vmatprep.mubr.msk.f32.mxu1 %vm881_vm3, %v3700_v59 }
 0x3f6   : > { %v3339_v48 = vpop.permute.xlu1 %3338  ;;  %5204 = vmatmul.mubr.msk.f32.gmra.mrb[48].mxu1 %vm881_vm3, %v3701_v40  ;;  %v7627_v40 = vld [vmem:[%s5437_s25 + $0xc0] sm:$0xff] }
 0x3f7   : > { %v3337_v54 = vpop.permute.xlu0 %3336  ;;  %v3639_v35 = vsel %vm780_vm0, %v6982_v51, %v3339_v48 }
 0x3f8   : > { %2578 = vrot.lane.b32.xlu1 %v7586_v55, %s5376_s27  ;;  %v3638_v52 = vsel %vm780_vm0, %v6985_v45, %v3337_v54 }
 0x3f9   : > { %2576 = vrot.lane.b32.xlu0 %v7589_v12, %s5376_s27 }
 0x3fa   : > { %v3435_v3 = vpop.permute.xlu1 %3434 }
 0x3fb   : > { %v3433_v8 = vpop.permute.xlu0 %3432 }
 0x3fc   : > { %2706 = vrot.lane.b32.xlu1 %v6942_v9, %s5377_s5  ;;  %v3670_v36 = vsel %vm813_vm1, %v3638_v52, %v3433_v8  ;;  %v3671_v9 = vsel %vm813_vm1, %v3639_v35, %v3435_v3 }
 0x3fd   : > { %2704 = vrot.lane.b32.xlu0 %v6945_v49, %s5377_s5 }
 0x3fe   : > { %v3563_v39 = vpop.permute.xlu1 %3562 }
 0x3ff   : > { %v3561_v13 = vpop.permute.xlu0 %3560  ;;  %v3703_v49 = vsel %vm846_vm2, %v3671_v9, %v3563_v39  ;;  %v7648_v9 = vld [vmem:[%s5437_s25 + $0xe0] sm:$0xff] }
 0x400   : > { %v3702_v51 = vsel %vm846_vm2, %v3670_v36, %v3561_v13  ;;  %2582 = vrot.lane.b32.xlu1 %v7604_v4, %s5376_s27  ;;  %v5322_v36 = vld [vmem:[%s5437_s25 + $0xc9] sm:$0xff]  ;;  %v5323_v13 = vld [vmem:[%s5437_s25 + $0xc1] sm:$0xff] }
 0x401   : > { %2580 = vrot.lane.b32.xlu0 %v7608_v18, %s5376_s27  ;;  %5206 = vmatprep.mubr.msk.f32.mxu1 %vm881_vm3, %v3702_v51 }
 0x402   : > { %v3343_v45 = vpop.permute.xlu1 %3342  ;;  %5207 = vmatmul.mubr.msk.f32.gmra.mrb[50].mxu1 %vm881_vm3, %v3703_v49  ;;  %v7651_v49 = vld [vmem:[%s5437_s25 + $0xd8] sm:$0xff] }
 0x403   : > { %v3341_v29 = vpop.permute.xlu0 %3340  ;;  %v3641_v48 = vsel %vm780_vm0, %v6992_v28, %v3343_v45 }
 0x404   : > { %2710 = vrot.lane.b32.xlu1 %v5320_v14, %s5377_s5  ;;  %v3640_v54 = vsel %vm780_vm0, %v6995_v57, %v3341_v29  ;;  %v5324_v14 = vld [vmem:[%s5437_s25 + $0xe1] sm:$0xff] }
 0x405   : > { %2708 = vrot.lane.b32.xlu0 %v5321_v2, %s5377_s5  ;;  %v5325_v2 = vld [vmem:[%s5437_s25 + $0x129] sm:$0xff] }
 0x406   : > { %v3439_v43 = vpop.permute.xlu1 %3438 }
 0x407   : > { %v3437_v59 = vpop.permute.xlu0 %3436  ;;  %v3673_v52 = vsel %vm813_vm1, %v3641_v48, %v3439_v43  ;;  %v5327_v48 = vld [vmem:[%s5437_s25 + $0x121] sm:$0xff] }
 0x408   : > { %2586 = vrot.lane.b32.xlu1 %v7624_v58, %s5376_s27  ;;  %v3672_v8 = vsel %vm813_vm1, %v3640_v54, %v3437_v59  ;;  %v5326_v59 = vld [vmem:[%s5437_s25 + $0xd9] sm:$0xff] }
 0x409   : > { %2584 = vrot.lane.b32.xlu0 %v7627_v40, %s5376_s27 }
 0x40a   : > { %v3567_v3 = vpop.permute.xlu1 %3566 }
 0x40b   : > { %v3565_v35 = vpop.permute.xlu0 %3564  ;;  %v3705_v28 = vsel %vm846_vm2, %v3673_v52, %v3567_v3 }
 0x40c   : > { %v3704_v39 = vsel %vm846_vm2, %v3672_v8, %v3565_v35  ;;  %2714 = vrot.lane.b32.xlu1 %v5322_v36, %s5377_s5  ;;  %v7666_v8 = vld [vmem:[%s5437_s25 + $0xf8] sm:$0xff] }
 0x40d   : > { %2712 = vrot.lane.b32.xlu0 %v5323_v13, %s5377_s5  ;;  %5209 = vmatprep.mubr.msk.f32.mxu1 %vm881_vm3, %v3704_v39  ;;  %v7670_v39 = vld [vmem:[%s5437_s25 + $0xf0] sm:$0xff] }
 0x40e   : > { %v3347_v57 = vpop.permute.xlu1 %3346  ;;  %5210 = vmatmul.mubr.msk.f32.gmra.mrb[52].mxu1 %vm881_vm3, %v3705_v28 }
 0x40f   : > { %v3345_v51 = vpop.permute.xlu0 %3344  ;;  %v3643_v43 = vsel %vm780_vm0, %v5325_v2, %v3347_v57 }
 0x410   : > { %2590 = vrot.lane.b32.xlu1 %v7648_v9, %s5376_s27  ;;  %v3642_v54 = vsel %vm780_vm0, %v5327_v48, %v3345_v51 }
 0x411   : > { %2588 = vrot.lane.b32.xlu0 %v7651_v49, %s5376_s27 }
 0x412   : > { %v3443_v45 = vpop.permute.xlu1 %3442 }
 0x413   : > { %v3441_v29 = vpop.permute.xlu0 %3440  ;;  %v3675_v36 = vsel %vm813_vm1, %v3643_v43, %v3443_v45  ;;  %v5328_v45 = vld [vmem:[%s5437_s25 + $0xf9] sm:$0xff]  ;;  %v7686_v43 = vld [vmem:[%s5437_s25 + $0x110] sm:$0xff] }
 0x414   : > { %2718 = vrot.lane.b32.xlu1 %v5324_v14, %s5377_s5  ;;  %v3674_v35 = vsel %vm813_vm1, %v3642_v54, %v3441_v29  ;;  %v5329_v29 = vld [vmem:[%s5437_s25 + $0xf1] sm:$0xff]  ;;  %8488 = vst [vmem:[#allocation45_spill] sm:$0xff] %v7686_v43  ;;  %v7689_v54 = vld [vmem:[%s5437_s25 + $0x108] sm:$0xff] }
 0x415   : > { %2716 = vrot.lane.b32.xlu0 %v5326_v59, %s5377_s5 }
 0x416   : > { %v3571_v3 = vpop.permute.xlu1 %3570 }
 0x417   : > { %v3569_v52 = vpop.permute.xlu0 %3568  ;;  %v3707_v13 = vsel %vm846_vm2, %v3675_v36, %v3571_v3  ;;  %v5330_v3 = vld [vmem:[%s5437_s25 + $0x141] sm:$0xff] }
 0x418   : > { %v3706_v28 = vsel %vm846_vm2, %v3674_v35, %v3569_v52  ;;  %2594 = vrot.lane.b32.xlu1 %v7666_v8, %s5376_s27  ;;  %v5331_v52 = vld [vmem:[%s5437_s25 + $0x139] sm:$0xff] }
 0x419   : > { %2592 = vrot.lane.b32.xlu0 %v7670_v39, %s5376_s27  ;;  %5212 = vmatprep.mubr.msk.f32.mxu1 %vm881_vm3, %v3706_v28 }
 0x41a   : > { %v3351_v57 = vpop.permute.xlu1 %3350  ;;  %5213 = vmatmul.mubr.msk.f32.gmra.mrb[54].mxu1 %vm881_vm3, %v3707_v13 }
 0x41b   : > { %v3349_v51 = vpop.permute.xlu0 %3348  ;;  %v3645_v35 = vsel %vm780_vm0, %v5330_v3, %v3351_v57 }
 0x41c   : > { %2722 = vrot.lane.b32.xlu1 %v5328_v45, %s5377_s5  ;;  %v3644_v36 = vsel %vm780_vm0, %v5331_v52, %v3349_v51 }
 0x41d   : > { %2720 = vrot.lane.b32.xlu0 %v5329_v29, %s5377_s5 }
 0x41e   : > { %v3447_v14 = vpop.permute.xlu1 %3446 }
 0x41f   : > { %v3445_v59 = vpop.permute.xlu0 %3444  ;;  %v3677_v29 = vsel %vm813_vm1, %v3645_v35, %v3447_v14  ;;  %v7713_v35 = vld [vmem:[%s5437_s25 + $0x120] sm:$0xff] }
 0x420   : > { %2598 = vrot.lane.b32.xlu1 %v7686_v43, %s5376_s27  ;;  %v3676_v13 = vsel %vm813_vm1, %v3644_v36, %v3445_v59  ;;  %v5332_v43 = vld [vmem:[%s5437_s25 + $0x111] sm:$0xff]  ;;  %v7710_v59 = vld [vmem:[%s5437_s25 + $0x128] sm:$0xff] }
 0x421   : > { %2596 = vrot.lane.b32.xlu0 %v7689_v54, %s5376_s27  ;;  %8489 = vst [vmem:[#allocation29_spill] sm:$0xff] %v7710_v59 }
 0x422   : > { %v3575_v28 = vpop.permute.xlu1 %3574 }
 0x423   : > { %v3573_v45 = vpop.permute.xlu0 %3572  ;;  %v3709_v57 = vsel %vm846_vm2, %v3677_v29, %v3575_v28 }
 0x424   : > { %v3708_v30 = vsel %vm846_vm2, %v3676_v13, %v3573_v45  ;;  %2726 = vrot.lane.b32.xlu1 %v5332_v43, %s5377_s5  ;;  %v7726_v13 = vld [vmem:[%s5437_s25 + $0x140] sm:$0xff] }
 0x425   : > { %2724 = vrot.lane.b32.xlu0 %v5333_v26, %s5377_s5  ;;  %5215 = vmatprep.mubr.msk.f32.mxu1 %vm881_vm3, %v3708_v30 }
 0x426   : > { %v3355_v51 = vpop.permute.xlu1 %3354  ;;  %5216 = vmatmul.mubr.msk.f32.gmra.mrb[56].mxu1 %vm881_vm3, %v3709_v57  ;;  %v7730_v57 = vld [vmem:[%s5437_s25 + $0x138] sm:$0xff] }
 0x427   : > { %v3353_v14 = vpop.permute.xlu0 %3352  ;;  %v3647_v30 = vsel %vm780_vm0, %v7398_v23, %v3355_v51 }
 0x428   : > { %2602 = vrot.lane.b32.xlu1 %v7710_v59, %s5376_s27  ;;  %v3646_v36 = vsel %vm780_vm0, %v7403_v21, %v3353_v14 }
 0x429   : > { %2600 = vrot.lane.b32.xlu0 %v7713_v35, %s5376_s27 }
 0x42a   : > { %v3451_v43 = vpop.permute.xlu1 %3450 }
 0x42b   : > { %v3449_v26 = vpop.permute.xlu0 %3448 }
 0x42c   : > { %2730 = vrot.lane.b32.xlu1 %v5325_v2, %s5377_s5  ;;  %v3678_v45 = vsel %vm813_vm1, %v3646_v36, %v3449_v26  ;;  %v3679_v2 = vsel %vm813_vm1, %v3647_v30, %v3451_v43  ;;  %v7744_v43 = vld [vmem:[%s5437_s25 + $0x158] sm:$0xff]  ;;  %v7747_v30 = vld [vmem:[%s5437_s25 + $0x150] sm:$0xff] }
 0x42d   : > { %2728 = vrot.lane.b32.xlu0 %v5327_v48, %s5377_s5 }
 0x42e   : > { %v3579_v28 = vpop.permute.xlu1 %3578 }
 0x42f   : > { %v3577_v29 = vpop.permute.xlu0 %3576  ;;  %v3711_v48 = vsel %vm846_vm2, %v3679_v2, %v3579_v28 }
 0x430   : > { %v3710_v59 = vsel %vm846_vm2, %v3678_v45, %v3577_v29  ;;  %2606 = vrot.lane.b32.xlu1 %v7726_v13, %s5376_s27 }
 0x431   : > { %2604 = vrot.lane.b32.xlu0 %v7730_v57, %s5376_s27  ;;  %5218 = vmatprep.mubr.msk.f32.mxu1 %vm881_vm3, %v3710_v59 }
 0x432   : > { %v3359_v51 = vpop.permute.xlu1 %3358  ;;  %5219 = vmatmul.mubr.msk.f32.gmra.mrb[58].mxu1 %vm881_vm3, %v3711_v48  ;;  %v4588_v48 = vld [vmem:[%s5437_s25 + $0x18] sm:$0xff] }
 0x433   : > { %v3357_v14 = vpop.permute.xlu0 %3356  ;;  %v3649_v45 = vsel %vm780_vm0, %v7424_v53, %v3359_v51  ;;  %v7773_v51 = vld [vmem:[%s5437_s25 + $0x170] sm:$0xff] }
 0x434   : > { %2734 = vrot.lane.b32.xlu1 %v5330_v3, %s5377_s5  ;;  %v3648_v59 = vsel %vm780_vm0, %v7429_v38, %v3357_v14 }
 0x435   : > { %2732 = vrot.lane.b32.xlu0 %v5331_v52, %s5377_s5 }
 0x436   : > { %v3455_v26 = vpop.permute.xlu1 %3454 }
 0x437   : > { %v3453_v36 = vpop.permute.xlu0 %3452  ;;  %v3681_v14 = vsel %vm813_vm1, %v3649_v45, %v3455_v26  ;;  %v4589_v26 = vld [vmem:[%s5437_s25 + $0x20] sm:$0xff] }
 0x438   : > { %2610 = vrot.lane.b32.xlu1 %v7744_v43, %s5376_s27  ;;  %v3680_v3 = vsel %vm813_vm1, %v3648_v59, %v3453_v36 }
 0x439   : > { %2608 = vrot.lane.b32.xlu0 %v7747_v30, %s5376_s27 }
 0x43a   : > { %v2561_v28 = vpop.permute.xlu1 %2560 }
 0x43b   : > { %v3581_v52 = vpop.permute.xlu0 %3580 }
 0x43c   : > { %v3712_v29 = vsel %vm846_vm2, %v3680_v3, %v3581_v52  ;;  %2738 = vrot.lane.b32.xlu1 %v7398_v23, %s5377_s5  ;;  %v2784_v3 = vsel %vm780_vm0, %v4588_v48, %v7255_v31  ;;  %v2785_v31 = vsel %vm780_vm0, %v4589_v26, %v7251_v24  ;;  %v7802_v24 = vld [vmem:[%s5437_s25 + $0x188] sm:$0xff] }
 0x43d   : > { %2736 = vrot.lane.b32.xlu0 %v7403_v21, %s5377_s5  ;;  %5221 = vmatprep.mubr.msk.f32.mxu1 %vm881_vm3, %v3712_v29  ;;  %v7778_v29 = vld [vmem:[%s5437_s25 + $0x168] sm:$0xff]  ;;  %v2816_v45 = vsel %vm813_vm1, %v2784_v3, %v2561_v28 }
 0x43e   : > { %v2563_v2 = vpop.permute.xlu1 %2562 }
 0x43f   : > { %v3583_v36 = vpop.permute.xlu0 %3582 }
 0x440   : > { %v3713_v59 = vsel %vm846_vm2, %v3681_v14, %v3583_v36  ;;  %2486 = vrot.lane.b32.xlu1 %v7398_v23, %s5375_s26 }
 0x441   : > { %2484 = vrot.lane.b32.xlu0 %v7403_v21, %s5375_s26  ;;  %5222 = vmatmul.mubr.msk.f32.gmra.mrb[60].mxu1 %vm881_vm3, %v3713_v59  ;;  %v2817_v21 = vsel %vm813_vm1, %v2785_v31, %v2563_v2 }
 0x442   : > { %v3361_v52 = vpop.permute.xlu1 %3360 }
 0x443   : > { %v2689_v14 = vpop.permute.xlu0 %2688  ;;  %v3650_v2 = vsel %vm780_vm0, %v7455_v0, %v3361_v52 }
 0x444   : > { %v2848_v36 = vsel %vm846_vm2, %v2816_v45, %v2689_v14  ;;  %2614 = vrot.lane.b32.xlu1 %v7773_v51, %s5376_s27  ;;  %v7807_v45 = vld [vmem:[%s5437_s25 + $0x180] sm:$0xff] }
 0x445   : > { %2612 = vrot.lane.b32.xlu0 %v7778_v29, %s5376_s27  ;;  %5127 = vmatprep.mubr.msk.f32.mxu0 %vm881_vm3, %v2848_v36 }
 0x446   : > { %v3363_v23 = vpop.permute.xlu1 %3362 }
 0x447   : > { %v2691_v28 = vpop.permute.xlu0 %2690  ;;  %v3651_v31 = vsel %vm780_vm0, %v7450_v17, %v3363_v23  ;;  %v2786_v23 = vsel %vm780_vm0, %v7471_v42, %v7265_v60  ;;  %v4683_v60 = vld [vmem:[%s5437_s25 + $0x1a0] sm:$0xff] }
 0x448   : > { %v2849_v48 = vsel %vm846_vm2, %v2817_v21, %v2691_v28  ;;  %2742 = vrot.lane.b32.xlu1 %v7424_v53, %s5377_s5 }
 0x449   : > { %2740 = vrot.lane.b32.xlu0 %v7429_v38, %s5377_s5  ;;  %5128 = vmatmul.mubr.msk.f32.vlgmr.msra.gmra.mrb[32].mxu0 %vm881_vm3, %v2849_v48 }
 0x44a   : > { %v3459_v59 = vpop.permute.xlu1 %3458 }
 0x44b   : > { %v3457_v3 = vpop.permute.xlu0 %3456 }
 0x44c   : > { %2490 = vrot.lane.b32.xlu1 %v7424_v53, %s5375_s26  ;;  %v3682_v14 = vsel %vm813_vm1, %v3650_v2, %v3457_v3 }
 0x44d   : > { %2488 = vrot.lane.b32.xlu0 %v7429_v38, %s5375_s26  ;;  %v3683_v38 = vsel %vm813_vm1, %v3651_v31, %v3459_v59  ;;  %v2787_v59 = vsel %vm780_vm0, %v7478_v16, %v7262_v22  ;;  %v4682_v22 = vld [vmem:[%s5437_s25 + $0x198] sm:$0xff] }
 0x44e   : > { %v2565_v26 = vpop.permute.xlu1 %2564 }
 0x44f   : > { %v3585_v36 = vpop.permute.xlu0 %3584  ;;  %v2818_v3 = vsel %vm813_vm1, %v2786_v23, %v2565_v26 }
 0x450   : > { %v3714_v21 = vsel %vm846_vm2, %v3682_v14, %v3585_v36  ;;  %2618 = vrot.lane.b32.xlu1 %v7802_v24, %s5376_s27 }
 0x451   : > { %2616 = vrot.lane.b32.xlu0 %v7807_v45, %s5376_s27  ;;  %5224 = vmatprep.mubr.msk.f32.mxu1 %vm881_vm3, %v3714_v21 }
 0x452   : > { %v2567_v53 = vpop.permute.xlu1 %2566 }
 0x453   : > { %v3587_v52 = vpop.permute.xlu0 %3586  ;;  %v2819_v14 = vsel %vm813_vm1, %v2787_v59, %v2567_v53 }
 0x454   : > { %v3715_v28 = vsel %vm846_vm2, %v3683_v38, %v3587_v52  ;;  %2746 = vrot.lane.b32.xlu1 %v7450_v17, %s5377_s5 }
 0x455   : > { %2744 = vrot.lane.b32.xlu0 %v7455_v0, %s5377_s5  ;;  %5225 = vmatmul.mubr.msk.f32.gmra.mrb[62].mxu1 %vm881_vm3, %v3715_v28 }
 0x456   : > { %v2695_v48 = vpop.permute.xlu1 %2694 }
 0x457   : > { %v2693_v2 = vpop.permute.xlu0 %2692  ;;  %v2851_v31 = vsel %vm846_vm2, %v2819_v14, %v2695_v48 }
 0x458   : > { %v2850_v36 = vsel %vm846_vm2, %v2818_v3, %v2693_v2  ;;  %2494 = vrot.lane.b32.xlu1 %v7450_v17, %s5375_s26  ;;  %v2788_v17 = vsel %vm780_vm0, %v7515_v50, %v7271_v34  ;;  %v2790_v50 = vsel %vm780_vm0, %v7546_v11, %v7277_v46 }
 0x459   : > { %2492 = vrot.lane.b32.xlu0 %v7455_v0, %s5375_s26  ;;  %5130 = vmatprep.mubr.msk.f32.mxu0 %vm881_vm3, %v2850_v36  ;;  %v2789_v0 = vsel %vm780_vm0, %v7528_v5, %v7269_v1  ;;  %v2793_v36 = vsel %vm780_vm0, %v7562_v44, %v7284_v61  ;;  %v2794_v61 = vsel %vm780_vm0, %v7589_v12, %v7293_v15 }
 0x45a   : > { %v2571_v42 = vpop.permute.xlu1 %2570  ;;  %5131 = vmatmul.mubr.msk.f32.gmra.mrb[34].mxu0 %vm881_vm3, %v2851_v31 }
 0x45b   : > { %v2569_v16 = vpop.permute.xlu0 %2568  ;;  %v2821_v38 = vsel %vm813_vm1, %v2789_v0, %v2571_v42  ;;  %v2795_v0 = vsel %vm780_vm0, %v7586_v55, %v7291_v33  ;;  %v2796_v33 = vsel %vm780_vm0, %v7608_v18, %v7299_v62 }
 0x45c   : > { %2622 = vrot.lane.b32.xlu1 %v4683_v60, %s5376_s27  ;;  %v2820_v21 = vsel %vm813_vm1, %v2788_v17, %v2569_v16 }
 0x45d   : > { %2620 = vrot.lane.b32.xlu0 %v4682_v22, %s5376_s27 }
 0x45e   : > { %v2699_v26 = vpop.permute.xlu1 %2698 }
 0x45f   : > { %v2697_v53 = vpop.permute.xlu0 %2696  ;;  %v2853_v28 = vsel %vm846_vm2, %v2821_v38, %v2699_v26 }
 0x460   : > { %v2852_v52 = vsel %vm846_vm2, %v2820_v21, %v2697_v53  ;;  %2750 = vrot.lane.b32.xlu1 %v7500_v63, %s5377_s5  ;;  %v2791_v63 = vsel %vm780_vm0, %v7542_v20, %v7275_v6  ;;  %v2792_v20 = vsel %vm780_vm0, %v7565_v56, %v7287_v10 }
 0x461   : > { %2748 = vrot.lane.b32.xlu0 %v7503_v7, %s5377_s5  ;;  %5133 = vmatprep.mubr.msk.f32.mxu0 %vm881_vm3, %v2852_v52 }
 0x462   : > { %v2575_v34 = vpop.permute.xlu1 %2574  ;;  %5134 = vmatmul.mubr.msk.f32.gmra.mrb[36].mxu0 %vm881_vm3, %v2853_v28 }
 0x463   : > { %v2573_v1 = vpop.permute.xlu0 %2572  ;;  %v2823_v7 = vsel %vm813_vm1, %v2791_v63, %v2575_v34  ;;  %v2797_v34 = vsel %vm780_vm0, %v7604_v4, %v7297_v37  ;;  %v2798_v4 = vsel %vm780_vm0, %v7627_v40, %v7309_v41 }
 0x464   : > { %v2822_v23 = vsel %vm813_vm1, %v2790_v50, %v2573_v1 }
 0x466   : > { %v2703_v5 = vpop.permute.xlu1 %2702 }
 0x467   : > { %v2701_v48 = vpop.permute.xlu0 %2700  ;;  %v2855_v3 = vsel %vm846_vm2, %v2823_v7, %v2703_v5 }
 0x468   : > { %v2854_v59 = vsel %vm846_vm2, %v2822_v23, %v2701_v48 }
 0x469   : > { %5136 = vmatprep.mubr.msk.f32.mxu0 %vm881_vm3, %v2854_v59  ;;  %v5181_v2 = vpop.f32.mrb[32].mxu1  ;;  %v2799_v59 = vsel %vm780_vm0, %v7624_v58, %v7306_v25  ;;  %v2800_v25 = vsel %vm780_vm0, %v7651_v49, %v7315_v27 }
 0x46a   : > { %v2579_v14 = vpop.permute.xlu1 %2578  ;;  %4074 = vrot.lane.b32.xlu1 %v5181_v2, %s5375_s26  ;;  %5137 = vmatmul.mubr.msk.f32.gmra.mrb[38].mxu0 %vm881_vm3, %v2855_v3  ;;  %v3881_v46 = vpop.f32.mrb[33].mxu1 }
 0x46b   : > { %4072 = vrot.lane.b32.xlu0 %v3881_v46, %s5375_s26  ;;  %v2577_v6 = vpop.permute.xlu0 %2576  ;;  %v2825_v42 = vsel %vm813_vm1, %v2793_v36, %v2579_v14  ;;  %v2801_v36 = vsel %vm780_vm0, %v7648_v9, %v7313_v32  ;;  %v2802_v32 = vsel %vm780_vm0, %v7670_v39, %v7321_v47 }
 0x46c   : > { %v2824_v31 = vsel %vm813_vm1, %v2792_v20, %v2577_v6 }
 0x46e   : > { %v2707_v11 = vpop.permute.xlu1 %2706 }
 0x46f   : > { %v2705_v60 = vpop.permute.xlu0 %2704  ;;  %v2857_v16 = vsel %vm846_vm2, %v2825_v42, %v2707_v11 }
 0x470   : > { %v2856_v22 = vsel %vm846_vm2, %v2824_v31, %v2705_v60 }
 0x471   : > { %5139 = vmatprep.mubr.msk.f32.mxu0 %vm881_vm3, %v2856_v22 }
 0x472   : > { %v2583_v17 = vpop.permute.xlu1 %2582  ;;  %5140 = vmatmul.mubr.msk.f32.gmra.mrb[40].mxu0 %vm881_vm3, %v2857_v16 }
 0x473   : > { %v2581_v10 = vpop.permute.xlu0 %2580  ;;  %v2827_v38 = vsel %vm813_vm1, %v2795_v0, %v2583_v17  ;;  %v2803_v17 = vsel %vm780_vm0, %v7666_v8, %v7319_v19  ;;  %v8490_v8 = vld [vmem:[#allocation73_spill] sm:$0xff] }
 0x474   : > { %v2826_v21 = vsel %vm813_vm1, %v2794_v61, %v2581_v10  ;;  %v2804_v39 = vsel %vm780_vm0, %v7689_v54, %v8490_v8 }
 0x475   : > { %v5184_v56 = vpop.f32.mrb[34].mxu1 }
 0x476   : > { %v2711_v44 = vpop.permute.xlu1 %2710  ;;  %4078 = vrot.lane.b32.xlu1 %v5184_v56, %s5375_s26  ;;  %v3891_v26 = vpop.f32.mrb[35].mxu1 }
 0x477   : > { %4076 = vrot.lane.b32.xlu0 %v3891_v26, %s5375_s26  ;;  %v2709_v53 = vpop.permute.xlu0 %2708  ;;  %v2859_v28 = vsel %vm846_vm2, %v2827_v38, %v2711_v44  ;;  %v8491_v38 = vld [vmem:[#allocation72_spill] sm:$0xff] }
 0x478   : > { %v2858_v52 = vsel %vm846_vm2, %v2826_v21, %v2709_v53 }
 0x479   : > { %5142 = vmatprep.mubr.msk.f32.mxu0 %vm881_vm3, %v2858_v52  ;;  %v8492_v52 = vld [vmem:[#allocation45_spill] sm:$0xff] }
 0x47a   : > { %v2587_v15 = vpop.permute.xlu1 %2586  ;;  %5143 = vmatmul.mubr.msk.f32.gmra.mrb[42].mxu0 %vm881_vm3, %v2859_v28  ;;  %v2805_v28 = vsel %vm780_vm0, %v8492_v52, %v8491_v38 }
 0x47b   : > { %v2585_v12 = vpop.permute.xlu0 %2584  ;;  %v2829_v5 = vsel %vm813_vm1, %v2797_v34, %v2587_v15 }
 0x47c   : > { %v2828_v1 = vsel %vm813_vm1, %v2796_v33, %v2585_v12 }
 0x47e   : > { %v2715_v55 = vpop.permute.xlu1 %2714 }
 0x47f   : > { %v2713_v50 = vpop.permute.xlu0 %2712  ;;  %v2861_v23 = vsel %vm846_vm2, %v2829_v5, %v2715_v55  ;;  %v8493_v5 = vld [vmem:[#allocation7_spill] sm:$0xff] }
 0x480   : > { %v2860_v63 = vsel %vm846_vm2, %v2828_v1, %v2713_v50 }
 0x481   : > { %5145 = vmatprep.mubr.msk.f32.mxu0 %vm881_vm3, %v2860_v63  ;;  %v5187_v48 = vpop.f32.mrb[36].mxu1  ;;  %v2806_v63 = vsel %vm780_vm0, %v7713_v35, %v8493_v5 }
 0x482   : > { %v2591_v7 = vpop.permute.xlu1 %2590  ;;  %4082 = vrot.lane.b32.xlu1 %v5187_v48, %s5375_s26  ;;  %5146 = vmatmul.mubr.msk.f32.gmra.mrb[44].mxu0 %vm881_vm3, %v2861_v23  ;;  %v3901_v62 = vpop.f32.mrb[37].mxu1 }
 0x483   : > { %4080 = vrot.lane.b32.xlu0 %v3901_v62, %s5375_s26  ;;  %v2589_v37 = vpop.permute.xlu0 %2588  ;;  %v2831_v14 = vsel %vm813_vm1, %v2799_v59, %v2591_v7  ;;  %v8494_v7 = vld [vmem:[#allocation6_spill] sm:$0xff]  ;;  %v8495_v62 = vld [vmem:[#allocation29_spill] sm:$0xff] }
 0x484   : > { %v2830_v3 = vsel %vm813_vm1, %v2798_v4, %v2589_v37  ;;  %v2807_v37 = vsel %vm780_vm0, %v8495_v62, %v8494_v7 }
 0x486   : > { %v2719_v18 = vpop.permute.xlu1 %2718 }
 0x487   : > { %v2717_v2 = vpop.permute.xlu0 %2716  ;;  %v2863_v6 = vsel %vm846_vm2, %v2831_v14, %v2719_v18 }
 0x488   : > { %v2862_v46 = vsel %vm846_vm2, %v2830_v3, %v2717_v2 }
 0x489   : > { %5148 = vmatprep.mubr.msk.f32.mxu0 %vm881_vm3, %v2862_v46  ;;  %v8496_v46 = vld [vmem:[#allocation28_spill] sm:$0xff] }
 0x48a   : > { %v2595_v20 = vpop.permute.xlu1 %2594  ;;  %5149 = vmatmul.mubr.msk.f32.gmra.mrb[46].mxu0 %vm881_vm3, %v2863_v6  ;;  %v2808_v6 = vsel %vm780_vm0, %v7730_v57, %v8496_v46 }
 0x48b   : > { %v2593_v41 = vpop.permute.xlu0 %2592  ;;  %v2833_v42 = vsel %vm813_vm1, %v2801_v36, %v2595_v20 }
 0x48c   : > { %v2832_v31 = vsel %vm813_vm1, %v2800_v25, %v2593_v41  ;;  %v8497_v41 = vld [vmem:[#allocation44_spill] sm:$0xff] }
 0x48d   : > { %v5190_v40 = vpop.f32.mrb[38].mxu1 }
 0x48e   : > { %v2723_v58 = vpop.permute.xlu1 %2722  ;;  %4086 = vrot.lane.b32.xlu1 %v5190_v40, %s5375_s26  ;;  %v3911_v11 = vpop.f32.mrb[39].mxu1  ;;  %v2809_v40 = vsel %vm780_vm0, %v7726_v13, %v8497_v41 }
 0x48f   : > { %4084 = vrot.lane.b32.xlu0 %v3911_v11, %s5375_s26  ;;  %v2721_v60 = vpop.permute.xlu0 %2720  ;;  %v2865_v16 = vsel %vm846_vm2, %v2833_v42, %v2723_v58 }
 0x490   : > { %v2864_v22 = vsel %vm846_vm2, %v2832_v31, %v2721_v60 }
 0x491   : > { %5151 = vmatprep.mubr.msk.f32.mxu0 %vm881_vm3, %v2864_v22 }
 0x492   : > { %v2599_v27 = vpop.permute.xlu1 %2598  ;;  %5152 = vmatmul.mubr.msk.f32.gmra.mrb[48].mxu0 %vm881_vm3, %v2865_v16 }
 0x493   : > { %v2597_v49 = vpop.permute.xlu0 %2596  ;;  %v2835_v61 = vsel %vm813_vm1, %v2803_v17, %v2599_v27 }
 0x494   : > { %v2834_v10 = vsel %vm813_vm1, %v2802_v32, %v2597_v49 }
 0x496   : > { %v2727_v9 = vpop.permute.xlu1 %2726 }
 0x497   : > { %v2725_v56 = vpop.permute.xlu0 %2724  ;;  %v2867_v26 = vsel %vm846_vm2, %v2835_v61, %v2727_v9 }
 0x498   : > { %v2866_v44 = vsel %vm846_vm2, %v2834_v10, %v2725_v56 }
 0x499   : > { %5154 = vmatprep.mubr.msk.f32.mxu0 %vm881_vm3, %v2866_v44  ;;  %v5193_v0 = vpop.f32.mrb[40].mxu1 }
 0x49a   : > { %v2603_v21 = vpop.permute.xlu1 %2602  ;;  %4090 = vrot.lane.b32.xlu1 %v5193_v0, %s5375_s26  ;;  %5155 = vmatmul.mubr.msk.f32.gmra.mrb[50].mxu0 %vm881_vm3, %v2867_v26  ;;  %v3921_v47 = vpop.f32.mrb[41].mxu1 }
 0x49b   : > { %4088 = vrot.lane.b32.xlu0 %v3921_v47, %s5375_s26  ;;  %v2601_v19 = vpop.permute.xlu0 %2600  ;;  %v2837_v33 = vsel %vm813_vm1, %v2805_v28, %v2603_v21 }
 0x49c   : > { %v2836_v15 = vsel %vm813_vm1, %v2804_v39, %v2601_v19 }
 0x49e   : > { %v2731_v53 = vpop.permute.xlu1 %2730 }
 0x49f   : > { %v2729_v12 = vpop.permute.xlu0 %2728  ;;  %v2869_v34 = vsel %vm846_vm2, %v2837_v33, %v2731_v53 }
 0x4a0   : > { %v2868_v55 = vsel %vm846_vm2, %v2836_v15, %v2729_v12 }
 0x4a1   : > { %5157 = vmatprep.mubr.msk.f32.mxu0 %vm881_vm3, %v2868_v55 }
 0x4a2   : > { %v2607_v1 = vpop.permute.xlu1 %2606  ;;  %5158 = vmatmul.mubr.msk.f32.gmra.mrb[52].mxu0 %vm881_vm3, %v2869_v34 }
 0x4a3   : > { %v2605_v54 = vpop.permute.xlu0 %2604  ;;  %v2839_v59 = vsel %vm813_vm1, %v2807_v37, %v2607_v1 }
 0x4a4   : > { %v2838_v4 = vsel %vm813_vm1, %v2806_v63, %v2605_v54 }
 0x4a5   : > { %v5196_v50 = vpop.f32.mrb[42].mxu1 }
 0x4a6   : > { %v2735_v23 = vpop.permute.xlu1 %2734  ;;  %4094 = vrot.lane.b32.xlu1 %v5196_v50, %s5375_s26  ;;  %v3931_v48 = vpop.f32.mrb[43].mxu1 }
 0x4a7   : > { %4092 = vrot.lane.b32.xlu0 %v3931_v48, %s5375_s26  ;;  %v2733_v18 = vpop.permute.xlu0 %2732  ;;  %v2871_v2 = vsel %vm846_vm2, %v2839_v59, %v2735_v23 }
 0x4a8   : > { %v2870_v3 = vsel %vm846_vm2, %v2838_v4, %v2733_v18 }
 0x4a9   : > { %5160 = vmatprep.mubr.msk.f32.mxu0 %vm881_vm3, %v2870_v3 }
 0x4aa   : > { %v2611_v35 = vpop.permute.xlu1 %2610  ;;  %5161 = vmatmul.mubr.msk.f32.gmra.mrb[54].mxu0 %vm881_vm3, %v2871_v2 }
 0x4ab   : > { %v2609_v14 = vpop.permute.xlu0 %2608  ;;  %v2841_v11 = vsel %vm813_vm1, %v2809_v40, %v2611_v35 }
 0x4ac   : > { %v2840_v25 = vsel %vm813_vm1, %v2808_v6, %v2609_v14 }
 0x4ae   : > { %v2739_v20 = vpop.permute.xlu1 %2738 }
 0x4af   : > { %v2737_v58 = vpop.permute.xlu0 %2736  ;;  %v2873_v31 = vsel %vm846_vm2, %v2841_v11, %v2739_v20 }
 0x4b0   : > { %v2872_v36 = vsel %vm846_vm2, %v2840_v25, %v2737_v58  ;;  %v8043_v25 = vld [vmem:[%s7022_s11] ss:$0 sm:$0xff] }
 0x4b1   : > { %5163 = vmatprep.mubr.msk.f32.mxu0 %vm881_vm3, %v2872_v36  ;;  %v5199_v60 = vpop.f32.mrb[44].mxu1 }
 0x4b2   : > { %v2487_v42 = vpop.permute.xlu1 %2486  ;;  %4098 = vrot.lane.b32.xlu1 %v5199_v60, %s5375_s26  ;;  %5164 = vmatmul.mubr.msk.f32.gmra.mrb[56].mxu0 %vm881_vm3, %v2873_v31  ;;  %v3941_v57 = vpop.f32.mrb[45].mxu1 }
 0x4b3   : > { %4096 = vrot.lane.b32.xlu0 %v3941_v57, %s5375_s26  ;;  %v2485_v13 = vpop.permute.xlu0 %2484  ;;  %v2811_v27 = vsel %vm780_vm0, %v7744_v43, %v2487_v42 }
 0x4b4   : > { %v2810_v49 = vsel %vm780_vm0, %v7747_v30, %v2485_v13 }
 0x4b6   : > { %v2615_v22 = vpop.permute.xlu1 %2614 }
 0x4b7   : > { %v2613_v16 = vpop.permute.xlu0 %2612  ;;  %v2843_v10 = vsel %vm813_vm1, %v2811_v27, %v2615_v22 }
 0x4b8   : > { %v2842_v9 = vsel %vm813_vm1, %v2810_v49, %v2613_v16 }
 0x4ba   : > { %v2743_v32 = vpop.permute.xlu1 %2742 }
 0x4bb   : > { %v2741_v17 = vpop.permute.xlu0 %2740  ;;  %v2875_v61 = vsel %vm846_vm2, %v2843_v10, %v2743_v32 }
 0x4bc   : > { %v2874_v56 = vsel %vm846_vm2, %v2842_v9, %v2741_v17 }
 0x4bd   : > { %5166 = vmatprep.mubr.msk.f32.mxu0 %vm881_vm3, %v2874_v56  ;;  %v5202_v44 = vpop.f32.mrb[46].mxu1 }
 0x4be   : > { %v2491_v26 = vpop.permute.xlu1 %2490  ;;  %4102 = vrot.lane.b32.xlu1 %v5202_v44, %s5375_s26  ;;  %5167 = vmatmul.mubr.msk.f32.gmra.mrb[58].mxu0 %vm881_vm3, %v2875_v61  ;;  %v3951_v43 = vpop.f32.mrb[47].mxu1 }
 0x4bf   : > { %4100 = vrot.lane.b32.xlu0 %v3951_v43, %s5375_s26  ;;  %v2489_v30 = vpop.permute.xlu0 %2488  ;;  %v2813_v47 = vsel %vm780_vm0, %v7773_v51, %v2491_v26 }
 0x4c0   : > { %v2812_v19 = vsel %vm780_vm0, %v7778_v29, %v2489_v30 }
 0x4c2   : > { %v2619_v0 = vpop.permute.xlu1 %2618 }
 0x4c3   : > { %v2617_v21 = vpop.permute.xlu0 %2616  ;;  %v2845_v38 = vsel %vm813_vm1, %v2813_v47, %v2619_v0 }
 0x4c4   : > { %v2844_v39 = vsel %vm813_vm1, %v2812_v19, %v2617_v21 }
 0x4c6   : > { %v2747_v8 = vpop.permute.xlu1 %2746 }
 0x4c7   : > { %v2745_v53 = vpop.permute.xlu0 %2744  ;;  %v2877_v28 = vsel %vm846_vm2, %v2845_v38, %v2747_v8 }
 0x4c8   : > { %v2876_v52 = vsel %vm846_vm2, %v2844_v39, %v2745_v53 }
 0x4c9   : > { %5169 = vmatprep.mubr.msk.f32.mxu0 %vm881_vm3, %v2876_v52  ;;  %v5205_v15 = vpop.f32.mrb[48].mxu1 }
 0x4ca   : > { %v2495_v12 = vpop.permute.xlu1 %2494  ;;  %4106 = vrot.lane.b32.xlu1 %v5205_v15, %s5375_s26  ;;  %5170 = vmatmul.mubr.msk.f32.gmra.mrb[60].mxu0 %vm881_vm3, %v2877_v28  ;;  %v3961_v51 = vpop.f32.mrb[49].mxu1 }
 0x4cb   : > { %4104 = vrot.lane.b32.xlu0 %v3961_v51, %s5375_s26  ;;  %v2493_v29 = vpop.permute.xlu0 %2492  ;;  %v2815_v34 = vsel %vm780_vm0, %v7802_v24, %v2495_v12 }
 0x4cc   : > { %v2814_v1 = vsel %vm780_vm0, %v7807_v45, %v2493_v29 }
 0x4ce   : > { %v2623_v33 = vpop.permute.xlu1 %2622 }
 0x4cf   : > { %v2621_v55 = vpop.permute.xlu0 %2620  ;;  %v2847_v63 = vsel %vm813_vm1, %v2815_v34, %v2623_v33 }
 0x4d0   : > { %v2846_v50 = vsel %vm813_vm1, %v2814_v1, %v2621_v55 }
 0x4d2   : > { %v2751_v54 = vpop.permute.xlu1 %2750 }
 0x4d3   : > { %v2749_v5 = vpop.permute.xlu0 %2748  ;;  %v2879_v48 = vsel %vm846_vm2, %v2847_v63, %v2751_v54 }
 0x4d4   : > { %v2878_v23 = vsel %vm846_vm2, %v2846_v50, %v2749_v5 }
 0x4d5   : > { %5172 = vmatprep.mubr.msk.f32.mxu0 %vm881_vm3, %v2878_v23  ;;  %v5208_v7 = vpop.f32.mrb[50].mxu1 }
 0x4d6   : > { %4110 = vrot.lane.b32.xlu1 %v5208_v7, %s5375_s26  ;;  %5173 = vmatmul.mubr.msk.f32.gmra.mrb[62].mxu0 %vm881_vm3, %v2879_v48  ;;  %v3971_v24 = vpop.f32.mrb[51].mxu1 }
 0x4d7   : > { %4108 = vrot.lane.b32.xlu0 %v3971_v24, %s5375_s26 }
 0x4dc   : > { %v4075_v46 = vpop.permute.xlu1 %4074 }
 0x4dd   : > { %v4073_v20 = vpop.permute.xlu0 %4072 }
 0x4e1   : > { %v5211_v45 = vpop.f32.mrb[52].mxu1 }
 0x4e2   : > { %4114 = vrot.lane.b32.xlu1 %v5211_v45, %s5375_s26  ;;  %v3981_v62 = vpop.f32.mrb[53].mxu1 }
 0x4e3   : > { %4112 = vrot.lane.b32.xlu0 %v3981_v62, %s5375_s26 }
 0x4e8   : > { %v4079_v42 = vpop.permute.xlu1 %4078 }
 0x4e9   : > { %v4077_v13 = vpop.permute.xlu0 %4076 }
 0x4ed   : > { %v5214_v37 = vpop.f32.mrb[54].mxu1 }
 0x4ee   : > { %4118 = vrot.lane.b32.xlu1 %v5214_v37, %s5375_s26  ;;  %v3991_v4 = vpop.f32.mrb[55].mxu1 }
 0x4ef   : > { %4116 = vrot.lane.b32.xlu0 %v3991_v4, %s5375_s26 }
 0x4f4   : > { %v4083_v9 = vpop.permute.xlu1 %4082 }
 0x4f5   : > { %v4081_v10 = vpop.permute.xlu0 %4080 }
 0x4f9   : > { %v5217_v18 = vpop.f32.mrb[56].mxu1 }
 0x4fa   : > { %4122 = vrot.lane.b32.xlu1 %v5217_v18, %s5375_s26  ;;  %v4001_v59 = vpop.f32.mrb[57].mxu1 }
 0x4fb   : > { %4120 = vrot.lane.b32.xlu0 %v4001_v59, %s5375_s26 }
 0x500   : > { %v4087_v30 = vpop.permute.xlu1 %4086 }
 0x501   : > { %v4085_v21 = vpop.permute.xlu0 %4084 }
 0x505   : > { %v5220_v3 = vpop.f32.mrb[58].mxu1 }
 0x506   : > { %4126 = vrot.lane.b32.xlu1 %v5220_v3, %s5375_s26  ;;  %v4011_v2 = vpop.f32.mrb[59].mxu1 }
 0x507   : > { %4124 = vrot.lane.b32.xlu0 %v4011_v2, %s5375_s26 }
 0x50c   : > { %v4091_v38 = vpop.permute.xlu1 %4090 }
 0x50d   : > { %v4089_v28 = vpop.permute.xlu0 %4088 }
 0x514   : > { %v5223_v35 = vpop.f32.mrb[60].mxu1 }
 0x515   : > { %4130 = vrot.lane.b32.xlu1 %v5223_v35, %s5375_s26  ;;  %v4021_v14 = vpop.f32.mrb[61].mxu1 }
 0x516   : > { %4128 = vrot.lane.b32.xlu0 %v4021_v14, %s5375_s26 }
 0x518   : > { %v4095_v55 = vpop.permute.xlu1 %4094 }
 0x519   : > { %v4093_v1 = vpop.permute.xlu0 %4092 }
 0x51c   : > { %v5129_v6 = vpop.f32.mrb[32].mxu0 }
 0x51d   : > { %v4169_v41 = vsel %vm780_vm0, %v5129_v6, %v4075_v46  ;;  %v3045_v40 = vpop.f32.mrb[33].mxu0 }
 0x51e   : > { %v4201_v58 = vadd.f32 %v8043_v25, %v4169_v41  ;;  %v4168_v11 = vsel %vm780_vm0, %v3045_v40, %v4073_v20 }
 0x51f   : > { %v4200_v36 = vadd.f32 %v8043_v25, %v4168_v11 }
 0x520   : > { %4849 = vst.msk [vmem:[%s7038_s13 + $0x18] sm:$0xff] %vm813_vm1, %v4201_v58 }
 0x521   : > { %4848 = vst.msk [vmem:[%s7038_s13 + $0x10] sm:$0xff] %vm813_vm1, %v4200_v36 }
 0x524   : > { %v4099_v48 = vpop.permute.xlu1 %4098 }
 0x525   : > { %v4097_v24 = vpop.permute.xlu0 %4096 }
 0x528   : > { %v5226_v31 = vpop.f32.mrb[62].mxu1 }
 0x529   : > { %4134 = vrot.lane.b32.xlu1 %v5226_v31, %s5375_s26  ;;  %v4031_v60 = vpop.f32.mrb[63].mxu1 }
 0x52a   : > { %4132 = vrot.lane.b32.xlu0 %v4031_v60, %s5375_s26 }
 0x52d   : > { %v5132_v57 = vpop.f32.mrb[34].mxu0 }
 0x52e   : > { %v4171_v22 = vsel %vm780_vm0, %v5132_v57, %v4079_v42  ;;  %v3055_v16 = vpop.f32.mrb[35].mxu0 }
 0x52f   : > { %v4203_v27 = vadd.f32 %v8043_v25, %v4171_v22  ;;  %v4170_v49 = vsel %vm780_vm0, %v3055_v16, %v4077_v13 }
 0x530   : > { %v4202_v32 = vadd.f32 %v8043_v25, %v4170_v49  ;;  %v4103_v59 = vpop.permute.xlu1 %4102 }
 0x531   : > { %4851 = vst.msk [vmem:[%s7038_s13 + $0x38] sm:$0xff] %vm813_vm1, %v4203_v27  ;;  %v4101_v2 = vpop.permute.xlu0 %4100 }
 0x532   : > { %4850 = vst.msk [vmem:[%s7038_s13 + $0x30] sm:$0xff] %vm813_vm1, %v4202_v32 }
 0x535   : > { %v5135_v17 = vpop.f32.mrb[36].mxu0 }
 0x536   : > { %v4173_v56 = vsel %vm780_vm0, %v5135_v17, %v4083_v9  ;;  %v3065_v61 = vpop.f32.mrb[37].mxu0 }
 0x537   : > { %v4205_v44 = vadd.f32 %v8043_v25, %v4173_v56  ;;  %v4172_v26 = vsel %vm780_vm0, %v3065_v61, %v4081_v10 }
 0x538   : > { %v4204_v43 = vadd.f32 %v8043_v25, %v4172_v26 }
 0x539   : > { %4853 = vst.msk [vmem:[%s7038_s13 + $0x58] sm:$0xff] %vm813_vm1, %v4205_v44 }
 0x53a   : > { %4852 = vst.msk [vmem:[%s7038_s13 + $0x50] sm:$0xff] %vm813_vm1, %v4204_v43 }
 0x53c   : > { %v4107_v41 = vpop.permute.xlu1 %4106 }
 0x53d   : > { %v5138_v0 = vpop.f32.mrb[38].mxu0  ;;  %v4105_v58 = vpop.permute.xlu0 %4104 }
 0x53e   : > { %v4175_v47 = vsel %vm780_vm0, %v5138_v0, %v4087_v30  ;;  %v3075_v19 = vpop.f32.mrb[39].mxu0 }
 0x53f   : > { %v4207_v8 = vadd.f32 %v8043_v25, %v4175_v47  ;;  %v4174_v39 = vsel %vm780_vm0, %v3075_v19, %v4085_v21 }
 0x540   : > { %v4206_v53 = vadd.f32 %v8043_v25, %v4174_v39 }
 0x541   : > { %4855 = vst.msk [vmem:[%s7038_s13 + $0x78] sm:$0xff] %vm813_vm1, %v4207_v8 }
 0x542   : > { %4854 = vst.msk [vmem:[%s7038_s13 + $0x70] sm:$0xff] %vm813_vm1, %v4206_v53 }
 0x545   : > { %v5141_v52 = vpop.f32.mrb[40].mxu0 }
 0x546   : > { %v4177_v15 = vsel %vm780_vm0, %v5141_v52, %v4091_v38  ;;  %v3085_v12 = vpop.f32.mrb[41].mxu0 }
 0x547   : > { %v4209_v51 = vadd.f32 %v8043_v25, %v4177_v15  ;;  %v4176_v29 = vsel %vm780_vm0, %v3085_v12, %v4089_v28 }
 0x548   : > { %v4208_v33 = vadd.f32 %v8043_v25, %v4176_v29  ;;  %v4111_v57 = vpop.permute.xlu1 %4110 }
 0x549   : > { %4857 = vst.msk [vmem:[%s7038_s13 + $0x98] sm:$0xff] %vm813_vm1, %v4209_v51  ;;  %v4109_v22 = vpop.permute.xlu0 %4108 }
 0x54a   : > { %4856 = vst.msk [vmem:[%s7038_s13 + $0x90] sm:$0xff] %vm813_vm1, %v4208_v33 }
 0x54d   : > { %v5144_v34 = vpop.f32.mrb[42].mxu0 }
 0x54e   : > { %v4179_v54 = vsel %vm780_vm0, %v5144_v34, %v4095_v55  ;;  %v3095_v50 = vpop.f32.mrb[43].mxu0 }
 0x54f   : > { %v4211_v5 = vadd.f32 %v8043_v25, %v4179_v54  ;;  %v4178_v63 = vsel %vm780_vm0, %v3095_v50, %v4093_v1 }
 0x550   : > { %v4210_v23 = vadd.f32 %v8043_v25, %v4178_v63 }
 0x551   : > { %4859 = vst.msk [vmem:[%s7038_s13 + $0xb8] sm:$0xff] %vm813_vm1, %v4211_v5 }
 0x552   : > { %4858 = vst.msk [vmem:[%s7038_s13 + $0xb0] sm:$0xff] %vm813_vm1, %v4210_v23 }
 0x554   : > { %v4115_v17 = vpop.permute.xlu1 %4114 }
 0x555   : > { %v5147_v7 = vpop.f32.mrb[44].mxu0  ;;  %v4113_v56 = vpop.permute.xlu0 %4112 }
 0x556   : > { %v4181_v45 = vsel %vm780_vm0, %v5147_v7, %v4099_v48  ;;  %v3105_v62 = vpop.f32.mrb[45].mxu0 }
 0x557   : > { %v4213_v37 = vadd.f32 %v8043_v25, %v4181_v45  ;;  %v4180_v4 = vsel %vm780_vm0, %v3105_v62, %v4097_v24 }
 0x558   : > { %v4212_v18 = vadd.f32 %v8043_v25, %v4180_v4 }
 0x559   : > { %4861 = vst.msk [vmem:[%s7038_s13 + $0xd8] sm:$0xff] %vm813_vm1, %v4213_v37 }
 0x55a   : > { %4860 = vst.msk [vmem:[%s7038_s13 + $0xd0] sm:$0xff] %vm813_vm1, %v4212_v18 }
 0x55d   : > { %v5150_v3 = vpop.f32.mrb[46].mxu0 }
 0x55e   : > { %v4183_v35 = vsel %vm780_vm0, %v5150_v3, %v4103_v59  ;;  %v3115_v14 = vpop.f32.mrb[47].mxu0 }
 0x55f   : > { %v4215_v46 = vadd.f32 %v8043_v25, %v4183_v35  ;;  %v4182_v6 = vsel %vm780_vm0, %v3115_v14, %v4101_v2 }
 0x560   : > { %v4214_v20 = vadd.f32 %v8043_v25, %v4182_v6  ;;  %v4119_v0 = vpop.permute.xlu1 %4118 }
 0x561   : > { %4863 = vst.msk [vmem:[%s7038_s13 + $0xf8] sm:$0xff] %vm813_vm1, %v4215_v46  ;;  %v4117_v47 = vpop.permute.xlu0 %4116 }
 0x562   : > { %4862 = vst.msk [vmem:[%s7038_s13 + $0xf0] sm:$0xff] %vm813_vm1, %v4214_v20 }
 0x565   : > { %v5153_v40 = vpop.f32.mrb[48].mxu0 }
 0x566   : > { %v4185_v11 = vsel %vm780_vm0, %v5153_v40, %v4107_v41  ;;  %v3125_v36 = vpop.f32.mrb[49].mxu0 }
 0x567   : > { %v4217_v31 = vadd.f32 %v8043_v25, %v4185_v11  ;;  %v4184_v60 = vsel %vm780_vm0, %v3125_v36, %v4105_v58 }
 0x568   : > { %v4216_v42 = vadd.f32 %v8043_v25, %v4184_v60 }
 0x569   : > { %4865 = vst.msk [vmem:[%s7038_s13 + $0x118] sm:$0xff] %vm813_vm1, %v4217_v31 }
 0x56a   : > { %4864 = vst.msk [vmem:[%s7038_s13 + $0x110] sm:$0xff] %vm813_vm1, %v4216_v42 }
 0x56c   : > { %v4123_v52 = vpop.permute.xlu1 %4122 }
 0x56d   : > { %v5156_v13 = vpop.f32.mrb[50].mxu0  ;;  %v4121_v15 = vpop.permute.xlu0 %4120 }
 0x56e   : > { %v4187_v16 = vsel %vm780_vm0, %v5156_v13, %v4111_v57  ;;  %v3135_v27 = vpop.f32.mrb[51].mxu0 }
 0x56f   : > { %v4219_v49 = vadd.f32 %v8043_v25, %v4187_v16  ;;  %v4186_v32 = vsel %vm780_vm0, %v3135_v27, %v4109_v22 }
 0x570   : > { %v4218_v9 = vadd.f32 %v8043_v25, %v4186_v32 }
 0x571   : > { %4867 = vst.msk [vmem:[%s7038_s13 + $0x138] sm:$0xff] %vm813_vm1, %v4219_v49 }
 0x572   : > { %4866 = vst.msk [vmem:[%s7038_s13 + $0x130] sm:$0xff] %vm813_vm1, %v4218_v9 }
 0x575   : > { %v5159_v10 = vpop.f32.mrb[52].mxu0 }
 0x576   : > { %v4189_v61 = vsel %vm780_vm0, %v5159_v10, %v4115_v17  ;;  %v3145_v44 = vpop.f32.mrb[53].mxu0 }
 0x577   : > { %v4221_v26 = vadd.f32 %v8043_v25, %v4189_v61  ;;  %v4188_v43 = vsel %vm780_vm0, %v3145_v44, %v4113_v56 }
 0x578   : > { %v4220_v30 = vadd.f32 %v8043_v25, %v4188_v43  ;;  %v4127_v34 = vpop.permute.xlu1 %4126 }
 0x579   : > { %4869 = vst.msk [vmem:[%s7038_s13 + $0x158] sm:$0xff] %vm813_vm1, %v4221_v26  ;;  %v4125_v54 = vpop.permute.xlu0 %4124 }
 0x57a   : > { %4868 = vst.msk [vmem:[%s7038_s13 + $0x150] sm:$0xff] %vm813_vm1, %v4220_v30 }
 0x57d   : > { %v5162_v21 = vpop.f32.mrb[54].mxu0 }
 0x57e   : > { %v4191_v19 = vsel %vm780_vm0, %v5162_v21, %v4119_v0  ;;  %v3155_v8 = vpop.f32.mrb[55].mxu0 }
 0x57f   : > { %v4223_v39 = vadd.f32 %v8043_v25, %v4191_v19  ;;  %v4190_v53 = vsel %vm780_vm0, %v3155_v8, %v4117_v47 }
 0x580   : > { %v4222_v38 = vadd.f32 %v8043_v25, %v4190_v53 }
 0x581   : > { %4871 = vst.msk [vmem:[%s7038_s13 + $0x178] sm:$0xff] %vm813_vm1, %v4223_v39 }
 0x582   : > { %4870 = vst.msk [vmem:[%s7038_s13 + $0x170] sm:$0xff] %vm813_vm1, %v4222_v38 }
 0x585   : > { %v5165_v28 = vpop.f32.mrb[56].mxu0 }
 0x586   : > { %v4193_v12 = vsel %vm780_vm0, %v5165_v28, %v4123_v52  ;;  %v3165_v51 = vpop.f32.mrb[57].mxu0 }
 0x587   : > { %v4225_v29 = vadd.f32 %v8043_v25, %v4193_v12  ;;  %v4192_v33 = vsel %vm780_vm0, %v3165_v51, %v4121_v15  ;;  %v4131_v7 = vpop.permute.xlu1 %4130 }
 0x588   : > { %v4224_v55 = vadd.f32 %v8043_v25, %v4192_v33  ;;  %v4129_v45 = vpop.permute.xlu0 %4128 }
 0x589   : > { %4873 = vst.msk [vmem:[%s7038_s13 + $0x198] sm:$0xff] %vm813_vm1, %v4225_v29 }
 0x58a   : > { %4872 = vst.msk [vmem:[%s7038_s13 + $0x190] sm:$0xff] %vm813_vm1, %v4224_v55 }
 0x591   : > { %v5168_v1 = vpop.f32.mrb[58].mxu0 }
 0x592   : > { %v4195_v50 = vsel %vm780_vm0, %v5168_v1, %v4127_v34  ;;  %v3175_v5 = vpop.f32.mrb[59].mxu0 }
 0x593   : > { %v4227_v63 = vadd.f32 %v8043_v25, %v4195_v50  ;;  %v4194_v23 = vsel %vm780_vm0, %v3175_v5, %v4125_v54 }
 0x594   : > { %v4226_v48 = vadd.f32 %v8043_v25, %v4194_v23 }
 0x595   : > { %4875 = vst.msk [vmem:[%s7038_s13 + $0x1b8] sm:$0xff] %vm813_vm1, %v4227_v63 }
 0x596   : > { %4874 = vst.msk [vmem:[%s7038_s13 + $0x1b0] sm:$0xff] %vm813_vm1, %v4226_v48 }
 0x59b   : > { %v4135_v3 = vpop.permute.xlu1 %4134 }
 0x59c   : > { %v4133_v35 = vpop.permute.xlu0 %4132 }
 0x59d   : > { %v5171_v24 = vpop.f32.mrb[60].mxu0 }
 0x59e   : > { %v4197_v62 = vsel %vm780_vm0, %v5171_v24, %v4131_v7  ;;  %v3185_v37 = vpop.f32.mrb[61].mxu0 }
 0x59f   : > { %v4229_v4 = vadd.f32 %v8043_v25, %v4197_v62  ;;  %v4196_v18 = vsel %vm780_vm0, %v3185_v37, %v4129_v45 }
 0x5a0   : > { %v4228_v59 = vadd.f32 %v8043_v25, %v4196_v18 }
 0x5a1   : > { %4877 = vst.msk [vmem:[%s7038_s13 + $0x1d8] sm:$0xff] %vm813_vm1, %v4229_v4 }
 0x5a2   : > { %4876 = vst.msk [vmem:[%s7038_s13 + $0x1d0] sm:$0xff] %vm813_vm1, %v4228_v59 }
 0x5a9   : > { %v5174_v2 = vpop.f32.mrb[62].mxu0 }
 0x5aa   : > { %v4199_v14 = vsel %vm780_vm0, %v5174_v2, %v4135_v3  ;;  %v3195_v46 = vpop.f32.mrb[63].mxu0 }
 0x5ab   : > { %v4231_v6 = vadd.f32 %v8043_v25, %v4199_v14  ;;  %v4198_v20 = vsel %vm780_vm0, %v3195_v46, %v4133_v35 }
 0x5ac   : > { %v4230_v41 = vadd.f32 %v8043_v25, %v4198_v20 }
 0x5ad   : > { %4879 = vst.msk [vmem:[%s7038_s13 + $0x1f8] sm:$0xff] %vm813_vm1, %v4231_v6 }
 0x5ae   : > { %4878 = vst.msk [vmem:[%s7038_s13 + $0x1f0] sm:$0xff] %vm813_vm1, %v4230_v41 }
 0x5af PF: > { %s13_s16 = sadd.s32 1, %s5373_s16   ;;  %s8498_s12 = smov %s5365_s14 }
 0x5b0   : > { %p10_p7 = scmp.ge.s32.totalorder %s13_s16, 6   ;;  %s8499_s13 = smov %s5369_s15 }
 0x5b1   : > { %s8500_s14 = smov %s8503_s17  ;;  %s8501_s15 = smov %s8507_s18 }
 0x5b2   :  { %12 = sbr.rel (!%p10_p7) target bundleno = 3 (0x3), region = 75 }

</bundles_post_ra>
